<compile_context>
chip_gen: v7x
topology: tpu7x:2x2x1
jax: 0.10.0
libtpu: 0.0.40
codegen_flags: <defaults>
</compile_context>

<pallas_src>
import jax
import jax.numpy as jnp
from jax import lax
from jax.experimental import pallas as pl
from jax.experimental.pallas import tpu as pltpu

LEAKY_SLOPE = 0.01  # torch.nn.LeakyReLU default
BN_EPS = 1e-5       # torch.nn.BatchNorm2d default


def _leaky(x):
    return jnp.where(x > 0, x, LEAKY_SLOPE * x)


def dark_res_block_kernel(x_ref, w1_ref, b1_ref, w2_ref, b2_ref,
                          o_ref, hpad_ref):
    # x_ref: (1, H, W, C) NHWC tile for one batch element.
    _, H, W, C = x_ref.shape
    Cr = w1_ref.shape[1]
    HW = H * W
    NP = (H + 2) * W                        # rows of the H-halo, W-flat buffer

    # ---- layer1: 1x1 conv == bf16 channel matmul (f32 acc, BN scale folded
    #      into w1) + bias + leaky.  Only a bf16 cast of x is consumed here so
    #      the f32 input does not stay live across the layer-2 matmuls.
    x_bf16 = x_ref[0].reshape(HW, C).astype(jnp.bfloat16)
    h = jnp.dot(x_bf16, w1_ref[...], preferred_element_type=jnp.float32)
    h = _leaky(h + b1_ref[...])                              # (HW, Cr) f32

    # ---- H-halo scratch, flattened ((H+2)*W, Cr).  Only the two halo
    #      row-bands are zeroed (2*W rows); the interior is overwritten.
    #      Re-zeroed every grid step: the batch axis is "parallel", so there
    #      is no ordering guarantee to rely on for a one-time init.
    zero_band = jnp.zeros((W, Cr), jnp.float32)
    hpad_ref[0:W] = zero_band                                # y = -1 halo
    hpad_ref[(H + 1) * W:NP] = zero_band                     # y =  H halo
    hpad_ref[W:(H + 1) * W] = h                              # interior (aligned)
    hb = h.astype(jnp.bfloat16)                              # centre tap, h dies

    # ---- dx = -1 / +1 neighbours: XLU roll + in-kernel iota edge masks
    #      (zero padding along W).  Masks are a handful of VPU integer ops
    #      instead of lane-padded (NP, 1) f32 inputs.
    col = lax.broadcasted_iota(jnp.int32, (NP, 1), 0) % W
    mask_l = (col != 0).astype(jnp.float32)                  # kill x == 0
    mask_r = (col != (W - 1)).astype(jnp.float32)            # kill x == W-1
    hp = hpad_ref[...]                                       # (NP, Cr) f32
    left = (pltpu.roll(hp, shift=1, axis=0) * mask_l).astype(jnp.bfloat16)
    right = (pltpu.roll(hp, shift=NP - 1, axis=0) * mask_r).astype(jnp.bfloat16)

    # ---- layer2: 3x3 conv as NINE per-tap bf16 MXU matmuls accumulated in
    #      f32 (no (HW, 9*Cr) im2col transient).  dy shifts are aligned
    #      sublane-offset slices of the flat halo buffer; BN scale is folded
    #      into w2.  Tap t = kh*3 + kw owns rows [t*Cr, (t+1)*Cr) of w2.
    out = None
    for kh in range(3):
        for kw in range(3):
            if kw == 1:
                if kh == 1:
                    tap = hb                                 # centre, from h
                else:
                    tap = hpad_ref[kh * W:kh * W + HW].astype(jnp.bfloat16)
            else:
                src = left if kw == 0 else right
                tap = src[kh * W:kh * W + HW]                # already bf16
            t = kh * 3 + kw
            part = jnp.dot(tap, w2_ref[t * Cr:(t + 1) * Cr, :],
                           preferred_element_type=jnp.float32)
            out = part if out is None else out + part

    out = _leaky(out + b2_ref[...])                          # (HW, C) f32

    # ---- residual add; x is re-read here (VMEM-resident, effectively free),
    #      lane-dense store (C is a multiple of 128 in practice).
    o_ref[0] = (out.reshape(H, W, C) + x_ref[0]).astype(o_ref.dtype)


def _vmem_limit_bytes():
    """Generation-aware VMEM budget: ~3/4 of physical (96 MiB v5e/v6e, 48 MiB v7x)."""
    try:
        cap = pltpu.get_tpu_info().vmem_capacity_bytes
    except Exception:
        cap = 64 * 1024 * 1024               # conservative fallback (fits v7x)
    return max(32 * 1024 * 1024, min((3 * cap) // 4, 112 * 1024 * 1024))


def dark_residual_block_nhwc(x_nhwc, params):
    """Core NHWC entry point: x_nhwc (N, H, W, C) f32 -> (N, H, W, C) f32."""
    w1, b1, w2, b2 = params
    N, H, W, C = x_nhwc.shape
    Cr = w1.shape[1]
    assert W % 8 == 0, "W must be sublane-aligned"  # TODO(synk): pad odd widths
    nflat = (H + 2) * W

    single = dict(pipeline_mode=pl.Buffered(1))     # grid-invariant operands

    return pl.pallas_call(
        dark_res_block_kernel,
        out_shape=jax.ShapeDtypeStruct((N, H, W, C), jnp.float32),
        grid=(N,),
        in_specs=[
            pl.BlockSpec((1, H, W, C), lambda n: (n, 0, 0, 0)),        # x
            pl.BlockSpec((C, Cr), lambda n: (0, 0), **single),         # w1 (bf16, BN folded)
            pl.BlockSpec((1, Cr), lambda n: (0, 0), **single),         # b1
            pl.BlockSpec((9 * Cr, C), lambda n: (0, 0), **single),     # w2 slab (bf16, BN folded)
            pl.BlockSpec((1, C), lambda n: (0, 0), **single),          # b2
        ],
        out_specs=pl.BlockSpec((1, H, W, C), lambda n: (n, 0, 0, 0)),
        scratch_shapes=[pltpu.VMEM((nflat, Cr), jnp.float32)],
        input_output_aliases={0: 0},                                   # donate x HBM
        compiler_params=pltpu.CompilerParams(
            dimension_semantics=("parallel",),
            vmem_limit_bytes=_vmem_limit_bytes()),
    )(x_nhwc, w1, b1, w2, b2)


@jax.jit
def dark_residual_block(x_nchw, params):
    """PyTorch-parity wrapper: (N, C, H, W) f32 -> (N, C, H, W) f32."""
    # TODO(synk): NHWC-native models should call dark_residual_block_nhwc
    # directly and drop these two full-tensor HBM transposes (memory-bound op).
    x_nhwc = jnp.transpose(x_nchw, (0, 2, 3, 1))
    out_nhwc = dark_residual_block_nhwc(x_nhwc, params)
    return jnp.transpose(out_nhwc, (0, 3, 1, 2))


def make_params(key, in_channels):
    """Deterministic synthetic parameters matching the PyTorch module shapes."""
    C = in_channels
    Cr = C // 2
    ks = jax.random.split(key, 10)

    # PyTorch conv weight shapes: (out, in, kh, kw); fan-in scaled.
    conv1_w = jax.random.normal(ks[0], (Cr, C, 1, 1), jnp.float32) * (1.0 / (C ** 0.5))
    conv2_w = jax.random.normal(ks[1], (C, Cr, 3, 3), jnp.float32) * (1.0 / ((9 * Cr) ** 0.5))

    g1 = jax.random.uniform(ks[2], (Cr,), jnp.float32, 0.5, 1.5)
    be1 = jax.random.normal(ks[3], (Cr,), jnp.float32) * 0.1
    m1 = jax.random.normal(ks[4], (Cr,), jnp.float32) * 0.1
    v1 = jax.random.uniform(ks[5], (Cr,), jnp.float32, 0.5, 1.5)

    g2 = jax.random.uniform(ks[6], (C,), jnp.float32, 0.5, 1.5)
    be2 = jax.random.normal(ks[7], (C,), jnp.float32) * 0.1
    m2 = jax.random.normal(ks[8], (C,), jnp.float32) * 0.1
    v2 = jax.random.uniform(ks[9], (C,), jnp.float32, 0.5, 1.5)

    # Fold BN (eval / running-stats semantics): scale -> weights, shift -> bias.
    s1 = g1 / jnp.sqrt(v1 + BN_EPS)
    b1 = be1 - m1 * s1
    s2 = g2 / jnp.sqrt(v2 + BN_EPS)
    b2 = be2 - m2 * s2

    w1_folded = conv1_w[:, :, 0, 0] * s1[:, None]             # (Cr, C)  f32
    w2_folded = conv2_w * s2[:, None, None, None]             # (C, Cr, 3, 3) f32

    # Kernel-layout bf16 MXU operands:
    w1 = jnp.transpose(w1_folded, (1, 0)).astype(jnp.bfloat16)                    # (C, Cr)
    # (O, I, kh, kw) -> (kh, kw, I, O) -> (9*Cr, C), row = (kh*3+kw)*Cr + ci
    w2 = jnp.transpose(w2_folded, (2, 3, 1, 0)).reshape(9 * Cr, C).astype(jnp.bfloat16)

    kernel_params = (w1, b1.reshape(1, Cr), w2, b2.reshape(1, C))

    # Reference weights in conv layout, cast from the SAME folded f32 values so
    # the bf16 rounding matches the kernel exactly.
    ref_params = (w1_folded[:, :, None, None].astype(jnp.bfloat16),   # (Cr, C, 1, 1)
                  b1,
                  w2_folded.astype(jnp.bfloat16),                     # (C, Cr, 3, 3)
                  b2)
    return kernel_params, ref_params


def reference(x_nchw, ref_params):
    """Pure-JAX NCHW reference with the same folded-BN / bf16-operand semantics."""
    conv1_w, b1, conv2_w, b2 = ref_params
    dn = ('NCHW', 'OIHW', 'NCHW')
    h = lax.conv_general_dilated(
        x_nchw.astype(jnp.bfloat16), conv1_w, (1, 1), 'VALID',
        dimension_numbers=dn, preferred_element_type=jnp.float32)
    h = _leaky(h + b1[None, :, None, None])
    o = lax.conv_general_dilated(
        h.astype(jnp.bfloat16), conv2_w, (1, 1), ((1, 1), (1, 1)),
        dimension_numbers=dn, preferred_element_type=jnp.float32)
    o = _leaky(o + b2[None, :, None, None])
    return o + x_nchw


if __name__ == "__main__":
    # Realistic channel count (DarkNet-53 block) so lane dims are 128-aligned;
    # spatial kept small so the test stays tiny and fast.
    N, C, H, W = 2, 256, 16, 16
    key = jax.random.PRNGKey(0)
    kx, kp = jax.random.split(key)
    x = jax.random.normal(kx, (N, C, H, W), jnp.float32)

    kernel_params, ref_params = make_params(kp, C)

    out = dark_residual_block(x, kernel_params)
    out = jax.block_until_ready(out)

    ref = reference(x, ref_params)
    assert out.shape == (N, C, H, W)
    err = float(jnp.max(jnp.abs(out - ref)))
    assert err < 5e-3, f"mismatch vs reference: {err}"

    print("KERNEL_OK")
</pallas_src>

<mosaic_0001>
module attributes {stable_mosaic.version = 11 : i64} {
  func.func @dark_res_block_kernel(%arg0: i32, %arg1: memref<1x16x16x256xf32, #tpu.memory_space<vmem>>, %arg2: memref<256x128xbf16, #tpu.memory_space<vmem>>, %arg3: memref<1x128xf32, #tpu.memory_space<vmem>>, %arg4: memref<1152x256xbf16, #tpu.memory_space<vmem>>, %arg5: memref<1x256xf32, #tpu.memory_space<vmem>>, %arg6: memref<1x16x16x256xf32, #tpu.memory_space<vmem>>, %arg7: memref<288x128xf32, #tpu.memory_space<vmem>>) attributes {dimension_semantics = [#tpu.dimension_semantics<parallel>], iteration_bounds = array<i64: 2>, scalar_prefetch = 0 : i64, scratch_operands = 1 : i64, tpu.core_type = #tpu.core_type<tc>, window_params = [{transform_indices = @transform_0, window_bounds = array<i64: 1, 16, 16, 256>}, {pipeline_mode = #tpu.pipeline_mode<synchronous>, transform_indices = @transform_1, window_bounds = array<i64: 256, 128>}, {pipeline_mode = #tpu.pipeline_mode<synchronous>, transform_indices = @transform_2, window_bounds = array<i64: 1, 128>}, {pipeline_mode = #tpu.pipeline_mode<synchronous>, transform_indices = @transform_3, window_bounds = array<i64: 1152, 256>}, {pipeline_mode = #tpu.pipeline_mode<synchronous>, transform_indices = @transform_4, window_bounds = array<i64: 1, 256>}, {transform_indices = @transform_5, window_bounds = array<i64: 1, 16, 16, 256>}]} {
    %c0 = arith.constant 0 : index
    %c0_0 = arith.constant 0 : index
    %c0_1 = arith.constant 0 : index
    %c0_2 = arith.constant 0 : index
    %0 = vector.load %arg1[%c0, %c0_0, %c0_1, %c0_2] : memref<1x16x16x256xf32, #tpu.memory_space<vmem>>, vector<1x16x16x256xf32>
    %1 = vector.shape_cast %0 : vector<1x16x16x256xf32> to vector<16x16x256xf32>
    %2 = vector.shape_cast %1 : vector<16x16x256xf32> to vector<256x256xf32>
    %3 = arith.truncf %2 : vector<256x256xf32> to vector<256x256xbf16>
    %c0_3 = arith.constant 0 : index
    %c0_4 = arith.constant 0 : index
    %4 = vector.load %arg2[%c0_3, %c0_4] : memref<256x128xbf16, #tpu.memory_space<vmem>>, vector<256x128xbf16>
    %cst = arith.constant dense<0.000000e+00> : vector<256x128xf32>
    %5 = tpu.matmul %3, %4, %cst {dimension_numbers = #tpu.dot_dimension_numbers<[1], [0], [0], [1], [0, 0, 1, 1], [], []>} : vector<256x256xbf16>, vector<256x128xbf16>, vector<256x128xf32> -> vector<256x128xf32>
    %c0_5 = arith.constant 0 : index
    %c0_6 = arith.constant 0 : index
    %6 = vector.load %arg3[%c0_5, %c0_6] : memref<1x128xf32, #tpu.memory_space<vmem>>, vector<1x128xf32>
    %7 = vector.broadcast %6 : vector<1x128xf32> to vector<256x128xf32>
    %8 = arith.addf %5, %7 : vector<256x128xf32>
    %cst_7 = arith.constant 0.000000e+00 : f32
    %9 = vector.broadcast %cst_7 : f32 to vector<256x128xf32>
    %10 = arith.cmpf ogt, %8, %9 : vector<256x128xf32>
    %cst_8 = arith.constant 0.00999999977 : f32
    %11 = vector.broadcast %cst_8 : f32 to vector<256x128xf32>
    %12 = arith.mulf %11, %8 : vector<256x128xf32>
    %13 = arith.select %10, %8, %12 : vector<256x128xi1>, vector<256x128xf32>
    %cst_9 = arith.constant 0.000000e+00 : f32
    %14 = vector.broadcast %cst_9 : f32 to vector<16x128xf32>
    %c0_10 = arith.constant 0 : index
    %c0_11 = arith.constant 0 : index
    %15 = vector.load %arg7[%c0_10, %c0_11] : memref<288x128xf32, #tpu.memory_space<vmem>>, vector<16x128xf32>
    tpu.vector_store %arg7[%c0_10, %c0_11], %14 {strides = array<i32>} : memref<288x128xf32, #tpu.memory_space<vmem>>, vector<16x128xf32>,
    %c272 = arith.constant 272 : index
    %c0_12 = arith.constant 0 : index
    %16 = vector.load %arg7[%c272, %c0_12] : memref<288x128xf32, #tpu.memory_space<vmem>>, vector<16x128xf32>
    tpu.vector_store %arg7[%c272, %c0_12], %14 {strides = array<i32>} : memref<288x128xf32, #tpu.memory_space<vmem>>, vector<16x128xf32>,
    %c16 = arith.constant 16 : index
    %c0_13 = arith.constant 0 : index
    %17 = vector.load %arg7[%c16, %c0_13] : memref<288x128xf32, #tpu.memory_space<vmem>>, vector<256x128xf32>
    tpu.vector_store %arg7[%c16, %c0_13], %13 {strides = array<i32>} : memref<288x128xf32, #tpu.memory_space<vmem>>, vector<256x128xf32>,
    %18 = arith.truncf %13 : vector<256x128xf32> to vector<256x128xbf16>
    %19 = tpu.iota {dimensions = array<i32: 0>} : vector<288x1xi32>
    %c16_i32 = arith.constant 16 : i32
    %c0_i32 = arith.constant 0 : i32
    %20 = arith.cmpi eq, %c16_i32, %c0_i32 : i32
    %c1_i32 = arith.constant 1 : i32
    %21 = arith.select %20, %c1_i32, %c16_i32 : i32
    %22 = vector.broadcast %21 : i32 to vector<288x1xi32>
    %23 = arith.remsi %19, %22 : vector<288x1xi32>
    %c0_i32_14 = arith.constant 0 : i32
    %24 = vector.broadcast %c0_i32_14 : i32 to vector<288x1xi32>
    %25 = arith.cmpi ne, %23, %24 : vector<288x1xi32>
    %c0_i32_15 = arith.constant 0 : i32
    %26 = vector.broadcast %c0_i32_15 : i32 to vector<288x1xi32>
    %27 = arith.cmpi slt, %23, %26 : vector<288x1xi32>
    %c0_i32_16 = arith.constant 0 : i32
    %28 = arith.cmpi slt, %21, %c0_i32_16 : i32
    %29 = vector.broadcast %28 : i1 to vector<288x1xi1>
    %30 = vector.broadcast %29 : vector<288x1xi1> to vector<288x1xi1>
    %31 = arith.xori %27, %30 : vector<288x1xi1>
    %32 = arith.andi %31, %25 : vector<288x1xi1>
    %33 = vector.broadcast %21 : i32 to vector<288x1xi32>
    %34 = arith.addi %23, %33 : vector<288x1xi32>
    %35 = arith.select %32, %34, %23 : vector<288x1xi1>, vector<288x1xi32>
    %c0_i32_17 = arith.constant 0 : i32
    %36 = vector.broadcast %c0_i32_17 : i32 to vector<288x1xi32>
    %37 = arith.cmpi ne, %35, %36 : vector<288x1xi32>
    %38 = arith.extui %37 : vector<288x1xi1> to vector<288x1xi32>
    %39 = arith.sitofp %38 : vector<288x1xi32> to vector<288x1xf32>
    %c15_i32 = arith.constant 15 : i32
    %40 = vector.broadcast %c15_i32 : i32 to vector<288x1xi32>
    %41 = arith.cmpi ne, %35, %40 : vector<288x1xi32>
    %42 = arith.extui %41 : vector<288x1xi1> to vector<288x1xi32>
    %43 = arith.sitofp %42 : vector<288x1xi32> to vector<288x1xf32>
    %c0_18 = arith.constant 0 : index
    %c0_19 = arith.constant 0 : index
    %44 = vector.load %arg7[%c0_18, %c0_19] : memref<288x128xf32, #tpu.memory_space<vmem>>, vector<288x128xf32>
    %c1_i32_20 = arith.constant 1 : i32
    %45 = tpu.dynamic_rotate %44 by %c1_i32_20 dim 0 : vector<288x128xf32>, i32 -> vector<288x128xf32>
    %46 = vector.broadcast %39 : vector<288x1xf32> to vector<288x128xf32>
    %47 = arith.mulf %45, %46 : vector<288x128xf32>
    %48 = arith.truncf %47 : vector<288x128xf32> to vector<288x128xbf16>
    %c287_i32 = arith.constant 287 : i32
    %49 = tpu.dynamic_rotate %44 by %c287_i32 dim 0 : vector<288x128xf32>, i32 -> vector<288x128xf32>
    %50 = vector.broadcast %43 : vector<288x1xf32> to vector<288x128xf32>
    %51 = arith.mulf %49, %50 : vector<288x128xf32>
    %52 = arith.truncf %51 : vector<288x128xf32> to vector<288x128xbf16>
    %53 = vector.extract_strided_slice %48 {offsets = [0, 0], sizes = [256, 128], strides = [1, 1]} : vector<288x128xbf16> to vector<256x128xbf16>
    %c0_21 = arith.constant 0 : index
    %c0_22 = arith.constant 0 : index
    %54 = vector.load %arg4[%c0_21, %c0_22] : memref<1152x256xbf16, #tpu.memory_space<vmem>>, vector<128x256xbf16>
    %cst_23 = arith.constant dense<0.000000e+00> : vector<256x256xf32>
    %55 = tpu.matmul %53, %54, %cst_23 {dimension_numbers = #tpu.dot_dimension_numbers<[1], [0], [0], [1], [0, 0, 1, 1], [], []>} : vector<256x128xbf16>, vector<128x256xbf16>, vector<256x256xf32> -> vector<256x256xf32>
    %c0_24 = arith.constant 0 : index
    %c0_25 = arith.constant 0 : index
    %56 = vector.load %arg7[%c0_24, %c0_25] : memref<288x128xf32, #tpu.memory_space<vmem>>, vector<256x128xf32>
    %57 = arith.truncf %56 : vector<256x128xf32> to vector<256x128xbf16>
    %c128 = arith.constant 128 : index
    %c0_26 = arith.constant 0 : index
    %58 = vector.load %arg4[%c128, %c0_26] : memref<1152x256xbf16, #tpu.memory_space<vmem>>, vector<128x256xbf16>
    %cst_27 = arith.constant dense<0.000000e+00> : vector<256x256xf32>
    %59 = tpu.matmul %57, %58, %cst_27 {dimension_numbers = #tpu.dot_dimension_numbers<[1], [0], [0], [1], [0, 0, 1, 1], [], []>} : vector<256x128xbf16>, vector<128x256xbf16>, vector<256x256xf32> -> vector<256x256xf32>
    %60 = arith.addf %55, %59 : vector<256x256xf32>
    %61 = vector.extract_strided_slice %52 {offsets = [0, 0], sizes = [256, 128], strides = [1, 1]} : vector<288x128xbf16> to vector<256x128xbf16>
    %c256 = arith.constant 256 : index
    %c0_28 = arith.constant 0 : index
    %62 = vector.load %arg4[%c256, %c0_28] : memref<1152x256xbf16, #tpu.memory_space<vmem>>, vector<128x256xbf16>
    %cst_29 = arith.constant dense<0.000000e+00> : vector<256x256xf32>
    %63 = tpu.matmul %61, %62, %cst_29 {dimension_numbers = #tpu.dot_dimension_numbers<[1], [0], [0], [1], [0, 0, 1, 1], [], []>} : vector<256x128xbf16>, vector<128x256xbf16>, vector<256x256xf32> -> vector<256x256xf32>
    %64 = arith.addf %60, %63 : vector<256x256xf32>
    %65 = vector.extract_strided_slice %48 {offsets = [16, 0], sizes = [256, 128], strides = [1, 1]} : vector<288x128xbf16> to vector<256x128xbf16>
    %c384 = arith.constant 384 : index
    %c0_30 = arith.constant 0 : index
    %66 = vector.load %arg4[%c384, %c0_30] : memref<1152x256xbf16, #tpu.memory_space<vmem>>, vector<128x256xbf16>
    %cst_31 = arith.constant dense<0.000000e+00> : vector<256x256xf32>
    %67 = tpu.matmul %65, %66, %cst_31 {dimension_numbers = #tpu.dot_dimension_numbers<[1], [0], [0], [1], [0, 0, 1, 1], [], []>} : vector<256x128xbf16>, vector<128x256xbf16>, vector<256x256xf32> -> vector<256x256xf32>
    %68 = arith.addf %64, %67 : vector<256x256xf32>
    %c512 = arith.constant 512 : index
    %c0_32 = arith.constant 0 : index
    %69 = vector.load %arg4[%c512, %c0_32] : memref<1152x256xbf16, #tpu.memory_space<vmem>>, vector<128x256xbf16>
    %cst_33 = arith.constant dense<0.000000e+00> : vector<256x256xf32>
    %70 = tpu.matmul %18, %69, %cst_33 {dimension_numbers = #tpu.dot_dimension_numbers<[1], [0], [0], [1], [0, 0, 1, 1], [], []>} : vector<256x128xbf16>, vector<128x256xbf16>, vector<256x256xf32> -> vector<256x256xf32>
    %71 = arith.addf %68, %70 : vector<256x256xf32>
    %72 = vector.extract_strided_slice %52 {offsets = [16, 0], sizes = [256, 128], strides = [1, 1]} : vector<288x128xbf16> to vector<256x128xbf16>
    %c640 = arith.constant 640 : index
    %c0_34 = arith.constant 0 : index
    %73 = vector.load %arg4[%c640, %c0_34] : memref<1152x256xbf16, #tpu.memory_space<vmem>>, vector<128x256xbf16>
    %cst_35 = arith.constant dense<0.000000e+00> : vector<256x256xf32>
    %74 = tpu.matmul %72, %73, %cst_35 {dimension_numbers = #tpu.dot_dimension_numbers<[1], [0], [0], [1], [0, 0, 1, 1], [], []>} : vector<256x128xbf16>, vector<128x256xbf16>, vector<256x256xf32> -> vector<256x256xf32>
    %75 = arith.addf %71, %74 : vector<256x256xf32>
    %76 = vector.extract_strided_slice %48 {offsets = [32, 0], sizes = [256, 128], strides = [1, 1]} : vector<288x128xbf16> to vector<256x128xbf16>
    %c768 = arith.constant 768 : index
    %c0_36 = arith.constant 0 : index
    %77 = vector.load %arg4[%c768, %c0_36] : memref<1152x256xbf16, #tpu.memory_space<vmem>>, vector<128x256xbf16>
    %cst_37 = arith.constant dense<0.000000e+00> : vector<256x256xf32>
    %78 = tpu.matmul %76, %77, %cst_37 {dimension_numbers = #tpu.dot_dimension_numbers<[1], [0], [0], [1], [0, 0, 1, 1], [], []>} : vector<256x128xbf16>, vector<128x256xbf16>, vector<256x256xf32> -> vector<256x256xf32>
    %79 = arith.addf %75, %78 : vector<256x256xf32>
    %c32 = arith.constant 32 : index
    %c0_38 = arith.constant 0 : index
    %80 = vector.load %arg7[%c32, %c0_38] : memref<288x128xf32, #tpu.memory_space<vmem>>, vector<256x128xf32>
    %81 = arith.truncf %80 : vector<256x128xf32> to vector<256x128xbf16>
    %c896 = arith.constant 896 : index
    %c0_39 = arith.constant 0 : index
    %82 = vector.load %arg4[%c896, %c0_39] : memref<1152x256xbf16, #tpu.memory_space<vmem>>, vector<128x256xbf16>
    %cst_40 = arith.constant dense<0.000000e+00> : vector<256x256xf32>
    %83 = tpu.matmul %81, %82, %cst_40 {dimension_numbers = #tpu.dot_dimension_numbers<[1], [0], [0], [1], [0, 0, 1, 1], [], []>} : vector<256x128xbf16>, vector<128x256xbf16>, vector<256x256xf32> -> vector<256x256xf32>
    %84 = arith.addf %79, %83 : vector<256x256xf32>
    %85 = vector.extract_strided_slice %52 {offsets = [32, 0], sizes = [256, 128], strides = [1, 1]} : vector<288x128xbf16> to vector<256x128xbf16>
    %c1024 = arith.constant 1024 : index
    %c0_41 = arith.constant 0 : index
    %86 = vector.load %arg4[%c1024, %c0_41] : memref<1152x256xbf16, #tpu.memory_space<vmem>>, vector<128x256xbf16>
    %cst_42 = arith.constant dense<0.000000e+00> : vector<256x256xf32>
    %87 = tpu.matmul %85, %86, %cst_42 {dimension_numbers = #tpu.dot_dimension_numbers<[1], [0], [0], [1], [0, 0, 1, 1], [], []>} : vector<256x128xbf16>, vector<128x256xbf16>, vector<256x256xf32> -> vector<256x256xf32>
    %88 = arith.addf %84, %87 : vector<256x256xf32>
    %c0_43 = arith.constant 0 : index
    %c0_44 = arith.constant 0 : index
    %89 = vector.load %arg5[%c0_43, %c0_44] : memref<1x256xf32, #tpu.memory_space<vmem>>, vector<1x256xf32>
    %90 = vector.broadcast %89 : vector<1x256xf32> to vector<256x256xf32>
    %91 = arith.addf %88, %90 : vector<256x256xf32>
    %cst_45 = arith.constant 0.000000e+00 : f32
    %92 = vector.broadcast %cst_45 : f32 to vector<256x256xf32>
    %93 = arith.cmpf ogt, %91, %92 : vector<256x256xf32>
    %cst_46 = arith.constant 0.00999999977 : f32
    %94 = vector.broadcast %cst_46 : f32 to vector<256x256xf32>
    %95 = arith.mulf %94, %91 : vector<256x256xf32>
    %96 = arith.select %93, %91, %95 : vector<256x256xi1>, vector<256x256xf32>
    %97 = vector.shape_cast %96 : vector<256x256xf32> to vector<16x16x256xf32>
    %c0_47 = arith.constant 0 : index
    %c0_48 = arith.constant 0 : index
    %c0_49 = arith.constant 0 : index
    %c0_50 = arith.constant 0 : index
    %98 = vector.load %arg1[%c0_47, %c0_48, %c0_49, %c0_50] : memref<1x16x16x256xf32, #tpu.memory_space<vmem>>, vector<1x16x16x256xf32>
    %99 = vector.shape_cast %98 : vector<1x16x16x256xf32> to vector<16x16x256xf32>
    %100 = arith.addf %97, %99 : vector<16x16x256xf32>
    %c0_51 = arith.constant 0 : index
    %c0_52 = arith.constant 0 : index
    %c0_53 = arith.constant 0 : index
    %c0_54 = arith.constant 0 : index
    %101 = vector.load %arg6[%c0_51, %c0_52, %c0_53, %c0_54] : memref<1x16x16x256xf32, #tpu.memory_space<vmem>>, vector<1x16x16x256xf32>
    %102 = vector.shape_cast %101 : vector<1x16x16x256xf32> to vector<16x16x256xf32>
    %103 = vector.shape_cast %100 : vector<16x16x256xf32> to vector<1x16x16x256xf32>
    tpu.vector_store %arg6[%c0_51, %c0_52, %c0_53, %c0_54], %103 {strides = array<i32>} : memref<1x16x16x256xf32, #tpu.memory_space<vmem>>, vector<1x16x16x256xf32>,
    return
  }
  func.func @transform_0(%arg0: i32) -> (i32, i32, i32, i32) {
    %c0_i32 = arith.constant 0 : i32
    %c0_i32_0 = arith.constant 0 : i32
    %c0_i32_1 = arith.constant 0 : i32
    %c0_i32_2 = arith.constant 0 : i32
    return %arg0, %c0_i32, %c0_i32_0, %c0_i32_1 : i32, i32, i32, i32
  }
  func.func @transform_1(%arg0: i32) -> (i32, i32) {
    %c0_i32 = arith.constant 0 : i32
    %c0_i32_0 = arith.constant 0 : i32
    %c0_i32_1 = arith.constant 0 : i32
    return %c0_i32, %c0_i32_0 : i32, i32
  }
  func.func @transform_2(%arg0: i32) -> (i32, i32) {
    %c0_i32 = arith.constant 0 : i32
    %c0_i32_0 = arith.constant 0 : i32
    %c0_i32_1 = arith.constant 0 : i32
    return %c0_i32, %c0_i32_0 : i32, i32
  }
  func.func @transform_3(%arg0: i32) -> (i32, i32) {
    %c0_i32 = arith.constant 0 : i32
    %c0_i32_0 = arith.constant 0 : i32
    %c0_i32_1 = arith.constant 0 : i32
    return %c0_i32, %c0_i32_0 : i32, i32
  }
  func.func @transform_4(%arg0: i32) -> (i32, i32) {
    %c0_i32 = arith.constant 0 : i32
    %c0_i32_0 = arith.constant 0 : i32
    %c0_i32_1 = arith.constant 0 : i32
    return %c0_i32, %c0_i32_0 : i32, i32
  }
  func.func @transform_5(%arg0: i32) -> (i32, i32, i32, i32) {
    %c0_i32 = arith.constant 0 : i32
    %c0_i32_0 = arith.constant 0 : i32
    %c0_i32_1 = arith.constant 0 : i32
    %c0_i32_2 = arith.constant 0 : i32
    return %arg0, %c0_i32, %c0_i32_0, %c0_i32_1 : i32, i32, i32, i32
  }
}

</mosaic_0001>

<bundles_post_ra>
// kernel: dark_residual_block.1
= control target key start
LH: loop header
LB: loop body
LE: loop exit
PB: predicated region body
PF: predicated region fallthrough
CT: control target
= control target key end

     0   :  { %10 = vsyncpa [#allocation4], 0  ;;  %s6565_s18 = smov 0   ;;  %s8245_s0 = inlined_call_operand.vmem [shape: f32[2,16,16,256], index: 0, kind: input, shape index: {}, may-alias: {0,5}]   ;;  %s8246_s1 = inlined_call_operand.vmem [shape: bf16[256,128], index: 1, kind: input, shape index: {}]   ;;  %s8247_s2 = inlined_call_operand.vmem [shape: f32[1,128], index: 2, kind: input, shape index: {}]   ;;  %s8248_s3 = inlined_call_operand.hbm [shape: bf16[1152,256], index: 3, kind: input, shape index: {}]   ;;  %s8249_s4 = inlined_call_operand.vmem [shape: f32[1,256], index: 4, kind: input, shape index: {}]   ;;  %s8250_s5 = inlined_call_operand.vmem [shape: f32[2,16,16,256], index: 5, kind: output, shape index: {}, may-alias: {0,5}]  }
   0x1 LB: > { %s6571_s19 = sadd.s32 4294967295, %s6527_s18   ;;  %p5398_p0 = scmp.ge.s32.totalorder %s6527_s18, 1  ;;  %s6527_s18 = sphi %s6565_s18, %s16_s18  }
   0x2   : > { %p157_p1 = scmp.lt.s32.totalorder %s6527_s18, 3  ;;  %s6529_s20 = smov [#allocation3]  }
   0x3   : > { %s175_s21 = sshll.u32 %s6529_s20, 4  ;;  %p8251_p3 = scmp.eq.s32.totalorder %s6571_s19, 0  ;;  %s176_s21 = int_to_ptr.vmem [resolvable:$true] %s175_s21 }
   0x4   : > { %p6575_p2 = pnand %p5398_p0, %p157_p1  ;;  %s6489_s26 = scalar_lea.hbm %s8248_s3, 18432 }
   0x5   : > { %p6490_p6 = scmp.ne.s32.totalorder %s8248_s3, %s6489_s26  ;;  %p6496_p10 = scmp.lt.u32.totalorder %s6489_s26, %s8248_s3 }
   0x6   : > { %s8272_s22 = scalar_select %p6575_p2, 1, 0 }
   0x7   : > { %p6236_p4 = pneg %p6575_p2 }
   0x9   : > { %p6584_p5 = pnand %p8251_p3, %p6236_p4 }
   0xb   : > { %p6491_p7 = pneg %p6584_p5 }
   0xd   : > { %p6492_p8 = pnand %p6491_p7, %p6490_p6 }
   0xf   : > { %p6493_p9 = pneg %p6492_p8 }
  0x11   : > { %p6498_p11 = pnand %p6496_p10, %p6493_p9 }
  0x13   : > { %6501 = shalt.err (!%p6498_p11)
}
  0x14   : > { %s6502_s6 = scalar_lea.vmem %s176_s21, 18432  ;;  %p6510_p1 = scmp.lt.s32.totalorder %s176_s21, %s176_s21 }
  0x15   : > { %p6503_p12 = scmp.ne.s32.totalorder %s176_s21, %s6502_s6  ;;  %p6511_p4 = scmp.lt.s32.totalorder %s6502_s6, %s6502_s6 }
  0x17   : > { %p6505_p13 = pnand %p6503_p12, %p6491_p7  ;;  %p6512_p3 = por %p6511_p4, %p6510_p1 }
  0x19   : > { %p6506_p0 = pneg %p6505_p13 }
  0x1b   : > { %p6513_p2 = pnand %p6512_p3, %p6506_p0 }
  0x1d   : > { %6516 = shalt.err (!%p6513_p2)
}
  0x1e   : > { %s6530_s7 = smov 128   ;;  %s6531_s8 = smov 8  }
  0x1f   : > { %6239 = dma.hbm_to_vmem [thread:$0]  (!%p6584_p5), %s8248_s3, 18432, %s176_s21, [#allocation4], %s6530_s7, %s6530_s7, %s6531_s8  }
  0x20   : > { %p8274_p6 = scmp.ne.s32.totalorder %s8272_s22, 0 }
  0x22   : > { %202 = sbr.rel (%p8274_p6) target bundleno = 1158 (0x486), region = 40 }
  0x29   : > { %p8275_p8 = scmp.eq.s32.totalorder %s6571_s19, 0 }
  0x2b   : > { %6522 = dma.done.wait (%p8275_p8), [#allocation4], 18432   ;;  %p8276_p7 = pmov %p8275_p8 }
  0x2c   : > { %v6256_v0 = vld [vmem:[%s8246_s1 + $0x40] sm:$0xff]   ;;  %v6258_v2 = vld [vmem:[%s8246_s1 + $0x48] sm:$0xff]   ;;  %p230_p2 = scmp.lt.s32.totalorder %s6571_s19, 1  ;;  %v6260_v4 = vld [vmem:[%s8246_s1 + $0x50] sm:$0xff]  }
  0x2d   : > { %6524 = vsyncadd (%p8276_p7), [#allocation4], 4294948864  ;;  %v6257_v1 = vld [vmem:[%s8246_s1] sm:$0xff]   ;;  %5608 = vmatprep.subr.bf16.mxu0 %v6256_v0  ;;  %v6259_v3 = vld [vmem:[%s8246_s1 + $0x8] sm:$0xff]  }
  0x2e   : > { %5609 = vmatpush3.bf16.msra.mxu0 %v6257_v1  ;;  %s8526_s19 = smov (!%p230_p2, %s6571_s19), 1  ;;  %v6261_v5 = vld [vmem:[%s8246_s1 + $0x10] sm:$0xff]   ;;  %v6262_v6 = vld [vmem:[%s8246_s1 + $0x58] sm:$0xff]   ;;  %v6264_v8 = vld [vmem:[%s8246_s1 + $0x60] sm:$0xff]  }
  0x2f   : > { %5610 = vmatprep.subr.bf16.mxu0 %v6258_v2  ;;  %s5606_s27 = sshll.u32 %s8526_s19, 9  ;;  %v6263_v7 = vld [vmem:[%s8246_s1 + $0x18] sm:$0xff]   ;;  %v6265_v9 = vld [vmem:[%s8246_s1 + $0x20] sm:$0xff]   ;;  %v6266_v10 = vld [vmem:[%s8246_s1 + $0x68] sm:$0xff]  }
  0x30   : > { %s6647_s9 = scalar_lea.vmem %s8245_s0, %s5606_s27  ;;  %v6267_v14 = vld [vmem:[%s8246_s1 + $0x28] sm:$0xff]   ;;  %v6268_v15 = vld [vmem:[%s8246_s1 + $0x70] sm:$0xff]   ;;  %v6270_v17 = vld [vmem:[%s8246_s1 + $0x78] sm:$0xff]   ;;  %s7975_s11 = scalar_lea.vmem %s8250_s5, %s5606_s27 }
  0x31   : > { %v242_v11 = vld [vmem:[%s6647_s9 + $0x8] sm:$0xff]  ;;  %v244_v12 = vld [vmem:[%s6647_s9 + $0x18] sm:$0xff]  ;;  %v6269_v16 = vld [vmem:[%s8246_s1 + $0x30] sm:$0xff]  }
  0x32   : > { %5611 = vmatpush3.bf16.msra.mxu0 %v6259_v3  ;;  %v306_v13 = vpack.c.bf16 %v244_v12, %v242_v11  ;;  %v6271_v18 = vld [vmem:[%s8246_s1 + $0x38] sm:$0xff]   ;;  %v241_v19 = vld [vmem:[%s6647_s9] sm:$0xff]  ;;  %v243_v20 = vld [vmem:[%s6647_s9 + $0x10] sm:$0xff] }
  0x33   : > { %5612 = vmatprep.subr.bf16.mxu0 %v6260_v4  ;;  %v246_v21 = vld [vmem:[%s6647_s9 + $0x28] sm:$0xff]  ;;  %v248_v22 = vld [vmem:[%s6647_s9 + $0x38] sm:$0xff]  ;;  %v305_v23 = vpack.c.bf16 %v243_v20, %v241_v19  ;;  %v245_v25 = vld [vmem:[%s6647_s9 + $0x20] sm:$0xff] }
  0x34   : > { %504 = vmatprep.mubr.bf16.mxu0 %v306_v13  ;;  %v308_v24 = vpack.c.bf16 %v248_v22, %v246_v21  ;;  %v247_v26 = vld [vmem:[%s6647_s9 + $0x30] sm:$0xff]  ;;  %v250_v27 = vld [vmem:[%s6647_s9 + $0x48] sm:$0xff]  ;;  %v252_v28 = vld [vmem:[%s6647_s9 + $0x58] sm:$0xff] }
  0x35   : > { %v307_v29 = vpack.c.bf16 %v247_v26, %v245_v25  ;;  %v6272_v30 = vld [vmem:[#allocation3 + $0x80] ss:$8 sps:$4 sm:$0xff]   ;;  %v6274_v31 = vld [vmem:[#allocation3 + $0x84] ss:$8 sps:$4 sm:$0xff]   ;;  %v310_v32 = vpack.c.bf16 %v252_v28, %v250_v27  ;;  %v6277_v33 = vld [vmem:[#allocation3 + $0x94] ss:$8 sps:$4 sm:$0xff]  }
  0x36   : > { %5613 = vmatpush3.bf16.msra.mxu0 %v6261_v5  ;;  %v6278_v34 = vld [vmem:[#allocation3 + $0x204] ss:$8 sps:$4 sm:$0xff]   ;;  %v251_v36 = vld [vmem:[%s6647_s9 + $0x50] sm:$0xff]  ;;  %v256_v39 = vld [vmem:[%s6647_s9 + $0x78] sm:$0xff] }
  0x37   : > { %5614 = vmatprep.subr.bf16.mxu0 %v6262_v6  ;;  %v249_v35 = vld [vmem:[%s6647_s9 + $0x40] sm:$0xff]  ;;  %v6275_v37 = vld [vmem:[#allocation3 + $0x90] ss:$8 sps:$4 sm:$0xff]   ;;  %v254_v38 = vld [vmem:[%s6647_s9 + $0x68] sm:$0xff]  ;;  %3184 = vmatprep.subr.bf16.mxu1 %v6278_v34 }
  0x38   : > { %v6282_v40 = vld [vmem:[#allocation3 + $0xa4] ss:$8 sps:$4 sm:$0xff]   ;;  %v6283_v41 = vld [vmem:[#allocation3 + $0x200] ss:$8 sps:$4 sm:$0xff]   ;;  %v6284_v42 = vld [vmem:[#allocation3 + $0x214] ss:$8 sps:$4 sm:$0xff]   ;;  %v309_v46 = vpack.c.bf16 %v251_v36, %v249_v35  ;;  %v312_v48 = vpack.c.bf16 %v256_v39, %v254_v38 }
  0x39   : > { %v6280_v43 = vld [vmem:[#allocation3 + $0xa0] ss:$8 sps:$4 sm:$0xff]   ;;  %3185 = vmatpush1.bf16.msra.mxu1 %v6283_v41  ;;  %v6288_v44 = vld [vmem:[#allocation3 + $0xb4] ss:$8 sps:$4 sm:$0xff]   ;;  %v6289_v45 = vld [vmem:[#allocation3 + $0x210] ss:$8 sps:$4 sm:$0xff]  }
  0x3a   : > { %5615 = vmatpush3.bf16.msra.mxu0 %v6263_v7  ;;  %3186 = vmatprep.subr.bf16.mxu1 %v6284_v42  ;;  %v6290_v47 = vld [vmem:[#allocation3 + $0x224] ss:$8 sps:$4 sm:$0xff]   ;;  %v6286_v49 = vld [vmem:[#allocation3 + $0xb0] ss:$8 sps:$4 sm:$0xff]   ;;  %v6295_v50 = vld [vmem:[#allocation3 + $0x220] ss:$8 sps:$4 sm:$0xff]  }
  0x3b   : > { %5616 = vmatprep.subr.bf16.mxu0 %v6264_v8  ;;  %v253_v51 = vld [vmem:[%s6647_s9 + $0x60] sm:$0xff]  ;;  %v255_v52 = vld [vmem:[%s6647_s9 + $0x70] sm:$0xff]  ;;  %v258_v54 = vld [vmem:[%s6647_s9 + $0x88] sm:$0xff] }
  0x3c   : > { %v6296_v53 = vld [vmem:[#allocation3 + $0x234] ss:$8 sps:$4 sm:$0xff]   ;;  %v6294_v56 = vld [vmem:[#allocation3 + $0xc4] ss:$8 sps:$4 sm:$0xff]   ;;  %v6292_v57 = vld [vmem:[#allocation3 + $0xc0] ss:$8 sps:$4 sm:$0xff]   ;;  %v311_v61 = vpack.c.bf16 %v255_v52, %v253_v51 }
  0x3d   : > { %3187 = vmatpush1.bf16.msra.mxu1 %v6289_v45  ;;  %v260_v55 = vld [vmem:[%s6647_s9 + $0x98] sm:$0xff]  ;;  %v6302_v60 = vld [vmem:[#allocation3 + $0x244] ss:$8 sps:$4 sm:$0xff]   ;;  %v6307_v62 = vld [vmem:[#allocation3 + $0x240] ss:$8 sps:$4 sm:$0xff]  }
  0x3e   : > { %5617 = vmatpush3.bf16.msra.mxu0 %v6265_v9  ;;  %3188 = vmatprep.subr.bf16.mxu1 %v6290_v47  ;;  %v6300_v58 = vld [vmem:[#allocation3 + $0xd4] ss:$8 sps:$4 sm:$0xff]   ;;  %v6301_v59 = vld [vmem:[#allocation3 + $0x230] ss:$8 sps:$4 sm:$0xff]   ;;  %v314_v63 = vpack.c.bf16 %v260_v55, %v258_v54  ;;  %v6306_v1 = vld [vmem:[#allocation3 + $0xe4] ss:$8 sps:$4 sm:$0xff]  }
  0x3f   : > { %5618 = vmatprep.subr.bf16.mxu0 %v6266_v10  ;;  %v6298_v0 = vld [vmem:[#allocation3 + $0xd0] ss:$8 sps:$4 sm:$0xff]   ;;  %v257_v2 = vld [vmem:[%s6647_s9 + $0x80] sm:$0xff]  ;;  %v262_v4 = vld [vmem:[%s6647_s9 + $0xa8] sm:$0xff] }
  0x40   : > { %v259_v3 = vld [vmem:[%s6647_s9 + $0x90] sm:$0xff]  ;;  %v264_v5 = vld [vmem:[%s6647_s9 + $0xb8] sm:$0xff]  ;;  %v6304_v6 = vld [vmem:[#allocation3 + $0xe0] ss:$8 sps:$4 sm:$0xff]  }
  0x41   : > { %3189 = vmatpush1.bf16.msra.mxu1 %v6295_v50  ;;  %v313_v7 = vpack.c.bf16 %v259_v3, %v257_v2  ;;  %v316_v8 = vpack.c.bf16 %v264_v5, %v262_v4  ;;  %v261_v9 = vld [vmem:[%s6647_s9 + $0xa0] sm:$0xff]  ;;  %v263_v10 = vld [vmem:[%s6647_s9 + $0xb0] sm:$0xff]  ;;  %v266_v11 = vld [vmem:[%s6647_s9 + $0xc8] sm:$0xff] }
  0x42   : > { %5619 = vmatpush3.bf16.msra.mxu0 %v6267_v14  ;;  %3190 = vmatprep.subr.bf16.mxu1 %v6296_v53  ;;  %v268_v12 = vld [vmem:[%s6647_s9 + $0xd8] sm:$0xff]  ;;  %v315_v13 = vpack.c.bf16 %v263_v10, %v261_v9  ;;  %v269_v21 = vld [vmem:[%s6647_s9 + $0xe0] sm:$0xff]  ;;  %v271_v22 = vld [vmem:[%s6647_s9 + $0xf0] sm:$0xff] }
  0x43   : > { %5620 = vmatprep.subr.bf16.mxu0 %v6268_v15  ;;  %v318_v14 = vpack.c.bf16 %v268_v12, %v266_v11  ;;  %v265_v15 = vld [vmem:[%s6647_s9 + $0xc0] sm:$0xff]  ;;  %v319_v25 = vpack.c.bf16 %v271_v22, %v269_v21  ;;  %v275_v28 = vld [vmem:[%s6647_s9 + $0x110] sm:$0xff]  ;;  %v282_v35 = vld [vmem:[%s6647_s9 + $0x148] sm:$0xff] }
  0x44   : > { %v273_v27 = vld [vmem:[%s6647_s9 + $0x100] sm:$0xff]  ;;  %v279_v34 = vld [vmem:[%s6647_s9 + $0x130] sm:$0xff]  ;;  %v284_v36 = vld [vmem:[%s6647_s9 + $0x158] sm:$0xff] }
  0x45   : > { %3191 = vmatpush1.bf16.msra.mxu1 %v6301_v59  ;;  %v326_v38 = vpack.c.bf16 %v284_v36, %v282_v35  ;;  %v281_v39 = vld [vmem:[%s6647_s9 + $0x140] sm:$0xff]  ;;  %v286_v41 = vld [vmem:[%s6647_s9 + $0x168] sm:$0xff]  ;;  %v288_v42 = vld [vmem:[%s6647_s9 + $0x178] sm:$0xff] }
  0x46   : > { %5621 = vmatpush3.bf16.msra.mxu0 %v6269_v16  ;;  %3192 = vmatprep.subr.bf16.mxu1 %v6302_v60  ;;  %v267_v16 = vld [vmem:[%s6647_s9 + $0xd0] sm:$0xff]  ;;  %v285_v45 = vld [vmem:[%s6647_s9 + $0x160] sm:$0xff]  ;;  %v290_v47 = vld [vmem:[%s6647_s9 + $0x188] sm:$0xff] }
  0x47   : > { %5622 = vmatprep.subr.bf16.mxu0 %v6270_v17  ;;  %v270_v17 = vld [vmem:[%s6647_s9 + $0xe8] sm:$0xff]  ;;  %v317_v19 = vpack.c.bf16 %v267_v16, %v265_v15  ;;  %v6312_v50 = vld [vmem:[#allocation3 + $0xf4] ss:$8 sps:$4 sm:$0xff]   ;;  %v6310_v51 = vld [vmem:[#allocation3 + $0xf0] ss:$8 sps:$4 sm:$0xff]  }
  0x48   : > { %v6313_v52 = vld [vmem:[#allocation3 + $0x250] ss:$8 sps:$4 sm:$0xff]   ;;  %v6314_v55 = vld [vmem:[#allocation3 + $0x264] ss:$8 sps:$4 sm:$0xff]   ;;  %v6343_v21 = vld [vmem:[#allocation3 + $0x14] ss:$8 sps:$4 sm:$0xff]  }
  0x49   : > { %3193 = vmatpush1.bf16.msra.mxu1 %v6307_v62  ;;  %v291_v59 = vld [vmem:[%s6647_s9 + $0x190] sm:$0xff]  ;;  %v294_v60 = vld [vmem:[%s6647_s9 + $0x1a8] sm:$0xff]  ;;  %v293_v2 = vld [vmem:[%s6647_s9 + $0x1a0] sm:$0xff] }
  0x4a   : > { %5623 = vmatpush3.bf16.msra.mxu0 %v6271_v18  ;;  %v272_v18 = vld [vmem:[%s6647_s9 + $0xf8] sm:$0xff]  ;;  %v295_v3 = vld [vmem:[%s6647_s9 + $0x1b0] sm:$0xff]  ;;  %v298_v4 = vld [vmem:[%s6647_s9 + $0x1c8] sm:$0xff] }
  0x4b   : > { %1916 = vmatprep.subr.bf16.mxu0 %v6274_v31  ;;  %v320_v20 = vpack.c.bf16 %v272_v18, %v270_v17  ;;  %v321_v31 = vpack.c.bf16 %v275_v28, %v273_v27  ;;  %v6317_v62 = vld [vmem:[#allocation3 + $0x274] ss:$8 sps:$4 sm:$0xff]   ;;  %v297_v9 = vld [vmem:[%s6647_s9 + $0x1c0] sm:$0xff]  ;;  %v302_v11 = vld [vmem:[%s6647_s9 + $0x1e8] sm:$0xff]  ;;  %v8253_v18 = vmov 0.0|0.0  }
  0x4c   : > { %v300_v5 = vld [vmem:[%s6647_s9 + $0x1d8] sm:$0xff]  ;;  %v299_v10 = vld [vmem:[%s6647_s9 + $0x1d0] sm:$0xff]  ;;  %v301_v15 = vld [vmem:[%s6647_s9 + $0x1e0] sm:$0xff] }
  0x4d   : > { %505 = vmatmul.mubr.bf16.vlgmr.msra.gmra.mrb[0].mxu0 %v305_v23  ;;  %v274_v23 = vld [vmem:[%s6647_s9 + $0x108] sm:$0xff]  ;;  %v304_v12 = vld [vmem:[%s6647_s9 + $0x1f8] sm:$0xff]  ;;  %v303_v16 = vld [vmem:[%s6647_s9 + $0x1f0] sm:$0xff] }
  0x4e   : > { %512 = vmatprep.mubr.bf16.mxu0 %v308_v24  ;;  %1917 = vmatpush1.bf16.msra.mxu0 %v6272_v30  ;;  %v276_v24 = vld [vmem:[%s6647_s9 + $0x118] sm:$0xff]  ;;  %v335_v17 = vpack.c.bf16 %v303_v16, %v301_v15  ;;  %v6355_v27 = vld [vmem:[#allocation3 + $0x44] ss:$8 sps:$4 sm:$0xff]   ;;  %v6353_v28 = vld [vmem:[#allocation3 + $0x40] ss:$8 sps:$4 sm:$0xff]  }
  0x4f   : > { %1918 = vmatprep.subr.bf16.mxu0 %v6277_v33  ;;  %v322_v26 = vpack.c.bf16 %v276_v24, %v274_v23  ;;  %v280_v30 = vld [vmem:[%s6647_s9 + $0x138] sm:$0xff]  ;;  %v277_v33 = vld [vmem:[%s6647_s9 + $0x120] sm:$0xff] }
  0x50   : > { %v6341_v22 = vld [vmem:[#allocation3 + $0x10] ss:$8 sps:$4 sm:$0xff]   ;;  %v6349_v23 = vld [vmem:[#allocation3 + $0x24] ss:$8 sps:$4 sm:$0xff]   ;;  %v6347_v24 = vld [vmem:[#allocation3 + $0x20] ss:$8 sps:$4 sm:$0xff]  }
  0x51   : > { %v6367_v36 = vld [vmem:[#allocation3 + $0x74] ss:$8 sps:$4 sm:$0xff]  }
  0x52   : > { %1919 = vmatpush1.bf16.msra.mxu0 %v6275_v37  ;;  %v323_v37 = vpack.c.bf16 %v279_v34, %v277_v33  ;;  %v6364_v33 = vld [vmem:[#allocation3 + $0x64] ss:$8 sps:$4 sm:$0xff]   ;;  %v6362_v34 = vld [vmem:[#allocation3 + $0x60] ss:$8 sps:$4 sm:$0xff]  }
  0x53   : > { %1920 = vmatprep.subr.bf16.mxu0 %v6282_v40  ;;  %v283_v40 = vld [vmem:[%s6647_s9 + $0x150] sm:$0xff] }
  0x55   : > { %513 = vmatmul.mubr.bf16.gmra.mrb[4].mxu0 %v307_v29  ;;  %v278_v29 = vld [vmem:[%s6647_s9 + $0x128] sm:$0xff] }
  0x56   : > { %520 = vmatprep.mubr.bf16.mxu0 %v310_v32  ;;  %1921 = vmatpush1.bf16.msra.mxu0 %v6280_v43  ;;  %v324_v32 = vpack.c.bf16 %v280_v30, %v278_v29  ;;  %v325_v43 = vpack.c.bf16 %v283_v40, %v281_v39  ;;  %v781_v29 = vlaneseq  ;;  %v6358_v30 = vld [vmem:[#allocation3 + $0x54] ss:$8 sps:$4 sm:$0xff]   ;;  %v6365_v40 = vld [vmem:[#allocation3 + $0x70] ss:$8 sps:$4 sm:$0xff]  }
  0x57   : > { %1922 = vmatprep.subr.bf16.mxu0 %v6288_v44  ;;  %v328_v44 = vpack.c.bf16 %v288_v42, %v286_v41 }
  0x5a   : > { %1923 = vmatpush1.bf16.msra.mxu0 %v6286_v49  ;;  %v6308_v49 = vld [vmem:[#allocation3 + $0x254] ss:$8 sps:$4 sm:$0xff]  }
  0x5b   : > { %1924 = vmatprep.subr.bf16.mxu0 %v6294_v56  ;;  %3194 = vmatprep.subr.bf16.mxu1 %v6308_v49  ;;  %v6316_v56 = vld [vmem:[#allocation3 + $0x260] ss:$8 sps:$4 sm:$0xff]  }
  0x5c   : > { %3195 = vmatpush1.bf16.msra.mxu1 %v6313_v52 }
  0x5d   : > { %521 = vmatmul.mubr.bf16.gmra.mrb[8].mxu0 %v309_v46  ;;  %v287_v46 = vld [vmem:[%s6647_s9 + $0x170] sm:$0xff]  ;;  %3196 = vmatprep.subr.bf16.mxu1 %v6314_v55  ;;  %v8255_v55 = vmov 0.0  }
  0x5e   : > { %528 = vmatprep.mubr.bf16.mxu0 %v312_v48  ;;  %1925 = vmatpush1.bf16.msra.mxu0 %v6292_v57  ;;  %v292_v48 = vld [vmem:[%s6647_s9 + $0x198] sm:$0xff]  ;;  %v327_v53 = vpack.c.bf16 %v287_v46, %v285_v45  ;;  %v8257_v57 = vmov 0  }
  0x5f   : > { %1926 = vmatprep.subr.bf16.mxu0 %v6300_v58  ;;  %v330_v54 = vpack.c.bf16 %v292_v48, %v290_v47  ;;  %3216 = vmatprep.mubr.bf16.mxu1 %v8257_v57  ;;  %v289_v58 = vld [vmem:[%s6647_s9 + $0x180] sm:$0xff] }
  0x60   : > { %3197 = vmatpush1.bf16.msra.mxu1 %v6316_v56  ;;  %v6757_v56 = vrot.slane %v8255_v55, 7 }
  0x61   : > { %3198 = vmatprep.subr.bf16.mxu1 %v6317_v62 }
  0x62   : > { %1927 = vmatpush1.bf16.msra.mxu0 %v6298_v0  ;;  %v329_v0 = vpack.c.bf16 %v291_v59, %v289_v58 }
  0x63   : > { %1928 = vmatprep.subr.bf16.mxu0 %v6306_v1 }
  0x65   : > { %529 = vmatmul.mubr.bf16.gmra.mrb[12].mxu0 %v311_v61  ;;  %v296_v61 = vld [vmem:[%s6647_s9 + $0x1b8] sm:$0xff] }
  0x66   : > { %536 = vmatprep.mubr.bf16.mxu0 %v314_v63  ;;  %1929 = vmatpush1.bf16.msra.mxu0 %v6304_v6  ;;  %v6319_v63 = vld [vmem:[#allocation3 + $0x270] ss:$8 sps:$4 sm:$0xff]   ;;  %v332_v1 = vpack.c.bf16 %v296_v61, %v294_v60  ;;  %v6322_v6 = vld [vmem:[#allocation3 + $0x284] ss:$8 sps:$4 sm:$0xff]  }
  0x67   : > { %1930 = vmatprep.subr.bf16.mxu0 %v6312_v50  ;;  %3199 = vmatpush1.bf16.msra.mxu1 %v6319_v63 }
  0x68   : > { %3537 = vmatprep.subr.bf16.mxu1 %v6322_v6 }
  0x6a   : > { %1931 = vmatpush1.bf16.msra.mxu0 %v6310_v51 }
  0x6d   : > { %537 = vmatmul.mubr.bf16.gmra.mrb[16].mxu0 %v313_v7  ;;  %v331_v7 = vpack.c.bf16 %v295_v3, %v293_v2 }
  0x6e   : > { %544 = vmatprep.mubr.bf16.mxu0 %v316_v8  ;;  %v334_v8 = vpack.c.bf16 %v300_v5, %v298_v4  ;;  %v6320_v4 = vld [vmem:[#allocation3 + $0x280] ss:$8 sps:$4 sm:$0xff]  }
  0x75   : > { %545 = vmatmul.mubr.bf16.gmra.mrb[20].mxu0 %v315_v13  ;;  %v333_v13 = vpack.c.bf16 %v299_v10, %v297_v9 }
  0x76   : > { %552 = vmatprep.mubr.bf16.mxu0 %v318_v14  ;;  %v336_v14 = vpack.c.bf16 %v304_v12, %v302_v11 }
  0x7d   : > { %553 = vmatmul.mubr.bf16.gmra.mrb[24].mxu0 %v317_v19  ;;  %v6340_v19 = vld [vmem:[#allocation3 + $0x4] ss:$8 sps:$4 sm:$0xff]  }
  0x7e   : > { %560 = vmatprep.mubr.bf16.mxu0 %v320_v20  ;;  %v6338_v20 = vld [vmem:[#allocation3] ss:$8 sps:$4 sm:$0xff]   ;;  %2189 = vmatprep.subr.bf16.mxu0 %v6340_v19 }
  0x85   : > { %561 = vmatmul.mubr.bf16.gmra.mrb[28].mxu0 %v319_v25  ;;  %v6352_v25 = vld [vmem:[#allocation3 + $0x34] ss:$8 sps:$4 sm:$0xff]  }
  0x86   : > { %568 = vmatprep.mubr.bf16.mxu0 %v322_v26  ;;  %v6350_v26 = vld [vmem:[#allocation3 + $0x30] ss:$8 sps:$4 sm:$0xff]  }
  0x8d   : > { %569 = vmatmul.mubr.bf16.gmra.mrb[32].mxu0 %v321_v31  ;;  %v6356_v31 = vld [vmem:[#allocation3 + $0x50] ss:$8 sps:$4 sm:$0xff]  }
  0x8e   : > { %576 = vmatprep.mubr.bf16.mxu0 %v324_v32  ;;  %v6738_v32 = vshrl.u32 %v781_v29, 7 }
  0x90   : > { %v784_v35 = vadd.s32 16, %v6738_v32  ;;  %v785_v42 = vadd.s32 24, %v6738_v32  ;;  %vm1665_vm2 = vcmp.lt.s32.totalorder %v6738_v32, 7  ;;  %v788_v61 = vadd.s32 48, %v6738_v32 }
  0x91   : > { %vm1538_vm4 = vcmp.lt.s32.totalorder %v6738_v32, 1 }
  0x92   : > { %v836_v41 = vand.u32 15, %v784_v35  ;;  %v843_v50 = vand.u32 15, %v785_v42 }
  0x94   : > { %vm6749_vm0 = vcmp.ne.s32.totalorder %v836_v41, 0  ;;  %vm6767_vm5 = vcmp.ne.s32.totalorder %v843_v50, 15 }
  0x95   : > { %577 = vmatmul.mubr.bf16.gmra.mrb[36].mxu0 %v323_v37  ;;  %v5443_v29 = vsel %vm6767_vm5, 1.0, %v8255_v55 }
  0x96   : > { %584 = vmatprep.mubr.bf16.mxu0 %v326_v38  ;;  %v6744_v38 = vld [vmem:[%s8247_s2] ss:$0 sm:$0xff] }
  0x9d   : > { %585 = vmatmul.mubr.bf16.gmra.mrb[40].mxu0 %v325_v43  ;;  %v786_v43 = vadd.s32 32, %v6738_v32 }
  0x9e   : > { %592 = vmatprep.mubr.bf16.mxu0 %v328_v44 }
  0x9f   : > { %v850_v51 = vand.u32 15, %v786_v43 }
  0xa1   : > { %vm6771_vm6 = vcmp.ne.s32.totalorder %v850_v51, 0 }
  0xa5   : > { %593 = vmatmul.mubr.bf16.gmra.mrb[44].mxu0 %v327_v53 }
  0xa6   : > { %600 = vmatprep.mubr.bf16.mxu0 %v330_v54  ;;  %v787_v54 = vadd.s32 40, %v6738_v32 }
  0xad   : > { %601 = vmatmul.mubr.bf16.gmra.mrb[48].mxu0 %v329_v0  ;;  %v5425_v0 = vsel %vm6749_vm0, 1.0, %v8255_v55 }
  0xae   : > { %608 = vmatprep.mubr.bf16.mxu0 %v332_v1  ;;  %v6831_v1 = vadd.s32 80, %v6738_v32 }
  0xb5   : > { %609 = vmatmul.mubr.bf16.gmra.mrb[52].mxu0 %v331_v7  ;;  %v857_v7 = vand.u32 15, %v787_v54 }
  0xb6   : > { %616 = vmatprep.mubr.bf16.mxu0 %v334_v8 }
  0xb7   : > { %vm6801_vm9 = vcmp.ne.s32.totalorder %v857_v7, 15 }
  0xb8   : > { %v5444_v7 = vsel %vm6801_vm9, 1.0, %v8255_v55 }
  0xbd   : > { %617 = vmatmul.mubr.bf16.gmra.mrb[56].mxu0 %v333_v13  ;;  %v6325_v13 = vld [vmem:[#allocation3 + $0x294] ss:$8 sps:$4 sm:$0xff]  }
  0xbe   : > { %624 = vmatprep.mubr.bf16.mxu0 %v336_v14 }
  0xc5   : > { %625 = vmatmul.mubr.bf16.gmra.mrb[60].mxu0 %v335_v17  ;;  %v864_v17 = vand.u32 15, %v788_v61 }
  0xc6   : > { %1948 = vmatprep.mubr.bf16.mxu0 %v8257_v57 }
  0xc7   : > { %vm6805_vm10 = vcmp.ne.s32.totalorder %v864_v17, 0 }
  0xcd   : > { %1949 = vmatmul.mubr.bf16.vlgmr.msra.gmra.mrb[64].mxu0 %v8253_v18 }
  0xce   : > { %1958 = vmatprep.mubr.bf16.mxu0 %v8257_v57  ;;  %2190 = vmatpush1.bf16.msra.mxu0 %v6338_v20 }
  0xcf   : > { %2191 = vmatprep.subr.bf16.mxu0 %v6343_v21 }
  0xd2   : > { %2192 = vmatpush1.bf16.msra.mxu0 %v6341_v22  ;;  %v789_v22 = vadd.s32 56, %v6738_v32 }
  0xd3   : > { %2193 = vmatprep.subr.bf16.mxu0 %v6349_v23 }
  0xd4   : > { %v871_v41 = vand.u32 15, %v789_v22 }
  0xd6   : > { %2194 = vmatpush1.bf16.msra.mxu0 %v6347_v24  ;;  %vm6846_vm12 = vcmp.ne.s32.totalorder %v871_v41, 15 }
  0xd7   : > { %2195 = vmatprep.subr.bf16.mxu0 %v6352_v25  ;;  %v6323_v25 = vld [vmem:[#allocation3 + $0x290] ss:$8 sps:$4 sm:$0xff]  }
  0xda   : > { %2196 = vmatpush1.bf16.msra.mxu0 %v6350_v26  ;;  %v790_v26 = vadd.s32 64, %v6738_v32 }
  0xdb   : > { %2197 = vmatprep.subr.bf16.mxu0 %v6355_v27  ;;  %v6328_v27 = vld [vmem:[#allocation3 + $0x2a4] ss:$8 sps:$4 sm:$0xff]  }
  0xde   : > { %2198 = vmatpush1.bf16.msra.mxu0 %v6353_v28 }
  0xdf   : > { %2199 = vmatprep.subr.bf16.mxu0 %v6358_v30  ;;  %v5426_v30 = vsel %vm6771_vm6, 1.0, %v8255_v55 }
  0xe2   : > { %2200 = vmatpush1.bf16.msra.mxu0 %v6356_v31 }
  0xe3   : > { %2201 = vmatprep.subr.bf16.mxu0 %v6364_v33 }
  0xe6   : > { %2202 = vmatpush1.bf16.msra.mxu0 %v6362_v34 }
  0xe7   : > { %2203 = vmatprep.subr.bf16.mxu0 %v6367_v36 }
  0xea   : > { %2204 = vmatpush1.bf16.msra.mxu0 %v6365_v40 }
 0x120   : > { %v5624_v37 = vpop.f32.mrb[0].mxu0 }
 0x121   : > { %v5625_v39 = vpop.f32.mrb[1].mxu0 }
 0x122   : > { %v5626_v44 = vadd.f32 %v5625_v39, %v5624_v37  ;;  %v5627_v45 = vpop.f32.mrb[2].mxu0 }
 0x123   : > { %v5628_v46 = vpop.f32.mrb[3].mxu0 }
 0x124   : > { %v507_v47 = vadd.f32 %v5626_v44, %v6744_v38  ;;  %v5629_v48 = vadd.f32 %v5628_v46, %v5627_v45  ;;  %v878_v45 = vand.u32 15, %v790_v26  ;;  %v6812_v46 = vadd.s32 72, %v6738_v32 }
 0x126   : > { %vm633_vm1 = vcmp.gt.f32.partialorder %v507_v47, 0.0  ;;  %v665_v52 = vmul.f32 0.01, %v507_v47  ;;  %v510_v53 = vadd.f32 %v5629_v48, %v6744_v38  ;;  %vm6850_vm14 = vcmp.ne.s32.totalorder %v878_v45, 0 }
 0x128   : > { %vm634_vm3 = vcmp.gt.f32.partialorder %v510_v53, 0.0  ;;  %v666_v58 = vmul.f32 0.01, %v510_v53  ;;  %v5630_v59 = vpop.f32.mrb[4].mxu0  ;;  %v6759_v60 = vsel %vm633_vm1, %v507_v47, %v665_v52  ;;  %v6326_v52 = vld [vmem:[#allocation3 + $0x2a0] ss:$8 sps:$4 sm:$0xff]  }
 0x129   : > { %v5631_v62 = vpop.f32.mrb[5].mxu0  ;;  %v1504_v63 = vrot.slane %v6759_v60, 7  ;;  %v8254_v11 = vrot.slane %v6759_v60, 1 }
 0x12a   : > { %v5632_v2 = vadd.f32 %v5631_v62, %v5630_v59  ;;  %v5633_v3 = vpop.f32.mrb[6].mxu0  ;;  %v698_v5 = vsel %vm634_vm3, %v510_v53, %v666_v58  ;;  %v6331_v58 = vld [vmem:[#allocation3 + $0x2b4] ss:$8 sps:$4 sm:$0xff]  }
 0x12b   : > { %v5634_v8 = vpop.f32.mrb[7].mxu0  ;;  %v765_v9 = vpack.c.bf16 %v698_v5, %v6759_v60  ;;  %v1505_v10 = vrot.slane %v698_v5, 7  ;;  %v1632_v12 = vrot.slane %v698_v5, 1  ;;  %v1572_v16 = vsel %vm1538_vm4, %v6757_v56, %v1504_v63  ;;  %v6329_v5 = vld [vmem:[#allocation3 + $0x2b0] ss:$8 sps:$4 sm:$0xff]  }
 0x12c   : > { %v515_v14 = vadd.f32 %v5632_v2, %v6744_v38  ;;  %v5635_v15 = vadd.f32 %v5634_v8, %v5633_v3  ;;  %v1577_v20 = vmul.f32 %v5425_v0, %v1572_v16  ;;  %v5427_v8 = vsel %vm6805_vm10, 1.0, %v8255_v55 }
 0x12d   : > { %1959 = vmatmul.mubr.bf16.gmra.mrb[68].mxu0 %v765_v9  ;;  %3217 = vmatmul.mubr.bf16.vlgmr.msra.gmra.mrb[0].mxu1 %v765_v9  ;;  %v1571_v19 = vsel %vm1538_vm4, %v1504_v63, %v1505_v10  ;;  %v1698_v21 = vsel %vm1665_vm2, %v8254_v11, %v1632_v12 }
 0x12e   : > { %vm635_vm7 = vcmp.gt.f32.partialorder %v515_v14, 0.0  ;;  %v667_v23 = vmul.f32 0.01, %v515_v14  ;;  %v518_v24 = vadd.f32 %v5635_v15, %v6744_v38  ;;  %3538 = vmatpush1.bf16.msra.mxu1 %v6320_v4  ;;  %1968 = vmatprep.mubr.bf16.mxu0 %v8257_v57  ;;  %v6792_v28 = vpack.c.bf16 %v1571_v19, %v1577_v20  ;;  %v6361_v19 = vld [vmem:[#allocation3 + $0x2f4] ss:$8 sps:$4 sm:$0xff]  }
 0x12f   : > { %3226 = vmatprep.mubr.bf16.mxu1 %v8257_v57  ;;  %3539 = vmatprep.subr.bf16.mxu1 %v6325_v13  ;;  %v885_v20 = vand.u32 15, %v6812_v46 }
 0x130   : > { %vm636_vm8 = vcmp.gt.f32.partialorder %v518_v24, 0.0  ;;  %v668_v31 = vmul.f32 0.01, %v518_v24  ;;  %v5636_v33 = vpop.f32.mrb[8].mxu0  ;;  %v699_v34 = vsel %vm635_vm7, %v515_v14, %v667_v23  ;;  %v6334_v14 = vld [vmem:[#allocation3 + $0x2c4] ss:$8 sps:$4 sm:$0xff]  }
 0x131   : > { %v5637_v36 = vpop.f32.mrb[9].mxu0  ;;  %v1506_v37 = vrot.slane %v699_v34, 7  ;;  %v1633_v39 = vrot.slane %v699_v34, 1  ;;  %vm6893_vm0 = vcmp.ne.s32.totalorder %v885_v20, 15 }
 0x132   : > { %v5638_v42 = vadd.f32 %v5637_v36, %v5636_v33  ;;  %v5639_v43 = vpop.f32.mrb[10].mxu0  ;;  %v6809_v44 = vsel %vm636_vm8, %v518_v24, %v668_v31  ;;  %3540 = vmatpush1.bf16.msra.mxu1 %v6323_v25  ;;  %v892_v24 = vand.u32 15, %v6831_v1  ;;  %v6859_v25 = vadd.s32 88, %v6738_v32  ;;  %v6332_v31 = vld [vmem:[#allocation3 + $0x2c0] ss:$8 sps:$4 sm:$0xff]  }
 0x133   : > { %v5640_v47 = vpop.f32.mrb[11].mxu0  ;;  %v6815_v48 = vpack.c.bf16 %v6809_v44, %v699_v34  ;;  %v1507_v49 = vrot.slane %v6809_v44, 7  ;;  %v1634_v50 = vrot.slane %v6809_v44, 1  ;;  %v1697_v51 = vsel %vm1665_vm2, %v1632_v12, %v1633_v39  ;;  %3541 = vmatprep.subr.bf16.mxu1 %v6328_v27  ;;  %v6337_v36 = vld [vmem:[#allocation3 + $0x2d4] ss:$8 sps:$4 sm:$0xff]  }
 0x134   : > { %v523_v53 = vadd.f32 %v5638_v42, %v6744_v38  ;;  %v5641_v54 = vadd.f32 %v5640_v47, %v5639_v43  ;;  %v1705_v59 = vmul.f32 %v5443_v29, %v1697_v51  ;;  %v1570_v61 = vsel %vm1538_vm4, %v1505_v10, %v1506_v37  ;;  %v6335_v47 = vld [vmem:[#allocation3 + $0x2d0] ss:$8 sps:$4 sm:$0xff]  }
 0x135   : > { %8287 = vst [vmem:[#allocation6_spill] sm:$0xff] %v6815_v48  ;;  %1969 = vmatmul.mubr.bf16.gmra.mrb[72].mxu0 %v6815_v48  ;;  %3227 = vmatmul.mubr.bf16.gmra.mrb[4].mxu1 %v6815_v48  ;;  %v1569_v62 = vsel %vm1538_vm4, %v1506_v37, %v1507_v49  ;;  %v1579_v63 = vmul.f32 %v5426_v30, %v1570_v61  ;;  %v6878_v43 = vadd.s32 96, %v6738_v32  ;;  %v5428_v51 = vsel %vm6850_vm14, 1.0, %v8255_v55 }
 0x136   : > { %v1696_v0 = vsel %vm1665_vm2, %v1633_v39, %v1634_v50  ;;  %vm637_vm11 = vcmp.gt.f32.partialorder %v523_v53, 0.0  ;;  %v669_v2 = vmul.f32 0.01, %v523_v53  ;;  %v526_v3 = vadd.f32 %v5641_v54, %v6744_v38  ;;  %1978 = vmatprep.mubr.bf16.mxu0 %v8257_v57  ;;  %3236 = vmatprep.mubr.bf16.mxu1 %v8257_v57 }
 0x137   : > { %v6836_v4 = vpack.c.bf16 %v1705_v59, %v1698_v21  ;;  %3542 = vmatpush1.bf16.msra.mxu1 %v6326_v52  ;;  %v6838_v6 = vpack.c.bf16 %v1569_v62, %v1579_v63  ;;  %v6346_v59 = vld [vmem:[#allocation3 + $0x2e4] ss:$8 sps:$4 sm:$0xff]   ;;  %vm6897_vm3 = vcmp.ne.s32.totalorder %v892_v24, 0  ;;  %v899_v1 = vand.u32 15, %v6859_v25 }
 0x138   : > { %vm638_vm13 = vcmp.gt.f32.partialorder %v526_v3, 0.0  ;;  %v670_v10 = vmul.f32 0.01, %v526_v3  ;;  %v5642_v12 = vpop.f32.mrb[12].mxu0  ;;  %v701_v13 = vsel %vm637_vm11, %v523_v53, %v669_v2  ;;  %3543 = vmatprep.subr.bf16.mxu1 %v6331_v58  ;;  %v6920_v25 = vadd.s32 112, %v6738_v32 }
 0x139   : > { %v5643_v15 = vpop.f32.mrb[13].mxu0  ;;  %v1508_v16 = vrot.slane %v701_v13, 7  ;;  %v1635_v17 = vrot.slane %v701_v13, 1  ;;  %vm6935_vm6 = vcmp.ne.s32.totalorder %v899_v1, 15 }
 0x13a   : > { %v5644_v21 = vadd.f32 %v5643_v15, %v5642_v12  ;;  %v5645_v22 = vpop.f32.mrb[14].mxu0  ;;  %v6855_v23 = vsel %vm638_vm13, %v526_v3, %v670_v10 }
 0x13b   : > { %v5646_v26 = vpop.f32.mrb[15].mxu0  ;;  %v6862_v27 = vpack.c.bf16 %v6855_v23, %v701_v13  ;;  %v1509_v29 = vrot.slane %v6855_v23, 7  ;;  %v1636_v30 = vrot.slane %v6855_v23, 1  ;;  %3544 = vmatpush1.bf16.msra.mxu1 %v6329_v5  ;;  %v1695_v33 = vsel %vm1665_vm2, %v1634_v50, %v1635_v17 }
 0x13c   : > { %v531_v34 = vadd.f32 %v5644_v21, %v6744_v38  ;;  %v5647_v35 = vadd.f32 %v5646_v26, %v5645_v22  ;;  %3545 = vmatprep.subr.bf16.mxu1 %v6334_v14  ;;  %v1707_v37 = vmul.f32 %v5444_v7, %v1695_v33  ;;  %v1568_v39 = vsel %vm1538_vm4, %v1507_v49, %v1508_v16  ;;  %v6344_v14 = vld [vmem:[#allocation3 + $0x2e0] ss:$8 sps:$4 sm:$0xff]  }
 0x13d   : > { %8292 = vst [vmem:[#allocation7_spill] sm:$0xff] %v6862_v27  ;;  %1979 = vmatmul.mubr.bf16.gmra.mrb[76].mxu0 %v6862_v27  ;;  %3237 = vmatmul.mubr.bf16.gmra.mrb[8].mxu1 %v6862_v27  ;;  %v1567_v40 = vsel %vm1538_vm4, %v1508_v16, %v1509_v29  ;;  %v1581_v41 = vmul.f32 %v5427_v8, %v1568_v39  ;;  %v5445_v50 = vsel %vm6846_vm12, 1.0, %v8255_v55  ;;  %v906_v7 = vand.u32 15, %v6878_v43 }
 0x13e   : > { %v1694_v42 = vsel %vm1665_vm2, %v1635_v17, %v1636_v30  ;;  %vm639_vm15 = vcmp.gt.f32.partialorder %v531_v34, 0.0  ;;  %v671_v44 = vmul.f32 0.01, %v531_v34  ;;  %v534_v45 = vadd.f32 %v5647_v35, %v6744_v38  ;;  %1988 = vmatprep.mubr.bf16.mxu0 %v8257_v57  ;;  %3246 = vmatprep.mubr.bf16.mxu1 %v8257_v57 }
 0x13f   : > { %v6883_v46 = vpack.c.bf16 %v1707_v37, %v1696_v0  ;;  %3546 = vmatpush1.bf16.msra.mxu1 %v6332_v31  ;;  %v6885_v49 = vpack.c.bf16 %v1567_v40, %v1581_v41  ;;  %v6904_v8 = vadd.s32 104, %v6738_v32  ;;  %v6359_v31 = vld [vmem:[#allocation3 + $0x2f0] ss:$8 sps:$4 sm:$0xff]   ;;  %v5429_v35 = vsel %vm6897_vm3, 1.0, %v8255_v55  ;;  %v6370_v41 = vld [vmem:[#allocation3 + $0x304] ss:$8 sps:$4 sm:$0xff]  }
 0x140   : > { %vm640_vm1 = vcmp.gt.f32.partialorder %v534_v45, 0.0  ;;  %v672_v53 = vmul.f32 0.01, %v534_v45  ;;  %v5648_v54 = vpop.f32.mrb[16].mxu0  ;;  %v703_v58 = vsel %vm639_vm15, %v531_v34, %v671_v44  ;;  %3547 = vmatprep.subr.bf16.mxu1 %v6337_v36  ;;  %v5446_v34 = vsel %vm6893_vm0, 1.0, %v8255_v55 }
 0x141   : > { %v5649_v61 = vpop.f32.mrb[17].mxu0  ;;  %v1510_v62 = vrot.slane %v703_v58, 7  ;;  %v1637_v63 = vrot.slane %v703_v58, 1  ;;  %vm6939_vm8 = vcmp.ne.s32.totalorder %v906_v7, 0 }
 0x142   : > { %v5650_v2 = vadd.f32 %v5649_v61, %v5648_v54  ;;  %v5651_v3 = vpop.f32.mrb[18].mxu0  ;;  %v704_v5 = vsel %vm640_vm1, %v534_v45, %v672_v53  ;;  %v920_v53 = vand.u32 15, %v6920_v25  ;;  %v6946_v54 = vadd.s32 120, %v6738_v32 }
 0x143   : > { %v5652_v9 = vpop.f32.mrb[19].mxu0  ;;  %v6906_v10 = vpack.c.bf16 %v704_v5, %v703_v58  ;;  %v1511_v12 = vrot.slane %v704_v5, 7  ;;  %v1638_v13 = vrot.slane %v704_v5, 1  ;;  %3548 = vmatpush1.bf16.msra.mxu1 %v6335_v47  ;;  %v1693_v15 = vsel %vm1665_vm2, %v1636_v30, %v1637_v63 }
 0x144   : > { %v539_v16 = vadd.f32 %v5650_v2, %v6744_v38  ;;  %v5653_v17 = vadd.f32 %v5652_v9, %v5651_v3  ;;  %3549 = vmatprep.subr.bf16.mxu1 %v6346_v59  ;;  %v1709_v20 = vmul.f32 %v5445_v50, %v1693_v15  ;;  %v1566_v21 = vsel %vm1538_vm4, %v1509_v29, %v1510_v62 }
 0x145   : > { %8297 = vst [vmem:[#allocation8_spill] sm:$0xff] %v6906_v10  ;;  %1989 = vmatmul.mubr.bf16.gmra.mrb[80].mxu0 %v6906_v10  ;;  %3247 = vmatmul.mubr.bf16.gmra.mrb[12].mxu1 %v6906_v10  ;;  %v1565_v22 = vsel %vm1538_vm4, %v1510_v62, %v1511_v12  ;;  %v1583_v23 = vmul.f32 %v5428_v51, %v1566_v21  ;;  %v913_v47 = vand.u32 15, %v6904_v8  ;;  %v798_v9 = vadd.s32 128, %v6738_v32 }
 0x146   : > { %v1692_v24 = vsel %vm1665_vm2, %v1637_v63, %v1638_v13  ;;  %vm641_vm5 = vcmp.gt.f32.partialorder %v539_v16, 0.0  ;;  %v673_v26 = vmul.f32 0.01, %v539_v16  ;;  %v542_v30 = vadd.f32 %v5653_v17, %v6744_v38  ;;  %1998 = vmatprep.mubr.bf16.mxu0 %v8257_v57  ;;  %3256 = vmatprep.mubr.bf16.mxu1 %v8257_v57 }
 0x147   : > { %v6925_v29 = vpack.c.bf16 %v1709_v20, %v1694_v42  ;;  %3550 = vmatpush1.bf16.msra.mxu1 %v6344_v14  ;;  %v6927_v33 = vpack.c.bf16 %v1565_v22, %v1583_v23  ;;  %v5430_v17 = vsel %vm6939_vm8, 1.0, %v8255_v55  ;;  %vm6975_vm11 = vcmp.ne.s32.totalorder %v913_v47, 15 }
 0x148   : > { %vm642_vm7 = vcmp.gt.f32.partialorder %v542_v30, 0.0  ;;  %v674_v37 = vmul.f32 0.01, %v542_v30  ;;  %v5654_v39 = vpop.f32.mrb[20].mxu0  ;;  %v705_v40 = vsel %vm641_vm5, %v539_v16, %v673_v26  ;;  %3551 = vmatprep.subr.bf16.mxu1 %v6361_v19  ;;  %v5447_v16 = vsel %vm6935_vm6, 1.0, %v8255_v55 }
 0x149   : > { %v5655_v42 = vpop.f32.mrb[21].mxu0  ;;  %v1512_v43 = vrot.slane %v705_v40, 7  ;;  %v1639_v44 = vrot.slane %v705_v40, 1  ;;  %vm6979_vm12 = vcmp.ne.s32.totalorder %v920_v53, 0  ;;  %v934_v36 = vand.u32 15, %v798_v9 }
 0x14a   : > { %v5656_v50 = vadd.f32 %v5655_v42, %v5654_v39  ;;  %v5657_v51 = vpop.f32.mrb[22].mxu0  ;;  %v706_v52 = vsel %vm642_vm7, %v542_v30, %v674_v37  ;;  %v927_v30 = vand.u32 15, %v6946_v54  ;;  %v6985_v37 = vadd.s32 136, %v6738_v32 }
 0x14b   : > { %v5658_v58 = vpop.f32.mrb[23].mxu0  ;;  %v6948_v59 = vpack.c.bf16 %v706_v52, %v705_v40  ;;  %v1513_v61 = vrot.slane %v706_v52, 7  ;;  %v1640_v62 = vrot.slane %v706_v52, 1  ;;  %3552 = vmatpush1.bf16.msra.mxu1 %v6359_v31  ;;  %v1691_v63 = vsel %vm1665_vm2, %v1638_v13, %v1639_v44 }
 0x14c   : > { %v547_v0 = vadd.f32 %v5656_v50, %v6744_v38  ;;  %v5659_v1 = vadd.f32 %v5658_v58, %v5657_v51  ;;  %3890 = vmatprep.subr.bf16.mxu1 %v6370_v41  ;;  %v1711_v2 = vmul.f32 %v5446_v34, %v1691_v63  ;;  %v1564_v3 = vsel %vm1538_vm4, %v1511_v12, %v1512_v43 }
 0x14d   : > { %8302 = vst [vmem:[#allocation9_spill] sm:$0xff] %v6948_v59  ;;  %1999 = vmatmul.mubr.bf16.gmra.mrb[84].mxu0 %v6948_v59  ;;  %3257 = vmatmul.mubr.bf16.gmra.mrb[16].mxu1 %v6948_v59  ;;  %v1563_v5 = vsel %vm1538_vm4, %v1512_v43, %v1513_v61  ;;  %v1585_v7 = vmul.f32 %v5429_v35, %v1564_v3  ;;  %v800_v54 = vadd.s32 144, %v6738_v32  ;;  %vm7014_vm15 = vcmp.ne.s32.totalorder %v927_v30, 15 }
 0x14e   : > { %v1690_v8 = vsel %vm1665_vm2, %v1639_v44, %v1640_v62  ;;  %vm643_vm9 = vcmp.gt.f32.partialorder %v547_v0, 0.0  ;;  %v675_v13 = vmul.f32 0.01, %v547_v0  ;;  %v550_v14 = vadd.f32 %v5659_v1, %v6744_v38  ;;  %2008 = vmatprep.mubr.bf16.mxu0 %v8257_v57  ;;  %3266 = vmatprep.mubr.bf16.mxu1 %v8257_v57 }
 0x14f   : > { %v6965_v12 = vpack.c.bf16 %v1711_v2, %v1692_v24  ;;  %v6967_v15 = vpack.c.bf16 %v1563_v5, %v1585_v7  ;;  %v5431_v1 = vsel %vm6979_vm12, 1.0, %v8255_v55  ;;  %vm7018_vm0 = vcmp.ne.s32.totalorder %v934_v36, 0 }
 0x150   : > { %vm644_vm10 = vcmp.gt.f32.partialorder %v550_v14, 0.0  ;;  %v676_v19 = vmul.f32 0.01, %v550_v14  ;;  %v5660_v20 = vpop.f32.mrb[24].mxu0  ;;  %v707_v21 = vsel %vm643_vm9, %v547_v0, %v675_v13  ;;  %v5448_v0 = vsel %vm6975_vm11, 1.0, %v8255_v55 }
 0x151   : > { %v5661_v23 = vpop.f32.mrb[25].mxu0  ;;  %v1514_v24 = vrot.slane %v707_v21, 7  ;;  %v1641_v25 = vrot.slane %v707_v21, 1  ;;  %v7024_v22 = vadd.s32 152, %v6738_v32 }
 0x152   : > { %v5662_v31 = vadd.f32 %v5661_v23, %v5660_v20  ;;  %v5663_v34 = vpop.f32.mrb[26].mxu0  ;;  %v708_v35 = vsel %vm644_vm10, %v550_v14, %v676_v19 }
 0x153   : > { %v5664_v39 = vpop.f32.mrb[27].mxu0  ;;  %v6987_v40 = vpack.c.bf16 %v708_v35, %v707_v21  ;;  %v1515_v41 = vrot.slane %v708_v35, 7  ;;  %v1642_v42 = vrot.slane %v708_v35, 1  ;;  %v1689_v43 = vsel %vm1665_vm2, %v1640_v62, %v1641_v25 }
 0x154   : > { %v555_v44 = vadd.f32 %v5662_v31, %v6744_v38  ;;  %v5665_v45 = vadd.f32 %v5664_v39, %v5663_v34  ;;  %v1713_v47 = vmul.f32 %v5447_v16, %v1689_v43  ;;  %v1562_v50 = vsel %vm1538_vm4, %v1513_v61, %v1514_v24 }
 0x155   : > { %8307 = vst [vmem:[#allocation10_spill] sm:$0xff] %v6987_v40  ;;  %2009 = vmatmul.mubr.bf16.gmra.mrb[88].mxu0 %v6987_v40  ;;  %3267 = vmatmul.mubr.bf16.gmra.mrb[20].mxu1 %v6987_v40  ;;  %v1561_v51 = vsel %vm1538_vm4, %v1514_v24, %v1515_v41  ;;  %v1587_v52 = vmul.f32 %v5430_v17, %v1562_v50  ;;  %v941_v16 = vand.u32 15, %v6985_v37  ;;  %v948_v21 = vand.u32 15, %v800_v54 }
 0x156   : > { %v1688_v53 = vsel %vm1665_vm2, %v1641_v25, %v1642_v42  ;;  %vm645_vm13 = vcmp.gt.f32.partialorder %v555_v44, 0.0  ;;  %v677_v58 = vmul.f32 0.01, %v555_v44  ;;  %v558_v62 = vadd.f32 %v5665_v45, %v6744_v38  ;;  %2018 = vmatprep.mubr.bf16.mxu0 %v8257_v57  ;;  %3276 = vmatprep.mubr.bf16.mxu1 %v8257_v57 }
 0x157   : > { %v7004_v61 = vpack.c.bf16 %v1713_v47, %v1690_v8  ;;  %v7006_v63 = vpack.c.bf16 %v1561_v51, %v1587_v52  ;;  %v5449_v50 = vsel %vm7014_vm15, 1.0, %v8255_v55  ;;  %v5432_v51 = vsel %vm7018_vm0, 1.0, %v8255_v55 }
 0x158   : > { %vm646_vm14 = vcmp.gt.f32.partialorder %v558_v62, 0.0  ;;  %v678_v2 = vmul.f32 0.01, %v558_v62  ;;  %v5666_v3 = vpop.f32.mrb[28].mxu0  ;;  %v709_v5 = vsel %vm645_vm13, %v555_v44, %v677_v58  ;;  %vm7053_vm5 = vcmp.ne.s32.totalorder %v941_v16, 15 }
 0x159   : > { %v5667_v8 = vpop.f32.mrb[29].mxu0  ;;  %v1516_v9 = vrot.slane %v709_v5, 7  ;;  %v1643_v13 = vrot.slane %v709_v5, 1  ;;  %vm7057_vm6 = vcmp.ne.s32.totalorder %v948_v21, 0 }
 0x15a   : > { %v5668_v17 = vadd.f32 %v5667_v8, %v5666_v3  ;;  %v5669_v19 = vpop.f32.mrb[30].mxu0  ;;  %v710_v20 = vsel %vm646_vm14, %v558_v62, %v678_v2  ;;  %v955_v3 = vand.u32 15, %v7024_v22 }
 0x15b   : > { %v5670_v23 = vpop.f32.mrb[31].mxu0  ;;  %v7026_v24 = vpack.c.bf16 %v710_v20, %v709_v5  ;;  %v1517_v25 = vrot.slane %v710_v20, 7  ;;  %v1644_v26 = vrot.slane %v710_v20, 1  ;;  %v1687_v30 = vsel %vm1665_vm2, %v1642_v42, %v1643_v13 }
 0x15c   : > { %v563_v31 = vadd.f32 %v5668_v17, %v6744_v38  ;;  %v5671_v34 = vadd.f32 %v5670_v23, %v5669_v19  ;;  %v1715_v35 = vmul.f32 %v5448_v0, %v1687_v30  ;;  %v1560_v36 = vsel %vm1538_vm4, %v1515_v41, %v1516_v9 }
 0x15d   : > { %8312 = vst [vmem:[#allocation11_spill] sm:$0xff] %v7026_v24  ;;  %2019 = vmatmul.mubr.bf16.gmra.mrb[92].mxu0 %v7026_v24  ;;  %3277 = vmatmul.mubr.bf16.gmra.mrb[24].mxu1 %v7026_v24  ;;  %v1559_v37 = vsel %vm1538_vm4, %v1516_v9, %v1517_v25  ;;  %v1589_v39 = vmul.f32 %v5431_v1, %v1560_v36  ;;  %v802_v42 = vadd.s32 160, %v6738_v32  ;;  %vm7092_vm9 = vcmp.ne.s32.totalorder %v955_v3, 15 }
 0x15e   : > { %v1686_v43 = vsel %vm1665_vm2, %v1643_v13, %v1644_v26  ;;  %vm647_vm1 = vcmp.gt.f32.partialorder %v563_v31, 0.0  ;;  %v679_v44 = vmul.f32 0.01, %v563_v31  ;;  %v566_v45 = vadd.f32 %v5671_v34, %v6744_v38  ;;  %2028 = vmatprep.mubr.bf16.mxu0 %v8257_v57  ;;  %3286 = vmatprep.mubr.bf16.mxu1 %v8257_v57 }
 0x15f   : > { %v7043_v41 = vpack.c.bf16 %v1715_v35, %v1688_v53  ;;  %v7045_v47 = vpack.c.bf16 %v1559_v37, %v1589_v39  ;;  %v962_v9 = vand.u32 15, %v802_v42  ;;  %v7063_v13 = vadd.s32 168, %v6738_v32 }
 0x160   : > { %vm648_vm3 = vcmp.gt.f32.partialorder %v566_v45, 0.0  ;;  %v680_v52 = vmul.f32 0.01, %v566_v45  ;;  %v5672_v54 = vpop.f32.mrb[32].mxu0  ;;  %v711_v58 = vsel %vm647_vm1, %v563_v31, %v679_v44  ;;  %v5450_v42 = vsel %vm7053_vm5, 1.0, %v8255_v55 }
 0x161   : > { %v5673_v53 = vpop.f32.mrb[33].mxu0  ;;  %v1518_v0 = vrot.slane %v711_v58, 7  ;;  %v1645_v1 = vrot.slane %v711_v58, 1  ;;  %v5433_v44 = vsel %vm7057_vm6, 1.0, %v8255_v55  ;;  %vm7096_vm10 = vcmp.ne.s32.totalorder %v962_v9, 0 }
 0x162   : > { %v5674_v5 = vadd.f32 %v5673_v53, %v5672_v54  ;;  %v5675_v7 = vpop.f32.mrb[34].mxu0  ;;  %v712_v8 = vsel %vm648_vm3, %v566_v45, %v680_v52  ;;  %v969_v62 = vand.u32 15, %v7063_v13 }
 0x163   : > { %v5676_v14 = vpop.f32.mrb[35].mxu0  ;;  %v7065_v16 = vpack.c.bf16 %v712_v8, %v711_v58  ;;  %v1519_v17 = vrot.slane %v712_v8, 7  ;;  %v1646_v19 = vrot.slane %v712_v8, 1  ;;  %v1685_v20 = vsel %vm1665_vm2, %v1644_v26, %v1645_v1 }
 0x164   : > { %v571_v21 = vadd.f32 %v5674_v5, %v6744_v38  ;;  %v5677_v23 = vadd.f32 %v5676_v14, %v5675_v7  ;;  %v1717_v30 = vmul.f32 %v5449_v50, %v1685_v20  ;;  %v1558_v22 = vsel %vm1538_vm4, %v1517_v25, %v1518_v0 }
 0x165   : > { %8317 = vst [vmem:[#allocation12_spill] sm:$0xff] %v7065_v16  ;;  %2029 = vmatmul.mubr.bf16.gmra.mrb[96].mxu0 %v7065_v16  ;;  %3287 = vmatmul.mubr.bf16.gmra.mrb[28].mxu1 %v7065_v16  ;;  %v1557_v31 = vsel %vm1538_vm4, %v1518_v0, %v1519_v17  ;;  %v1591_v34 = vmul.f32 %v5432_v51, %v1558_v22  ;;  %v804_v26 = vadd.s32 176, %v6738_v32  ;;  %v7102_v7 = vadd.s32 184, %v6738_v32 }
 0x166   : > { %v1684_v35 = vsel %vm1665_vm2, %v1645_v1, %v1646_v19  ;;  %vm649_vm7 = vcmp.gt.f32.partialorder %v571_v21, 0.0  ;;  %v681_v36 = vmul.f32 0.01, %v571_v21  ;;  %v574_v37 = vadd.f32 %v5677_v23, %v6744_v38  ;;  %2038 = vmatprep.mubr.bf16.mxu0 %v8257_v57  ;;  %3296 = vmatprep.mubr.bf16.mxu1 %v8257_v57 }
 0x167   : > { %v7082_v25 = vpack.c.bf16 %v1717_v30, %v1686_v43  ;;  %v7084_v39 = vpack.c.bf16 %v1557_v31, %v1591_v34  ;;  %v976_v5 = vand.u32 15, %v804_v26  ;;  %vm7131_vm13 = vcmp.ne.s32.totalorder %v969_v62, 15 }
 0x168   : > { %vm650_vm8 = vcmp.gt.f32.partialorder %v574_v37, 0.0  ;;  %v682_v45 = vmul.f32 0.01, %v574_v37  ;;  %v5678_v50 = vpop.f32.mrb[36].mxu0  ;;  %v713_v51 = vsel %vm649_vm7, %v571_v21, %v681_v36  ;;  %v983_v52 = vand.u32 15, %v7102_v7 }
 0x169   : > { %v5679_v43 = vpop.f32.mrb[37].mxu0  ;;  %v1520_v54 = vrot.slane %v713_v51, 7  ;;  %v1647_v58 = vrot.slane %v713_v51, 1  ;;  %vm7135_vm14 = vcmp.ne.s32.totalorder %v976_v5, 0 }
 0x16a   : > { %v5680_v0 = vadd.f32 %v5679_v43, %v5678_v50  ;;  %v5681_v1 = vpop.f32.mrb[38].mxu0  ;;  %v714_v2 = vsel %vm650_vm8, %v574_v37, %v682_v45  ;;  %vm7170_vm1 = vcmp.ne.s32.totalorder %v983_v52, 15 }
 0x16b   : > { %v5682_v3 = vpop.f32.mrb[39].mxu0  ;;  %v7104_v8 = vpack.c.bf16 %v714_v2, %v713_v51  ;;  %v1521_v14 = vrot.slane %v714_v2, 7  ;;  %v1648_v20 = vrot.slane %v714_v2, 1  ;;  %v1683_v9 = vsel %vm1665_vm2, %v1646_v19, %v1647_v58 }
 0x16c   : > { %v579_v21 = vadd.f32 %v5680_v0, %v6744_v38  ;;  %v5683_v23 = vadd.f32 %v5682_v3, %v5681_v1  ;;  %v1719_v30 = vmul.f32 %v5450_v42, %v1683_v9  ;;  %v1556_v13 = vsel %vm1538_vm4, %v1519_v17, %v1520_v54 }
 0x16d   : > { %8322 = vst [vmem:[#allocation13_spill] sm:$0xff] %v7104_v8  ;;  %2039 = vmatmul.mubr.bf16.gmra.mrb[100].mxu0 %v7104_v8  ;;  %3297 = vmatmul.mubr.bf16.gmra.mrb[32].mxu1 %v7104_v8  ;;  %v1555_v22 = vsel %vm1538_vm4, %v1520_v54, %v1521_v14  ;;  %v1593_v31 = vmul.f32 %v5433_v44, %v1556_v13  ;;  %v806_v19 = vadd.s32 192, %v6738_v32  ;;  %v5451_v42 = vsel %vm7092_vm9, 1.0, %v8255_v55 }
 0x16e   : > { %v1682_v34 = vsel %vm1665_vm2, %v1647_v58, %v1648_v20  ;;  %vm651_vm11 = vcmp.gt.f32.partialorder %v579_v21, 0.0  ;;  %v683_v26 = vmul.f32 0.01, %v579_v21  ;;  %v582_v36 = vadd.f32 %v5683_v23, %v6744_v38  ;;  %2048 = vmatprep.mubr.bf16.mxu0 %v8257_v57  ;;  %3306 = vmatprep.mubr.bf16.mxu1 %v8257_v57 }
 0x16f   : > { %v7121_v17 = vpack.c.bf16 %v1719_v30, %v1684_v35  ;;  %v7123_v37 = vpack.c.bf16 %v1555_v22, %v1593_v31  ;;  %v5434_v44 = vsel %vm7096_vm10, 1.0, %v8255_v55  ;;  %v990_v3 = vand.u32 15, %v806_v19 }
 0x170   : > { %vm652_vm12 = vcmp.gt.f32.partialorder %v582_v36, 0.0  ;;  %v684_v45 = vmul.f32 0.01, %v582_v36  ;;  %v5684_v50 = vpop.f32.mrb[40].mxu0  ;;  %v715_v51 = vsel %vm651_vm11, %v579_v21, %v683_v26  ;;  %v7141_v9 = vadd.s32 200, %v6738_v32 }
 0x171   : > { %v5685_v35 = vpop.f32.mrb[41].mxu0  ;;  %v1522_v54 = vrot.slane %v715_v51, 7  ;;  %v1649_v58 = vrot.slane %v715_v51, 1  ;;  %vm7174_vm3 = vcmp.ne.s32.totalorder %v990_v3, 0 }
 0x172   : > { %v5686_v1 = vadd.f32 %v5685_v35, %v5684_v50  ;;  %v5687_v53 = vpop.f32.mrb[42].mxu0  ;;  %v716_v2 = vsel %vm652_vm12, %v582_v36, %v684_v45  ;;  %v997_v43 = vand.u32 15, %v7141_v9 }
 0x173   : > { %v5688_v62 = vpop.f32.mrb[43].mxu0  ;;  %v7143_v21 = vpack.c.bf16 %v716_v2, %v715_v51  ;;  %v1523_v23 = vrot.slane %v716_v2, 7  ;;  %v1650_v30 = vrot.slane %v716_v2, 1  ;;  %v1681_v5 = vsel %vm1665_vm2, %v1648_v20, %v1649_v58 }
 0x174   : > { %v587_v13 = vadd.f32 %v5686_v1, %v6744_v38  ;;  %v5689_v22 = vadd.f32 %v5688_v62, %v5687_v53  ;;  %v1721_v31 = vmul.f32 %v5451_v42, %v1681_v5  ;;  %v1554_v7 = vsel %vm1538_vm4, %v1521_v14, %v1522_v54 }
 0x175   : > { %8327 = vst [vmem:[#allocation14_spill] sm:$0xff] %v7143_v21  ;;  %2049 = vmatmul.mubr.bf16.gmra.mrb[104].mxu0 %v7143_v21  ;;  %3307 = vmatmul.mubr.bf16.gmra.mrb[36].mxu1 %v7143_v21  ;;  %v1553_v19 = vsel %vm1538_vm4, %v1522_v54, %v1523_v23  ;;  %v1595_v26 = vmul.f32 %v5434_v44, %v1554_v7  ;;  %v808_v20 = vadd.s32 208, %v6738_v32  ;;  %v5452_v44 = vsel %vm7131_vm13, 1.0, %v8255_v55 }
 0x176   : > { %v1680_v36 = vsel %vm1665_vm2, %v1649_v58, %v1650_v30  ;;  %vm653_vm15 = vcmp.gt.f32.partialorder %v587_v13, 0.0  ;;  %v685_v45 = vmul.f32 0.01, %v587_v13  ;;  %v590_v42 = vadd.f32 %v5689_v22, %v6744_v38  ;;  %2058 = vmatprep.mubr.bf16.mxu0 %v8257_v57  ;;  %3316 = vmatprep.mubr.bf16.mxu1 %v8257_v57 }
 0x177   : > { %v7160_v14 = vpack.c.bf16 %v1721_v31, %v1682_v34  ;;  %v7162_v50 = vpack.c.bf16 %v1553_v19, %v1595_v26  ;;  %v5435_v51 = vsel %vm7135_vm14, 1.0, %v8255_v55  ;;  %v1004_v31 = vand.u32 15, %v808_v20 }
 0x178   : > { %vm654_vm0 = vcmp.gt.f32.partialorder %v590_v42, 0.0  ;;  %v686_v35 = vmul.f32 0.01, %v590_v42  ;;  %v5690_v54 = vpop.f32.mrb[44].mxu0  ;;  %v717_v58 = vsel %vm653_vm15, %v587_v13, %v685_v45  ;;  %v7180_v7 = vadd.s32 216, %v6738_v32 }
 0x179   : > { %v5691_v34 = vpop.f32.mrb[45].mxu0  ;;  %v1524_v53 = vrot.slane %v717_v58, 7  ;;  %v1651_v2 = vrot.slane %v717_v58, 1  ;;  %vm7209_vm7 = vcmp.ne.s32.totalorder %v997_v43, 15  ;;  %vm7213_vm8 = vcmp.ne.s32.totalorder %v1004_v31, 0 }
 0x17a   : > { %v5692_v5 = vadd.f32 %v5691_v34, %v5690_v54  ;;  %v5693_v0 = vpop.f32.mrb[46].mxu0  ;;  %v718_v22 = vsel %vm654_vm0, %v590_v42, %v686_v35 }
 0x17b   : > { %v5694_v52 = vpop.f32.mrb[47].mxu0  ;;  %v7182_v13 = vpack.c.bf16 %v718_v22, %v717_v58  ;;  %v1525_v19 = vrot.slane %v718_v22, 7  ;;  %v1652_v26 = vrot.slane %v718_v22, 1  ;;  %v1679_v3 = vsel %vm1665_vm2, %v1650_v30, %v1651_v2 }
 0x17c   : > { %v595_v45 = vadd.f32 %v5692_v5, %v6744_v38  ;;  %v5695_v18 = vadd.f32 %v5694_v52, %v5693_v0  ;;  %v1723_v11 = vmul.f32 %v5452_v44, %v1679_v3  ;;  %v1552_v9 = vsel %vm1538_vm4, %v1523_v23, %v1524_v53 }
 0x17d   : > { %8332 = vst [vmem:[#allocation15_spill] sm:$0xff] %v7182_v13  ;;  %2059 = vmatmul.mubr.bf16.gmra.mrb[108].mxu0 %v7182_v13  ;;  %3317 = vmatmul.mubr.bf16.gmra.mrb[40].mxu1 %v7182_v13  ;;  %v1551_v20 = vsel %vm1538_vm4, %v1524_v53, %v1525_v19  ;;  %v1597_v42 = vmul.f32 %v5435_v51, %v1552_v9  ;;  %v810_v30 = vadd.s32 224, %v6738_v32  ;;  %v5453_v51 = vsel %vm7170_vm1, 1.0, %v8255_v55 }
 0x17e   : > { %v1678_v35 = vsel %vm1665_vm2, %v1651_v2, %v1652_v26  ;;  %vm655_vm5 = vcmp.gt.f32.partialorder %v595_v45, 0.0  ;;  %v687_v54 = vmul.f32 0.01, %v595_v45  ;;  %v598_v44 = vadd.f32 %v5695_v18, %v6744_v38  ;;  %2068 = vmatprep.mubr.bf16.mxu0 %v8257_v57  ;;  %3326 = vmatprep.mubr.bf16.mxu1 %v8257_v57 }
 0x17f   : > { %v7199_v23 = vpack.c.bf16 %v1723_v11, %v1680_v36  ;;  %v7201_v58 = vpack.c.bf16 %v1551_v20, %v1597_v42  ;;  %v5436_v18 = vsel %vm7174_vm3, 1.0, %v8255_v55  ;;  %v1018_v9 = vand.u32 15, %v810_v30 }
 0x180   : > { %vm656_vm6 = vcmp.gt.f32.partialorder %v598_v44, 0.0  ;;  %v688_v34 = vmul.f32 0.01, %v598_v44  ;;  %v5696_v53 = vpop.f32.mrb[48].mxu0  ;;  %v719_v2 = vsel %vm655_vm5, %v595_v45, %v687_v54  ;;  %v1011_v45 = vand.u32 15, %v7180_v7 }
 0x181   : > { %v5697_v5 = vpop.f32.mrb[49].mxu0  ;;  %v1526_v0 = vrot.slane %v719_v2, 7  ;;  %v1653_v22 = vrot.slane %v719_v2, 1  ;;  %vm7254_vm12 = vcmp.ne.s32.totalorder %v1018_v9, 0  ;;  %v812_v11 = vadd.s32 240, %v6738_v32 }
 0x182   : > { %v5698_v1 = vadd.f32 %v5697_v5, %v5696_v53  ;;  %v5699_v52 = vpop.f32.mrb[50].mxu0  ;;  %v720_v3 = vsel %vm656_vm6, %v598_v44, %v688_v34  ;;  %v6388_v5 = vld [vmem:[#allocation3 + $0x104] ss:$8 sps:$4 sm:$0xff]   ;;  %v8338_v34 = vmov 0   ;;  %vm7250_vm11 = vcmp.ne.s32.totalorder %v1011_v45, 15 }
 0x183   : > { %v5700_v20 = vpop.f32.mrb[51].mxu0  ;;  %v7218_v62 = vpack.c.bf16 %v720_v3, %v719_v2  ;;  %v1527_v42 = vrot.slane %v720_v3, 7  ;;  %v1654_v54 = vrot.slane %v720_v3, 1  ;;  %v1677_v43 = vsel %vm1665_vm2, %v1652_v26, %v1653_v22  ;;  %2478 = vmatprep.subr.bf16.mxu0 %v6388_v5 }
 0x184   : > { %v603_v55 = vadd.f32 %v5698_v1, %v6744_v38  ;;  %v5701_v31 = vadd.f32 %v5700_v20, %v5699_v52  ;;  %v1725_v57 = vmul.f32 %v5453_v51, %v1677_v43  ;;  %v1550_v53 = vsel %vm1538_vm4, %v1525_v19, %v1526_v0  ;;  %v7235_v19 = vld [vmem:[%s8247_s2] ss:$0 sm:$0xff] }
 0x185   : > { %8337 = vst [vmem:[#allocation16_spill] sm:$0xff] %v7218_v62  ;;  %2069 = vmatmul.mubr.bf16.gmra.mrb[112].mxu0 %v7218_v62  ;;  %3327 = vmatmul.mubr.bf16.gmra.mrb[44].mxu1 %v7218_v62  ;;  %v1549_v7 = vsel %vm1538_vm4, %v1526_v0, %v1527_v42  ;;  %v1599_v30 = vmul.f32 %v5436_v18, %v1550_v53  ;;  %v811_v26 = vadd.s32 232, %v6738_v32  ;;  %v8339_v0 = vmov 0.0  }
 0x186   : > { %v1676_v44 = vsel %vm1665_vm2, %v1653_v22, %v1654_v54  ;;  %vm657_vm9 = vcmp.gt.f32.partialorder %v603_v55, 0.0  ;;  %v689_v38 = vmul.f32 0.01, %v603_v55  ;;  %v606_v51 = vadd.f32 %v7235_v19, %v5701_v31  ;;  %2078 = vmatprep.mubr.bf16.mxu0 %v8338_v34  ;;  %3336 = vmatprep.mubr.bf16.mxu1 %v8338_v34 }
 0x187   : > { %v7240_v2 = vpack.c.bf16 %v1725_v57, %v1678_v35  ;;  %v7242_v18 = vpack.c.bf16 %v1549_v7, %v1599_v30  ;;  %v5454_v22 = vsel %vm7209_vm7, 1.0, %v8339_v0  ;;  %v5437_v1 = vsel %vm7213_vm8, 1.0, %v8339_v0 }
 0x188   : > { %vm658_vm10 = vcmp.gt.f32.partialorder %v606_v51, 0.0  ;;  %v690_v52 = vmul.f32 0.01, %v606_v51  ;;  %v5702_v3 = vpop.f32.mrb[52].mxu0  ;;  %v721_v20 = vsel %vm657_vm9, %v603_v55, %v689_v38  ;;  %v822_v30 = vand.u32 15, %v6738_v32 }
 0x189   : > { %v5703_v57 = vpop.f32.mrb[53].mxu0  ;;  %v1528_v35 = vrot.slane %v721_v20, 7  ;;  %v1655_v31 = vrot.slane %v721_v20, 1  ;;  %v1025_v62 = vand.u32 15, %v811_v26  ;;  %v813_v43 = vadd.s32 248, %v6738_v32 }
 0x18a   : > { %v5704_v5 = vadd.f32 %v5703_v57, %v5702_v3  ;;  %v5705_v36 = vpop.f32.mrb[54].mxu0  ;;  %v722_v7 = vsel %vm658_vm10, %v606_v51, %v690_v52  ;;  %vm7278_vm14 = vcmp.ne.s32.totalorder %v822_v30, 0 }
 0x18b   : > { %v5706_v55 = vpop.f32.mrb[55].mxu0  ;;  %v7260_v45 = vpack.c.bf16 %v722_v7, %v721_v20  ;;  %v1529_v38 = vrot.slane %v722_v7, 7  ;;  %v1656_v13 = vrot.slane %v722_v7, 1  ;;  %v1675_v21 = vsel %vm1665_vm2, %v1654_v54, %v1655_v31 }
 0x18c   : > { %v611_v9 = vadd.f32 %v7235_v19, %v5704_v5  ;;  %v5707_v8 = vadd.f32 %v5706_v55, %v5705_v36  ;;  %v1727_v16 = vmul.f32 %v5454_v22, %v1675_v21  ;;  %v1548_v3 = vsel %vm1538_vm4, %v1527_v42, %v1528_v35 }
 0x18d   : > { %8344 = vst [vmem:[#allocation17_spill] sm:$0xff] %v7260_v45  ;;  %2079 = vmatmul.mubr.bf16.gmra.mrb[116].mxu0 %v7260_v45  ;;  %3337 = vmatmul.mubr.bf16.gmra.mrb[48].mxu1 %v7260_v45  ;;  %v1547_v26 = vsel %vm1538_vm4, %v1528_v35, %v1529_v38  ;;  %v1601_v51 = vmul.f32 %v5437_v1, %v1548_v3  ;;  %v1032_v20 = vand.u32 15, %v812_v11  ;;  %v5455_v1 = vsel %vm7250_vm11, 1.0, %v8339_v0 }
 0x18e   : > { %v1674_v52 = vsel %vm1665_vm2, %v1655_v31, %v1656_v13  ;;  %vm659_vm13 = vcmp.gt.f32.partialorder %v611_v9, 0.0  ;;  %v691_v54 = vmul.f32 0.01, %v611_v9  ;;  %v614_v57 = vadd.f32 %v7235_v19, %v5707_v8  ;;  %2088 = vmatprep.mubr.bf16.mxu0 %v8338_v34  ;;  %3346 = vmatprep.mubr.bf16.mxu1 %v8338_v34 }
 0x18f   : > { %v7276_v21 = vpack.c.bf16 %v1727_v16, %v1676_v44  ;;  %v7282_v22 = vpack.c.bf16 %v1547_v26, %v1601_v51  ;;  %v5438_v8 = vsel %vm7254_vm12, 1.0, %v8339_v0  ;;  %vm7290_vm0 = vcmp.ne.s32.totalorder %v1025_v62, 15 }
 0x190   : > { %vm660_vm15 = vcmp.gt.f32.partialorder %v614_v57, 0.0  ;;  %v692_v35 = vmul.f32 0.01, %v614_v57  ;;  %v5708_v31 = vpop.f32.mrb[56].mxu0  ;;  %v723_v11 = vsel %vm659_vm13, %v611_v9, %v691_v54  ;;  %vm7294_vm1 = vcmp.ne.s32.totalorder %v1032_v20, 0 }
 0x191   : > { %v5709_v44 = vpop.f32.mrb[57].mxu0  ;;  %v1530_v5 = vrot.slane %v723_v11, 7  ;;  %v1657_v36 = vrot.slane %v723_v11, 1  ;;  %v5424_v9 = vsel %vm7278_vm14, 1.0, %v8339_v0  ;;  %v814_v62 = vadd.s32 256, %v6738_v32 }
 0x192   : > { %v5710_v30 = vadd.f32 %v5709_v44, %v5708_v31  ;;  %v5711_v53 = vpop.f32.mrb[58].mxu0  ;;  %v724_v55 = vsel %vm660_vm15, %v614_v57, %v692_v35 }
 0x193   : > { %v5712_v3 = vpop.f32.mrb[59].mxu0  ;;  %v7303_v26 = vpack.c.bf16 %v724_v55, %v723_v11  ;;  %v1531_v51 = vrot.slane %v724_v55, 7  ;;  %v1658_v54 = vrot.slane %v724_v55, 1  ;;  %v1673_v20 = vsel %vm1665_vm2, %v1656_v13, %v1657_v36 }
 0x194   : > { %v619_v45 = vadd.f32 %v7235_v19, %v5710_v30  ;;  %v5713_v24 = vadd.f32 %v5712_v3, %v5711_v53  ;;  %v1729_v31 = vmul.f32 %v5455_v1, %v1673_v20  ;;  %v1546_v57 = vsel %vm1538_vm4, %v1529_v38, %v1530_v5 }
 0x195   : > { %8351 = vst [vmem:[#allocation18_spill] sm:$0xff] %v7303_v26  ;;  %2089 = vmatmul.mubr.bf16.gmra.mrb[120].mxu0 %v7303_v26  ;;  %3347 = vmatmul.mubr.bf16.gmra.mrb[52].mxu1 %v7303_v26  ;;  %v1545_v42 = vsel %vm1538_vm4, %v1530_v5, %v1531_v51  ;;  %v1603_v35 = vmul.f32 %v5438_v8, %v1546_v57  ;;  %v815_v13 = vadd.s32 264, %v6738_v32  ;;  %v5456_v8 = vsel %vm7290_vm0, 1.0, %v8339_v0 }
 0x196   : > { %v1672_v11 = vsel %vm1665_vm2, %v1657_v36, %v1658_v54  ;;  %vm661_vm3 = vcmp.gt.f32.partialorder %v619_v45, 0.0  ;;  %v693_v44 = vmul.f32 0.01, %v619_v45  ;;  %v622_v1 = vadd.f32 %v7235_v19, %v5713_v24  ;;  %2098 = vmatprep.mubr.bf16.mxu0 %v8338_v34  ;;  %3356 = vmatprep.mubr.bf16.mxu1 %v8338_v34 }
 0x197   : > { %v7320_v38 = vpack.c.bf16 %v1729_v31, %v1674_v52  ;;  %v7322_v30 = vpack.c.bf16 %v1545_v42, %v1603_v35  ;;  %v5439_v24 = vsel %vm7294_vm1, 1.0, %v8339_v0  ;;  %v1575_v52 = vmul.f32 %v5424_v9, %v6757_v56 }
 0x198   : > { %vm662_vm5 = vcmp.gt.f32.partialorder %v622_v1, 0.0  ;;  %v694_v5 = vmul.f32 0.01, %v622_v1  ;;  %v5714_v36 = vpop.f32.mrb[60].mxu0  ;;  %v725_v53 = vsel %vm661_vm3, %v619_v45, %v693_v44  ;;  %v1039_v31 = vand.u32 15, %v813_v43 }
 0x199   : > { %v5715_v55 = vpop.f32.mrb[61].mxu0  ;;  %v1532_v3 = vrot.slane %v725_v53, 7  ;;  %v1659_v20 = vrot.slane %v725_v53, 1  ;;  %v1053_v26 = vand.u32 15, %v815_v13  ;;  %v1046_v16 = vand.u32 15, %v814_v62 }
 0x19a   : > { %v5716_v57 = vadd.f32 %v5715_v55, %v5714_v36  ;;  %v5717_v42 = vpop.f32.mrb[62].mxu0  ;;  %v726_v35 = vsel %vm662_vm5, %v622_v1, %v694_v5  ;;  %vm7342_vm6 = vcmp.ne.s32.totalorder %v1039_v31, 15  ;;  %v6386_v31 = vld [vmem:[#allocation3 + $0x100] ss:$8 sps:$4 sm:$0xff]   ;;  %v6397_v13 = vld [vmem:[#allocation3 + $0x124] ss:$8 sps:$4 sm:$0xff]  }
 0x19b   : > { %v5718_v40 = vpop.f32.mrb[63].mxu0  ;;  %v7331_v59 = vpack.c.bf16 %v726_v35, %v725_v53  ;;  %v1533_v10 = vrot.slane %v726_v35, 7  ;;  %v1660_v45 = vrot.slane %v726_v35, 1  ;;  %v1671_v7 = vsel %vm1665_vm2, %v1658_v54, %v1659_v20 }
 0x19c   : > { %v627_v44 = vadd.f32 %v7235_v19, %v5716_v57  ;;  %v5719_v27 = vadd.f32 %v5718_v40, %v5717_v42  ;;  %v1731_v48 = vmul.f32 %v5456_v8, %v1671_v7  ;;  %v1544_v43 = vsel %vm1538_vm4, %v1531_v51, %v1532_v3  ;;  %v6391_v42 = vld [vmem:[#allocation3 + $0x114] ss:$8 sps:$4 sm:$0xff]  }
 0x19d   : > { %2099 = vmatmul.mubr.bf16.gmra.mrb[124].mxu0 %v7331_v59  ;;  %3357 = vmatmul.mubr.bf16.gmra.mrb[56].mxu1 %v7331_v59  ;;  %v1543_v9 = vsel %vm1538_vm4, %v1532_v3, %v1533_v10  ;;  %v1605_v62 = vmul.f32 %v5439_v24, %v1544_v43  ;;  %v1670_v54 = vsel %vm1665_vm2, %v1659_v20, %v1660_v45  ;;  %vm1391_vm8 = vcmp.ne.s32.totalorder %v1053_v26, 15 }
 0x19e   : > { %vm663_vm7 = vcmp.gt.f32.partialorder %v627_v44, 0.0  ;;  %v695_v40 = vmul.f32 0.01, %v627_v44  ;;  %v630_v1 = vadd.f32 %v7235_v19, %v5719_v27  ;;  %2221 = vmatprep.mubr.bf16.mxu0 %v8338_v34  ;;  %3366 = vmatprep.mubr.bf16.mxu1 %v8338_v34  ;;  %v7351_v51 = vpack.c.bf16 %v1731_v48, %v1672_v11 }
 0x19f   : > { %v7353_v8 = vpack.c.bf16 %v1543_v9, %v1605_v62  ;;  %vm1282_vm9 = vcmp.ne.s32.totalorder %v1046_v16, 0  ;;  %v1611_v53 = vpack.c.bf16 %v6757_v56, %v1575_v52  ;;  %v5457_v27 = vsel %vm7342_vm6, 1.0, %v8339_v0  ;;  %v6389_v62 = vld [vmem:[#allocation3 + $0x110] ss:$8 sps:$4 sm:$0xff]  }
 0x1a0   : > { %vm664_vm10 = vcmp.gt.f32.partialorder %v630_v1, 0.0  ;;  %v696_v5 = vmul.f32 0.01, %v630_v1  ;;  %v727_v36 = vsel %vm663_vm7, %v627_v44, %v695_v40  ;;  %v7360_v19 = vrot.slane %v8339_v0, 1 }
 0x1a1   : > { %v1534_v24 = vrot.slane %v727_v36, 7  ;;  %v1661_v55 = vrot.slane %v727_v36, 1  ;;  %v5458_v11 = vsel %vm1391_vm8, 1.0, %v8339_v0  ;;  %v5440_v26 = vsel %vm1282_vm9, 1.0, %v8339_v0 }
 0x1a2   : > { %v7362_v48 = vsel %vm664_vm10, %v630_v1, %v696_v5  ;;  %v6368_v5 = vld [vmem:[#allocation3 + $0x300] ss:$8 sps:$4 sm:$0xff]  }
 0x1a3   : > { %v7367_v3 = vpack.c.bf16 %v7362_v48, %v727_v36  ;;  %v1535_v20 = vrot.slane %v7362_v48, 7  ;;  %v1662_v52 = vrot.slane %v7362_v48, 1  ;;  %v1669_v57 = vsel %vm1665_vm2, %v1660_v45, %v1661_v55  ;;  %v6373_v36 = vld [vmem:[#allocation3 + $0x314] ss:$8 sps:$4 sm:$0xff]   ;;  %v6464_v48 = vld [vmem:[#allocation3 + $0x400] ss:$8 sps:$4 sm:$0xff]  }
 0x1a4   : > { %v1733_v35 = vmul.f32 %v5457_v27, %v1669_v57  ;;  %v1542_v16 = vsel %vm1538_vm4, %v1533_v10, %v1534_v24  ;;  %v6398_v27 = vld [vmem:[#allocation3 + $0x130] ss:$8 sps:$4 sm:$0xff]   ;;  %v6406_v57 = vld [vmem:[#allocation3 + $0x154] ss:$8 sps:$4 sm:$0xff]  }
 0x1a5   : > { %2222 = vmatmul.mubr.bf16.vlgmr.msra.gmra.mrb[64].mxu0 %v1611_v53  ;;  %3367 = vmatmul.mubr.bf16.gmra.mrb[60].mxu1 %v7367_v3  ;;  %v1667_v7 = vsel %vm1665_vm2, %v1662_v52, %v7360_v19  ;;  %v1668_v44 = vsel %vm1665_vm2, %v1661_v55, %v1662_v52  ;;  %v1541_v45 = vsel %vm1538_vm4, %v1534_v24, %v1535_v20  ;;  %v6395_v53 = vld [vmem:[#allocation3 + $0x120] ss:$8 sps:$4 sm:$0xff]   ;;  %v6371_v24 = vld [vmem:[#allocation3 + $0x310] ss:$8 sps:$4 sm:$0xff]   ;;  %v6376_v55 = vld [vmem:[#allocation3 + $0x324] ss:$8 sps:$4 sm:$0xff]  }
 0x1a6   : > { %2231 = vmatprep.mubr.bf16.mxu0 %v8338_v34  ;;  %3569 = vmatprep.mubr.bf16.mxu1 %v8338_v34  ;;  %v7387_v10 = vpack.c.bf16 %v1733_v35, %v1670_v54  ;;  %v1735_v43 = vmul.f32 %v5458_v11, %v1667_v7  ;;  %v1607_v9 = vmul.f32 %v5440_v26, %v1542_v16  ;;  %v6400_v54 = vld [vmem:[#allocation3 + $0x134] ss:$8 sps:$4 sm:$0xff]   ;;  %v6374_v11 = vld [vmem:[#allocation3 + $0x320] ss:$8 sps:$4 sm:$0xff]   ;;  %v6403_v26 = vld [vmem:[#allocation3 + $0x144] ss:$8 sps:$4 sm:$0xff]  }
 0x1a7   : > { %2479 = vmatpush1.bf16.msra.mxu0 %v6386_v31  ;;  %v6379_v52 = vld [vmem:[#allocation3 + $0x334] ss:$8 sps:$4 sm:$0xff]   ;;  %v6401_v31 = vld [vmem:[#allocation3 + $0x140] ss:$8 sps:$4 sm:$0xff]   ;;  %v6382_v35 = vld [vmem:[#allocation3 + $0x344] ss:$8 sps:$4 sm:$0xff]  }
 0x1a8   : > { %2480 = vmatprep.subr.bf16.mxu0 %v6391_v42  ;;  %v7389_v40 = vpack.c.bf16 %v1735_v43, %v1668_v44  ;;  %v7391_v1 = vpack.c.bf16 %v1541_v45, %v1607_v9  ;;  %v6377_v42 = vld [vmem:[#allocation3 + $0x330] ss:$8 sps:$4 sm:$0xff]   ;;  %v6380_v7 = vld [vmem:[#allocation3 + $0x340] ss:$8 sps:$4 sm:$0xff]   ;;  %v6412_v44 = vld [vmem:[#allocation3 + $0x164] ss:$8 sps:$4 sm:$0xff]  }
 0x1a9   : > { %v6404_v16 = vld [vmem:[#allocation3 + $0x150] ss:$8 sps:$4 sm:$0xff]   ;;  %v6385_v45 = vld [vmem:[#allocation3 + $0x354] ss:$8 sps:$4 sm:$0xff]   ;;  %v6410_v43 = vld [vmem:[#allocation3 + $0x160] ss:$8 sps:$4 sm:$0xff]  }
 0x1aa   : > { %v6415_v9 = vld [vmem:[#allocation3 + $0x174] ss:$8 sps:$4 sm:$0xff]  }
 0x1ab   : > { %2481 = vmatpush1.bf16.msra.mxu0 %v6389_v62  ;;  %v6383_v62 = vld [vmem:[#allocation3 + $0x350] ss:$8 sps:$4 sm:$0xff]  }
 0x1ac   : > { %2482 = vmatprep.subr.bf16.mxu0 %v6397_v13  ;;  %v6394_v13 = vld [vmem:[#allocation3 + $0x364] ss:$8 sps:$4 sm:$0xff]  }
 0x1ad   : > { %2232 = vmatmul.mubr.bf16.gmra.mrb[68].mxu0 %v6792_v28  ;;  %3570 = vmatmul.mubr.bf16.vlgmr.msra.gmra.mrb[0].mxu1 %v6836_v4 }
 0x1ae   : > { %3891 = vmatpush1.bf16.msra.mxu1 %v6368_v5  ;;  %2241 = vmatprep.mubr.bf16.mxu0 %v8338_v34  ;;  %v6413_v5 = vld [vmem:[#allocation3 + $0x170] ss:$8 sps:$4 sm:$0xff]  }
 0x1af   : > { %3579 = vmatprep.mubr.bf16.mxu1 %v8338_v34  ;;  %3892 = vmatprep.subr.bf16.mxu1 %v6373_v36  ;;  %v6392_v36 = vld [vmem:[#allocation3 + $0x360] ss:$8 sps:$4 sm:$0xff]  }
 0x1b0   : > { %2483 = vmatpush1.bf16.msra.mxu0 %v6395_v53  ;;  %v6409_v53 = vld [vmem:[#allocation3 + $0x374] ss:$8 sps:$4 sm:$0xff]  }
 0x1b1   : > { %2484 = vmatprep.subr.bf16.mxu0 %v6400_v54  ;;  %v6407_v54 = vld [vmem:[#allocation3 + $0x370] ss:$8 sps:$4 sm:$0xff]  }
 0x1b2   : > { %3893 = vmatpush1.bf16.msra.mxu1 %v6371_v24  ;;  %v6418_v24 = vld [vmem:[#allocation3 + $0x384] ss:$8 sps:$4 sm:$0xff]  }
 0x1b3   : > { %3894 = vmatprep.subr.bf16.mxu1 %v6376_v55  ;;  %v6436_v55 = vld [vmem:[#allocation3 + $0x184] ss:$8 sps:$4 sm:$0xff]  }
 0x1b4   : > { %2485 = vmatpush1.bf16.msra.mxu0 %v6398_v27  ;;  %v783_v27 = vadd.s32 8, %v6738_v32 }
 0x1b5   : > { %2242 = vmatmul.mubr.bf16.gmra.mrb[72].mxu0 %v6838_v6  ;;  %3580 = vmatmul.mubr.bf16.gmra.mrb[4].mxu1 %v6883_v46 }
 0x1b6   : > { %2251 = vmatprep.mubr.bf16.mxu0 %v8338_v34  ;;  %3589 = vmatprep.mubr.bf16.mxu1 %v8338_v34 }
 0x1b7   : > { %3895 = vmatpush1.bf16.msra.mxu1 %v6374_v11  ;;  %2486 = vmatprep.subr.bf16.mxu0 %v6403_v26  ;;  %v829_v11 = vand.u32 15, %v783_v27  ;;  %v8354_v26 = vrot.slane %v6759_v60, 1  ;;  %v6437_v60 = vld [vmem:[#allocation3 + $0x190] ss:$8 sps:$4 sm:$0xff]   ;;  %v6430_v27 = vld [vmem:[#allocation3 + $0x3c4] ss:$8 sps:$4 sm:$0xff]  }
 0x1b8   : > { %3896 = vmatprep.subr.bf16.mxu1 %v6379_v52  ;;  %2487 = vmatpush1.bf16.msra.mxu0 %v6401_v31 }
 0x1b9   : > { %2488 = vmatprep.subr.bf16.mxu0 %v6406_v57  ;;  %vm1359_vm11 = vcmp.ne.s32.totalorder %v829_v11, 15  ;;  %v1699_v52 = vsel %vm1665_vm2, %v7360_v19, %v8354_v26  ;;  %v6452_v11 = vld [vmem:[#allocation3 + $0x1d0] ss:$8 sps:$4 sm:$0xff]   ;;  %v6428_v26 = vld [vmem:[#allocation3 + $0x3c0] ss:$8 sps:$4 sm:$0xff]  }
 0x1ba   : > { %v5442_v31 = vsel %vm1359_vm11, 1.0, %v8339_v0 }
 0x1bb   : > { %3897 = vmatpush1.bf16.msra.mxu1 %v6377_v42  ;;  %v1703_v57 = vmul.f32 %v5442_v31, %v1699_v52  ;;  %v6460_v52 = vld [vmem:[#allocation3 + $0x1e4] ss:$8 sps:$4 sm:$0xff]   ;;  %v6433_v31 = vld [vmem:[#allocation3 + $0x3d4] ss:$8 sps:$4 sm:$0xff]  }
 0x1bc   : > { %3898 = vmatprep.subr.bf16.mxu1 %v6382_v35  ;;  %2489 = vmatpush1.bf16.msra.mxu0 %v6404_v16  ;;  %v6434_v35 = vld [vmem:[#allocation3 + $0x180] ss:$8 sps:$4 sm:$0xff]   ;;  %v6439_v16 = vld [vmem:[#allocation3 + $0x194] ss:$8 sps:$4 sm:$0xff]  }
 0x1bd   : > { %2252 = vmatmul.mubr.bf16.gmra.mrb[76].mxu0 %v6885_v49  ;;  %3590 = vmatmul.mubr.bf16.gmra.mrb[8].mxu1 %v6925_v29  ;;  %v1738_v42 = vpack.c.bf16 %v1703_v57, %v7360_v19  ;;  %v6458_v57 = vld [vmem:[#allocation3 + $0x1e0] ss:$8 sps:$4 sm:$0xff]  }
 0x1be   : > { %2261 = vmatprep.mubr.bf16.mxu0 %v8338_v34  ;;  %3599 = vmatprep.mubr.bf16.mxu1 %v8338_v34 }
 0x1bf   : > { %3899 = vmatpush1.bf16.msra.mxu1 %v6380_v7  ;;  %2490 = vmatprep.subr.bf16.mxu0 %v6412_v44  ;;  %v6445_v7 = vld [vmem:[#allocation3 + $0x1a4] ss:$8 sps:$4 sm:$0xff]   ;;  %v6416_v44 = vld [vmem:[#allocation3 + $0x380] ss:$8 sps:$4 sm:$0xff]  }
 0x1c0   : > { %3900 = vmatprep.subr.bf16.mxu1 %v6385_v45  ;;  %2491 = vmatpush1.bf16.msra.mxu0 %v6410_v43  ;;  %v6421_v45 = vld [vmem:[#allocation3 + $0x394] ss:$8 sps:$4 sm:$0xff]   ;;  %v6443_v43 = vld [vmem:[#allocation3 + $0x1a0] ss:$8 sps:$4 sm:$0xff]  }
 0x1c1   : > { %2492 = vmatprep.subr.bf16.mxu0 %v6415_v9  ;;  %v6448_v9 = vld [vmem:[#allocation3 + $0x1b4] ss:$8 sps:$4 sm:$0xff]  }
 0x1c3   : > { %3901 = vmatpush1.bf16.msra.mxu1 %v6383_v62  ;;  %v6419_v62 = vld [vmem:[#allocation3 + $0x390] ss:$8 sps:$4 sm:$0xff]  }
 0x1c4   : > { %3902 = vmatprep.subr.bf16.mxu1 %v6394_v13  ;;  %2493 = vmatpush1.bf16.msra.mxu0 %v6413_v5  ;;  %v6424_v13 = vld [vmem:[#allocation3 + $0x3a4] ss:$8 sps:$4 sm:$0xff]   ;;  %v6446_v5 = vld [vmem:[#allocation3 + $0x1b0] ss:$8 sps:$4 sm:$0xff]  }
 0x1c5   : > { %2262 = vmatmul.mubr.bf16.gmra.mrb[80].mxu0 %v6927_v33  ;;  %3600 = vmatmul.mubr.bf16.gmra.mrb[12].mxu1 %v6965_v12 }
 0x1c6   : > { %2271 = vmatprep.mubr.bf16.mxu0 %v8338_v34  ;;  %3609 = vmatprep.mubr.bf16.mxu1 %v8338_v34 }
 0x1c7   : > { %3903 = vmatpush1.bf16.msra.mxu1 %v6392_v36  ;;  %2831 = vmatprep.subr.bf16.mxu0 %v6436_v55  ;;  %v6422_v36 = vld [vmem:[#allocation3 + $0x3a0] ss:$8 sps:$4 sm:$0xff]   ;;  %v6425_v55 = vld [vmem:[#allocation3 + $0x3b0] ss:$8 sps:$4 sm:$0xff]  }
 0x1c8   : > { %3904 = vmatprep.subr.bf16.mxu1 %v6409_v53  ;;  %v6451_v53 = vld [vmem:[#allocation3 + $0x1c4] ss:$8 sps:$4 sm:$0xff]  }
 0x1cb   : > { %3905 = vmatpush1.bf16.msra.mxu1 %v6407_v54  ;;  %v6427_v54 = vld [vmem:[#allocation3 + $0x3b4] ss:$8 sps:$4 sm:$0xff]  }
 0x1cc   : > { %4259 = vmatprep.subr.bf16.mxu1 %v6418_v24  ;;  %v6454_v24 = vld [vmem:[#allocation3 + $0x1d4] ss:$8 sps:$4 sm:$0xff]  }
 0x1cd   : > { %2272 = vmatmul.mubr.bf16.gmra.mrb[84].mxu0 %v6967_v15  ;;  %3610 = vmatmul.mubr.bf16.gmra.mrb[16].mxu1 %v7004_v61 }
 0x1ce   : > { %2281 = vmatprep.mubr.bf16.mxu0 %v8338_v34  ;;  %3619 = vmatprep.mubr.bf16.mxu1 %v8338_v34 }
 0x1d5   : > { %2282 = vmatmul.mubr.bf16.gmra.mrb[88].mxu0 %v7006_v63  ;;  %3620 = vmatmul.mubr.bf16.gmra.mrb[20].mxu1 %v7043_v41 }
 0x1d6   : > { %2291 = vmatprep.mubr.bf16.mxu0 %v8338_v34  ;;  %3629 = vmatprep.mubr.bf16.mxu1 %v8338_v34 }
 0x1dd   : > { %2292 = vmatmul.mubr.bf16.gmra.mrb[92].mxu0 %v7045_v47  ;;  %3630 = vmatmul.mubr.bf16.gmra.mrb[24].mxu1 %v7082_v25 }
 0x1de   : > { %2301 = vmatprep.mubr.bf16.mxu0 %v8338_v34  ;;  %3639 = vmatprep.mubr.bf16.mxu1 %v8338_v34 }
 0x1e5   : > { %2302 = vmatmul.mubr.bf16.gmra.mrb[96].mxu0 %v7084_v39  ;;  %3640 = vmatmul.mubr.bf16.gmra.mrb[28].mxu1 %v7121_v17 }
 0x1e6   : > { %2311 = vmatprep.mubr.bf16.mxu0 %v8338_v34  ;;  %3649 = vmatprep.mubr.bf16.mxu1 %v8338_v34 }
 0x1ed   : > { %2312 = vmatmul.mubr.bf16.gmra.mrb[100].mxu0 %v7123_v37  ;;  %3650 = vmatmul.mubr.bf16.gmra.mrb[32].mxu1 %v7160_v14 }
 0x1ee   : > { %2321 = vmatprep.mubr.bf16.mxu0 %v8338_v34  ;;  %3659 = vmatprep.mubr.bf16.mxu1 %v8338_v34 }
 0x1f5   : > { %2322 = vmatmul.mubr.bf16.gmra.mrb[104].mxu0 %v7162_v50  ;;  %3660 = vmatmul.mubr.bf16.gmra.mrb[36].mxu1 %v7199_v23 }
 0x1f6   : > { %2331 = vmatprep.mubr.bf16.mxu0 %v8338_v34  ;;  %3669 = vmatprep.mubr.bf16.mxu1 %v8338_v34 }
 0x1fd   : > { %2332 = vmatmul.mubr.bf16.gmra.mrb[108].mxu0 %v7201_v58  ;;  %3670 = vmatmul.mubr.bf16.gmra.mrb[40].mxu1 %v7240_v2 }
 0x1fe   : > { %2341 = vmatprep.mubr.bf16.mxu0 %v8338_v34  ;;  %3679 = vmatprep.mubr.bf16.mxu1 %v8338_v34 }
 0x205   : > { %2342 = vmatmul.mubr.bf16.gmra.mrb[112].mxu0 %v7242_v18  ;;  %3680 = vmatmul.mubr.bf16.gmra.mrb[44].mxu1 %v7276_v21 }
 0x206   : > { %2351 = vmatprep.mubr.bf16.mxu0 %v8338_v34  ;;  %3689 = vmatprep.mubr.bf16.mxu1 %v8338_v34 }
 0x20d   : > { %2352 = vmatmul.mubr.bf16.gmra.mrb[116].mxu0 %v7282_v22  ;;  %3690 = vmatmul.mubr.bf16.gmra.mrb[48].mxu1 %v7320_v38 }
 0x20e   : > { %2361 = vmatprep.mubr.bf16.mxu0 %v8338_v34  ;;  %3699 = vmatprep.mubr.bf16.mxu1 %v8338_v34 }
 0x215   : > { %2362 = vmatmul.mubr.bf16.gmra.mrb[120].mxu0 %v7322_v30  ;;  %3700 = vmatmul.mubr.bf16.gmra.mrb[52].mxu1 %v7351_v51 }
 0x216   : > { %2371 = vmatprep.mubr.bf16.mxu0 %v8338_v34  ;;  %3709 = vmatprep.mubr.bf16.mxu1 %v8338_v34 }
 0x21d   : > { %2372 = vmatmul.mubr.bf16.gmra.mrb[124].mxu0 %v7353_v8  ;;  %3710 = vmatmul.mubr.bf16.gmra.mrb[56].mxu1 %v7387_v10 }
 0x21e   : > { %2510 = vmatprep.mubr.bf16.mxu0 %v8338_v34  ;;  %3719 = vmatprep.mubr.bf16.mxu1 %v8338_v34 }
 0x225   : > { %2511 = vmatmul.mubr.bf16.vlgmr.msra.gmra.mrb[64].mxu0 %v1738_v42  ;;  %3720 = vmatmul.mubr.bf16.gmra.mrb[60].mxu1 %v7389_v40  ;;  %v6463_v42 = vld [vmem:[#allocation3 + $0x1f4] ss:$8 sps:$4 sm:$0xff]  }
 0x226   : > { %2520 = vmatprep.mubr.bf16.mxu0 %v8338_v34  ;;  %3922 = vmatprep.mubr.bf16.mxu1 %v8338_v34 }
 0x227   : > { %2832 = vmatpush1.bf16.msra.mxu0 %v6434_v35  ;;  %v6431_v35 = vld [vmem:[#allocation3 + $0x3d0] ss:$8 sps:$4 sm:$0xff]  }
 0x228   : > { %2833 = vmatprep.subr.bf16.mxu0 %v6439_v16  ;;  %v6442_v16 = vld [vmem:[#allocation3 + $0x3e4] ss:$8 sps:$4 sm:$0xff]  }
 0x22b   : > { %2834 = vmatpush1.bf16.msra.mxu0 %v6437_v60  ;;  %v6461_v60 = vld [vmem:[#allocation3 + $0x1f0] ss:$8 sps:$4 sm:$0xff]  }
 0x22c   : > { %2835 = vmatprep.subr.bf16.mxu0 %v6445_v7  ;;  %v6440_v7 = vld [vmem:[#allocation3 + $0x3e0] ss:$8 sps:$4 sm:$0xff]  }
 0x22d   : > { %2521 = vmatmul.mubr.bf16.gmra.mrb[68].mxu0 %v6836_v4  ;;  %3923 = vmatmul.mubr.bf16.vlgmr.msra.gmra.mrb[0].mxu1 %v6838_v6  ;;  %v6449_v4 = vld [vmem:[#allocation3 + $0x1c0] ss:$8 sps:$4 sm:$0xff]  }
 0x22e   : > { %4260 = vmatpush1.bf16.msra.mxu1 %v6416_v44  ;;  %2530 = vmatprep.mubr.bf16.mxu0 %v8338_v34  ;;  %v6457_v44 = vld [vmem:[#allocation3 + $0x3f4] ss:$8 sps:$4 sm:$0xff]  }
 0x22f   : > { %3932 = vmatprep.mubr.bf16.mxu1 %v8338_v34  ;;  %4261 = vmatprep.subr.bf16.mxu1 %v6421_v45  ;;  %v6455_v45 = vld [vmem:[#allocation3 + $0x3f0] ss:$8 sps:$4 sm:$0xff]  }
 0x230   : > { %2836 = vmatpush1.bf16.msra.mxu0 %v6443_v43  ;;  %v6466_v43 = vld [vmem:[#allocation3 + $0x404] ss:$8 sps:$4 sm:$0xff]  }
 0x231   : > { %2837 = vmatprep.subr.bf16.mxu0 %v6448_v9  ;;  %v816_v9 = vadd.s32 272, %v6738_v32 }
 0x232   : > { %4262 = vmatpush1.bf16.msra.mxu1 %v6419_v62 }
 0x233   : > { %4263 = vmatprep.subr.bf16.mxu1 %v6424_v13  ;;  %v1060_v62 = vand.u32 15, %v816_v9 }
 0x234   : > { %2838 = vmatpush1.bf16.msra.mxu0 %v6446_v5  ;;  %v1540_v5 = vsel %vm1538_vm4, %v1535_v20, %v6757_v56  ;;  %v6469_v20 = vld [vmem:[#allocation3 + $0x414] ss:$8 sps:$4 sm:$0xff]  }
 0x235   : > { %2531 = vmatmul.mubr.bf16.gmra.mrb[72].mxu0 %v6883_v46  ;;  %3933 = vmatmul.mubr.bf16.gmra.mrb[4].mxu1 %v6885_v49  ;;  %vm1284_vm2 = vcmp.ne.s32.totalorder %v1060_v62, 0 }
 0x236   : > { %2540 = vmatprep.mubr.bf16.mxu0 %v8338_v34  ;;  %3942 = vmatprep.mubr.bf16.mxu1 %v8338_v34  ;;  %v5441_v13 = vsel %vm1284_vm2, 1.0, %v8339_v0 }
 0x237   : > { %4264 = vmatpush1.bf16.msra.mxu1 %v6422_v36  ;;  %2839 = vmatprep.subr.bf16.mxu0 %v6451_v53  ;;  %v1609_v36 = vmul.f32 %v5441_v13, %v1540_v5 }
 0x238   : > { %4265 = vmatprep.subr.bf16.mxu1 %v6427_v54  ;;  %2840 = vmatpush1.bf16.msra.mxu0 %v6449_v4  ;;  %v8355_v54 = vld [vmem:[#allocation6_spill] sm:$0xff]  ;;  %v6467_v4 = vld [vmem:[#allocation3 + $0x410] ss:$8 sps:$4 sm:$0xff]  }
 0x239   : > { %2841 = vmatprep.subr.bf16.mxu0 %v6454_v24  ;;  %v1628_v53 = vpack.c.bf16 %v6757_v56, %v1609_v36  ;;  %v6472_v56 = vld [vmem:[#allocation3 + $0x424] ss:$8 sps:$4 sm:$0xff]   ;;  %v6475_v24 = vld [vmem:[#allocation3 + $0x434] ss:$8 sps:$4 sm:$0xff]  }
 0x23b   : > { %4266 = vmatpush1.bf16.msra.mxu1 %v6425_v55  ;;  %v8356_v55 = vld [vmem:[#allocation7_spill] sm:$0xff] }
 0x23c   : > { %4267 = vmatprep.subr.bf16.mxu1 %v6430_v27  ;;  %2842 = vmatpush1.bf16.msra.mxu0 %v6452_v11  ;;  %v6478_v27 = vld [vmem:[#allocation3 + $0x444] ss:$8 sps:$4 sm:$0xff]   ;;  %v6476_v11 = vld [vmem:[#allocation3 + $0x440] ss:$8 sps:$4 sm:$0xff]  }
 0x23d   : > { %2541 = vmatmul.mubr.bf16.gmra.mrb[76].mxu0 %v6925_v29  ;;  %3943 = vmatmul.mubr.bf16.gmra.mrb[8].mxu1 %v6927_v33 }
 0x23e   : > { %2550 = vmatprep.mubr.bf16.mxu0 %v8338_v34  ;;  %3952 = vmatprep.mubr.bf16.mxu1 %v8338_v34 }
 0x23f   : > { %4268 = vmatpush1.bf16.msra.mxu1 %v6428_v26  ;;  %2843 = vmatprep.subr.bf16.mxu0 %v6460_v52  ;;  %v6481_v26 = vld [vmem:[#allocation3 + $0x454] ss:$8 sps:$4 sm:$0xff]  }
 0x240   : > { %4269 = vmatprep.subr.bf16.mxu1 %v6433_v31  ;;  %2844 = vmatpush1.bf16.msra.mxu0 %v6458_v57  ;;  %v8357_v52 = vld [vmem:[#allocation8_spill] sm:$0xff]  ;;  %v6484_v31 = vld [vmem:[#allocation3 + $0x464] ss:$8 sps:$4 sm:$0xff]   ;;  %v6482_v57 = vld [vmem:[#allocation3 + $0x460] ss:$8 sps:$4 sm:$0xff]  }
 0x241   : > { %2845 = vmatprep.subr.bf16.mxu0 %v6463_v42  ;;  %v6487_v42 = vld [vmem:[#allocation3 + $0x474] ss:$8 sps:$4 sm:$0xff]  }
 0x243   : > { %4270 = vmatpush1.bf16.msra.mxu1 %v6431_v35  ;;  %v8358_v35 = vld [vmem:[#allocation9_spill] sm:$0xff] }
 0x244   : > { %4271 = vmatprep.subr.bf16.mxu1 %v6442_v16  ;;  %2846 = vmatpush1.bf16.msra.mxu0 %v6461_v60  ;;  %v8359_v16 = vld [vmem:[#allocation10_spill] sm:$0xff]  ;;  %v8361_v60 = vld [vmem:[#allocation12_spill] sm:$0xff] }
 0x245   : > { %2551 = vmatmul.mubr.bf16.gmra.mrb[80].mxu0 %v6965_v12  ;;  %3953 = vmatmul.mubr.bf16.gmra.mrb[12].mxu1 %v6967_v15 }
 0x246   : > { %2560 = vmatprep.mubr.bf16.mxu0 %v8338_v34  ;;  %3962 = vmatprep.mubr.bf16.mxu1 %v8338_v34 }
 0x247   : > { %4272 = vmatpush1.bf16.msra.mxu1 %v6440_v7 }
 0x248   : > { %4273 = vmatprep.subr.bf16.mxu1 %v6457_v44 }
 0x24b   : > { %4274 = vmatpush1.bf16.msra.mxu1 %v6455_v45 }
 0x24c   : > { %4612 = vmatprep.subr.bf16.mxu1 %v6466_v43 }
 0x24d   : > { %2561 = vmatmul.mubr.bf16.gmra.mrb[84].mxu0 %v7004_v61  ;;  %3963 = vmatmul.mubr.bf16.gmra.mrb[16].mxu1 %v7006_v63 }
 0x24e   : > { %2570 = vmatprep.mubr.bf16.mxu0 %v8338_v34  ;;  %3972 = vmatprep.mubr.bf16.mxu1 %v8338_v34 }
 0x255   : > { %2571 = vmatmul.mubr.bf16.gmra.mrb[88].mxu0 %v7043_v41  ;;  %3973 = vmatmul.mubr.bf16.gmra.mrb[20].mxu1 %v7045_v47 }
 0x256   : > { %2580 = vmatprep.mubr.bf16.mxu0 %v8338_v34  ;;  %3982 = vmatprep.mubr.bf16.mxu1 %v8338_v34 }
 0x25d   : > { %2581 = vmatmul.mubr.bf16.gmra.mrb[92].mxu0 %v7082_v25  ;;  %3983 = vmatmul.mubr.bf16.gmra.mrb[24].mxu1 %v7084_v39 }
 0x25e   : > { %2590 = vmatprep.mubr.bf16.mxu0 %v8338_v34  ;;  %3992 = vmatprep.mubr.bf16.mxu1 %v8338_v34 }
 0x265   : > { %2591 = vmatmul.mubr.bf16.gmra.mrb[96].mxu0 %v7121_v17  ;;  %3993 = vmatmul.mubr.bf16.gmra.mrb[28].mxu1 %v7123_v37 }
 0x266   : > { %2600 = vmatprep.mubr.bf16.mxu0 %v8338_v34  ;;  %4002 = vmatprep.mubr.bf16.mxu1 %v8338_v34 }
 0x26d   : > { %2601 = vmatmul.mubr.bf16.gmra.mrb[100].mxu0 %v7160_v14  ;;  %4003 = vmatmul.mubr.bf16.gmra.mrb[32].mxu1 %v7162_v50 }
 0x26e   : > { %2610 = vmatprep.mubr.bf16.mxu0 %v8338_v34  ;;  %4012 = vmatprep.mubr.bf16.mxu1 %v8338_v34 }
 0x275   : > { %2611 = vmatmul.mubr.bf16.gmra.mrb[104].mxu0 %v7199_v23  ;;  %4013 = vmatmul.mubr.bf16.gmra.mrb[36].mxu1 %v7201_v58 }
 0x276   : > { %2620 = vmatprep.mubr.bf16.mxu0 %v8338_v34  ;;  %4022 = vmatprep.mubr.bf16.mxu1 %v8338_v34 }
 0x27d   : > { %2621 = vmatmul.mubr.bf16.gmra.mrb[108].mxu0 %v7240_v2  ;;  %4023 = vmatmul.mubr.bf16.gmra.mrb[40].mxu1 %v7242_v18 }
 0x27e   : > { %2630 = vmatprep.mubr.bf16.mxu0 %v8338_v34  ;;  %4032 = vmatprep.mubr.bf16.mxu1 %v8338_v34 }
 0x285   : > { %2631 = vmatmul.mubr.bf16.gmra.mrb[112].mxu0 %v7276_v21  ;;  %4033 = vmatmul.mubr.bf16.gmra.mrb[44].mxu1 %v7282_v22 }
 0x286   : > { %2640 = vmatprep.mubr.bf16.mxu0 %v8338_v34  ;;  %4042 = vmatprep.mubr.bf16.mxu1 %v8338_v34 }
 0x28d   : > { %2641 = vmatmul.mubr.bf16.gmra.mrb[116].mxu0 %v7320_v38  ;;  %4043 = vmatmul.mubr.bf16.gmra.mrb[48].mxu1 %v7322_v30 }
 0x28e   : > { %2650 = vmatprep.mubr.bf16.mxu0 %v8338_v34  ;;  %4052 = vmatprep.mubr.bf16.mxu1 %v8338_v34 }
 0x295   : > { %2651 = vmatmul.mubr.bf16.gmra.mrb[120].mxu0 %v7351_v51  ;;  %4053 = vmatmul.mubr.bf16.gmra.mrb[52].mxu1 %v7353_v8 }
 0x296   : > { %2660 = vmatprep.mubr.bf16.mxu0 %v8338_v34  ;;  %4062 = vmatprep.mubr.bf16.mxu1 %v8338_v34 }
 0x29d   : > { %2661 = vmatmul.mubr.bf16.gmra.mrb[124].mxu0 %v7387_v10  ;;  %4063 = vmatmul.mubr.bf16.gmra.mrb[56].mxu1 %v7391_v1 }
 0x29e   : > { %2863 = vmatprep.mubr.bf16.mxu0 %v8338_v34  ;;  %4072 = vmatprep.mubr.bf16.mxu1 %v8338_v34 }
 0x2a5   : > { %2864 = vmatmul.mubr.bf16.vlgmr.msra.gmra.mrb[64].mxu0 %v6792_v28  ;;  %4073 = vmatmul.mubr.bf16.gmra.mrb[60].mxu1 %v1628_v53  ;;  %v6470_v28 = vld [vmem:[#allocation3 + $0x420] ss:$8 sps:$4 sm:$0xff]  }
 0x2a6   : > { %2873 = vmatprep.mubr.bf16.mxu0 %v8338_v34  ;;  %4291 = vmatprep.mubr.bf16.mxu1 %v8338_v34 }
 0x2ad   : > { %2874 = vmatmul.mubr.bf16.gmra.mrb[68].mxu0 %v6838_v6  ;;  %4292 = vmatmul.mubr.bf16.vlgmr.msra.gmra.mrb[0].mxu1 %v8355_v54  ;;  %v6473_v6 = vld [vmem:[#allocation3 + $0x430] ss:$8 sps:$4 sm:$0xff]  }
 0x2ae   : > { %4613 = vmatpush1.bf16.msra.mxu1 %v6464_v48  ;;  %2883 = vmatprep.mubr.bf16.mxu0 %v8338_v34 }
 0x2af   : > { %4301 = vmatprep.mubr.bf16.mxu1 %v8338_v34  ;;  %4614 = vmatprep.subr.bf16.mxu1 %v6469_v20 }
 0x2b2   : > { %4615 = vmatpush1.bf16.msra.mxu1 %v6467_v4 }
 0x2b3   : > { %4616 = vmatprep.subr.bf16.mxu1 %v6472_v56 }
 0x2b5   : > { %2884 = vmatmul.mubr.bf16.gmra.mrb[72].mxu0 %v6885_v49  ;;  %4302 = vmatmul.mubr.bf16.gmra.mrb[4].mxu1 %v8356_v55  ;;  %v6479_v49 = vld [vmem:[#allocation3 + $0x450] ss:$8 sps:$4 sm:$0xff]  }
 0x2b6   : > { %2893 = vmatprep.mubr.bf16.mxu0 %v8338_v34  ;;  %4311 = vmatprep.mubr.bf16.mxu1 %v8338_v34 }
 0x2b7   : > { %4617 = vmatpush1.bf16.msra.mxu1 %v6470_v28 }
 0x2b8   : > { %4618 = vmatprep.subr.bf16.mxu1 %v6475_v24 }
 0x2bb   : > { %4619 = vmatpush1.bf16.msra.mxu1 %v6473_v6 }
 0x2bc   : > { %4620 = vmatprep.subr.bf16.mxu1 %v6478_v27 }
 0x2bd   : > { %2894 = vmatmul.mubr.bf16.gmra.mrb[76].mxu0 %v6927_v33  ;;  %4312 = vmatmul.mubr.bf16.gmra.mrb[8].mxu1 %v8357_v52  ;;  %v6485_v33 = vld [vmem:[#allocation3 + $0x470] ss:$8 sps:$4 sm:$0xff]  }
 0x2be   : > { %2903 = vmatprep.mubr.bf16.mxu0 %v8338_v34  ;;  %4321 = vmatprep.mubr.bf16.mxu1 %v8338_v34 }
 0x2bf   : > { %4621 = vmatpush1.bf16.msra.mxu1 %v6476_v11 }
 0x2c0   : > { %4622 = vmatprep.subr.bf16.mxu1 %v6481_v26 }
 0x2c3   : > { %4623 = vmatpush1.bf16.msra.mxu1 %v6479_v49 }
 0x2c4   : > { %4624 = vmatprep.subr.bf16.mxu1 %v6484_v31 }
 0x2c5   : > { %2904 = vmatmul.mubr.bf16.gmra.mrb[80].mxu0 %v6967_v15  ;;  %4322 = vmatmul.mubr.bf16.gmra.mrb[12].mxu1 %v8358_v35  ;;  %v8360_v15 = vld [vmem:[#allocation11_spill] sm:$0xff] }
 0x2c6   : > { %2913 = vmatprep.mubr.bf16.mxu0 %v8338_v34  ;;  %4331 = vmatprep.mubr.bf16.mxu1 %v8338_v34 }
 0x2c7   : > { %4625 = vmatpush1.bf16.msra.mxu1 %v6482_v57 }
 0x2c8   : > { %4626 = vmatprep.subr.bf16.mxu1 %v6487_v42 }
 0x2cb   : > { %4627 = vmatpush1.bf16.msra.mxu1 %v6485_v33 }
 0x2cd   : > { %2914 = vmatmul.mubr.bf16.gmra.mrb[84].mxu0 %v7006_v63  ;;  %4332 = vmatmul.mubr.bf16.gmra.mrb[16].mxu1 %v8359_v16  ;;  %v8362_v63 = vld [vmem:[#allocation13_spill] sm:$0xff] }
 0x2ce   : > { %2923 = vmatprep.mubr.bf16.mxu0 %v8338_v34  ;;  %4341 = vmatprep.mubr.bf16.mxu1 %v8338_v34 }
 0x2d5   : > { %2924 = vmatmul.mubr.bf16.gmra.mrb[88].mxu0 %v7045_v47  ;;  %4342 = vmatmul.mubr.bf16.gmra.mrb[20].mxu1 %v8360_v15  ;;  %v8363_v47 = vld [vmem:[#allocation14_spill] sm:$0xff] }
 0x2d6   : > { %2933 = vmatprep.mubr.bf16.mxu0 %v8338_v34  ;;  %4351 = vmatprep.mubr.bf16.mxu1 %v8338_v34 }
 0x2dd   : > { %2934 = vmatmul.mubr.bf16.gmra.mrb[92].mxu0 %v7084_v39  ;;  %4352 = vmatmul.mubr.bf16.gmra.mrb[24].mxu1 %v8361_v60  ;;  %v8364_v39 = vld [vmem:[#allocation15_spill] sm:$0xff] }
 0x2de   : > { %2943 = vmatprep.mubr.bf16.mxu0 %v8338_v34  ;;  %4361 = vmatprep.mubr.bf16.mxu1 %v8338_v34 }
 0x2e5   : > { %2944 = vmatmul.mubr.bf16.gmra.mrb[96].mxu0 %v7123_v37  ;;  %4362 = vmatmul.mubr.bf16.gmra.mrb[28].mxu1 %v8362_v63  ;;  %v8365_v37 = vld [vmem:[#allocation16_spill] sm:$0xff] }
 0x2e6   : > { %2953 = vmatprep.mubr.bf16.mxu0 %v8338_v34  ;;  %4371 = vmatprep.mubr.bf16.mxu1 %v8338_v34 }
 0x2ed   : > { %2954 = vmatmul.mubr.bf16.gmra.mrb[100].mxu0 %v7162_v50  ;;  %4372 = vmatmul.mubr.bf16.gmra.mrb[32].mxu1 %v8363_v47  ;;  %v8366_v50 = vld [vmem:[#allocation17_spill] sm:$0xff] }
 0x2ee   : > { %2963 = vmatprep.mubr.bf16.mxu0 %v8338_v34  ;;  %4381 = vmatprep.mubr.bf16.mxu1 %v8338_v34 }
 0x2f5   : > { %2964 = vmatmul.mubr.bf16.gmra.mrb[104].mxu0 %v7201_v58  ;;  %4382 = vmatmul.mubr.bf16.gmra.mrb[36].mxu1 %v8364_v39  ;;  %v8367_v58 = vld [vmem:[#allocation18_spill] sm:$0xff] }
 0x2f6   : > { %2973 = vmatprep.mubr.bf16.mxu0 %v8338_v34  ;;  %4391 = vmatprep.mubr.bf16.mxu1 %v8338_v34 }
 0x2fd   : > { %2974 = vmatmul.mubr.bf16.gmra.mrb[108].mxu0 %v7242_v18  ;;  %4392 = vmatmul.mubr.bf16.gmra.mrb[40].mxu1 %v8365_v37  ;;  %v8368_v18 = vmov 0.0|0.0  }
 0x2fe   : > { %2983 = vmatprep.mubr.bf16.mxu0 %v8338_v34  ;;  %4401 = vmatprep.mubr.bf16.mxu1 %v8338_v34 }
 0x305   : > { %2984 = vmatmul.mubr.bf16.gmra.mrb[112].mxu0 %v7282_v22  ;;  %4402 = vmatmul.mubr.bf16.gmra.mrb[44].mxu1 %v8366_v50  ;;  %v817_v22 = vadd.s32 280, %v6738_v32 }
 0x306   : > { %2993 = vmatprep.mubr.bf16.mxu0 %v8338_v34  ;;  %4411 = vmatprep.mubr.bf16.mxu1 %v8338_v34 }
 0x30d   : > { %2994 = vmatmul.mubr.bf16.gmra.mrb[116].mxu0 %v7322_v30  ;;  %4412 = vmatmul.mubr.bf16.gmra.mrb[48].mxu1 %v8367_v58 }
 0x30e   : > { %3003 = vmatprep.mubr.bf16.mxu0 %v8338_v34  ;;  %4421 = vmatprep.mubr.bf16.mxu1 %v8338_v34 }
 0x315   : > { %3004 = vmatmul.mubr.bf16.gmra.mrb[120].mxu0 %v7353_v8  ;;  %4422 = vmatmul.mubr.bf16.gmra.mrb[52].mxu1 %v7331_v59 }
 0x316   : > { %3013 = vmatprep.mubr.bf16.mxu0 %v8338_v34  ;;  %4431 = vmatprep.mubr.bf16.mxu1 %v8338_v34 }
 0x31d   : > { %3014 = vmatmul.mubr.bf16.gmra.mrb[124].mxu0 %v7391_v1  ;;  %4432 = vmatmul.mubr.bf16.gmra.mrb[56].mxu1 %v7367_v3  ;;  %v1067_v1 = vand.u32 15, %v817_v22 }
 0x31e   : > { %4441 = vmatprep.mubr.bf16.mxu1 %v8338_v34 }
 0x31f   : > { %vm1393_vm4 = vcmp.ne.s32.totalorder %v1067_v1, 15 }
 0x320   : > { %v5459_v45 = vsel %vm1393_vm4, 1.0, %v8339_v0 }
 0x321   : > { %v1737_v9 = vmul.f32 %v5459_v45, %v7360_v19 }
 0x323   : > { %v1755_v13 = vpack.c.bf16 %v1737_v9, %v7360_v19 }
 0x325   : > { %4442 = vmatmul.mubr.bf16.gmra.mrb[60].mxu1 %v8368_v18 }
 0x326   : > { %4644 = vmatprep.mubr.bf16.mxu1 %v8338_v34 }
 0x32d   : > { %4645 = vmatmul.mubr.bf16.vlgmr.msra.gmra.mrb[0].mxu1 %v6883_v46 }
 0x32e   : > { %4654 = vmatprep.mubr.bf16.mxu1 %v8338_v34 }
 0x335   : > { %4655 = vmatmul.mubr.bf16.gmra.mrb[4].mxu1 %v6925_v29 }
 0x336   : > { %4664 = vmatprep.mubr.bf16.mxu1 %v8338_v34 }
 0x33d   : > { %4665 = vmatmul.mubr.bf16.gmra.mrb[8].mxu1 %v6965_v12 }
 0x33e   : > { %4674 = vmatprep.mubr.bf16.mxu1 %v8338_v34 }
 0x345   : > { %4675 = vmatmul.mubr.bf16.gmra.mrb[12].mxu1 %v7004_v61 }
 0x346   : > { %4684 = vmatprep.mubr.bf16.mxu1 %v8338_v34 }
 0x34d   : > { %4685 = vmatmul.mubr.bf16.gmra.mrb[16].mxu1 %v7043_v41 }
 0x34e   : > { %4694 = vmatprep.mubr.bf16.mxu1 %v8338_v34 }
 0x355   : > { %4695 = vmatmul.mubr.bf16.gmra.mrb[20].mxu1 %v7082_v25 }
 0x356   : > { %4704 = vmatprep.mubr.bf16.mxu1 %v8338_v34 }
 0x35d   : > { %4705 = vmatmul.mubr.bf16.gmra.mrb[24].mxu1 %v7121_v17 }
 0x35e   : > { %4714 = vmatprep.mubr.bf16.mxu1 %v8338_v34 }
 0x365   : > { %4715 = vmatmul.mubr.bf16.gmra.mrb[28].mxu1 %v7160_v14 }
 0x366   : > { %4724 = vmatprep.mubr.bf16.mxu1 %v8338_v34 }
 0x36d   : > { %4725 = vmatmul.mubr.bf16.gmra.mrb[32].mxu1 %v7199_v23 }
 0x36e   : > { %4734 = vmatprep.mubr.bf16.mxu1 %v8338_v34 }
 0x375   : > { %4735 = vmatmul.mubr.bf16.gmra.mrb[36].mxu1 %v7240_v2 }
 0x376   : > { %4744 = vmatprep.mubr.bf16.mxu1 %v8338_v34 }
 0x378   : > { %v7616_v46 = vpop.f32.mrb[64].mxu0 }
 0x379   : > { %v7618_v29 = vpop.f32.mrb[65].mxu0 }
 0x37a   : > { %v7620_v59 = vpop.f32.mrb[66].mxu0 }
 0x37b   : > { %v7622_v12 = vpop.f32.mrb[67].mxu0 }
 0x37d   : > { %4745 = vmatmul.mubr.bf16.gmra.mrb[40].mxu1 %v7276_v21 }
 0x37e   : > { %4754 = vmatprep.mubr.bf16.mxu1 %v8338_v34 }
 0x380   : > { %v7626_v61 = vpop.f32.mrb[68].mxu0 }
 0x381   : > { %v7628_v41 = vpop.f32.mrb[69].mxu0 }
 0x382   : > { %v7630_v25 = vpop.f32.mrb[70].mxu0 }
 0x383   : > { %v7632_v17 = vpop.f32.mrb[71].mxu0 }
 0x385   : > { %4755 = vmatmul.mubr.bf16.gmra.mrb[44].mxu1 %v7320_v38 }
 0x386   : > { %4764 = vmatprep.mubr.bf16.mxu1 %v8338_v34 }
 0x388   : > { %v7636_v14 = vpop.f32.mrb[72].mxu0 }
 0x389   : > { %v7638_v23 = vpop.f32.mrb[73].mxu0 }
 0x38a   : > { %v7640_v2 = vpop.f32.mrb[74].mxu0 }
 0x38b   : > { %v7642_v21 = vpop.f32.mrb[75].mxu0 }
 0x38d   : > { %4765 = vmatmul.mubr.bf16.gmra.mrb[48].mxu1 %v7351_v51 }
 0x38e   : > { %4774 = vmatprep.mubr.bf16.mxu1 %v8338_v34 }
 0x390   : > { %v7647_v30 = vpop.f32.mrb[76].mxu0 }
 0x391   : > { %v7649_v8 = vpop.f32.mrb[77].mxu0 }
 0x392   : > { %v7651_v38 = vpop.f32.mrb[78].mxu0 }
 0x393   : > { %v7653_v3 = vpop.f32.mrb[79].mxu0 }
 0x395   : > { %4775 = vmatmul.mubr.bf16.gmra.mrb[52].mxu1 %v7387_v10 }
 0x396   : > { %4784 = vmatprep.mubr.bf16.mxu1 %v8338_v34 }
 0x398   : > { %v7657_v7 = vpop.f32.mrb[80].mxu0 }
 0x399   : > { %v7659_v51 = vpop.f32.mrb[81].mxu0 }
 0x39a   : > { %v7661_v44 = vpop.f32.mrb[82].mxu0 }
 0x39b   : > { %v7664_v43 = vpop.f32.mrb[83].mxu0 }
 0x39d   : > { %4785 = vmatmul.mubr.bf16.gmra.mrb[56].mxu1 %v7389_v40 }
 0x39e   : > { %4794 = vmatprep.mubr.bf16.mxu1 %v8338_v34 }
 0x3a0   : > { %v7669_v10 = vpop.f32.mrb[84].mxu0 }
 0x3a1   : > { %v7671_v62 = vpop.f32.mrb[85].mxu0 }
 0x3a2   : > { %v7674_v5 = vpop.f32.mrb[86].mxu0 }
 0x3a3   : > { %v7676_v36 = vpop.f32.mrb[87].mxu0 }
 0x3a5   : > { %4795 = vmatmul.mubr.bf16.gmra.mrb[60].mxu1 %v1755_v13 }
 0x3a8   : > { %v7678_v0 = vpop.f32.mrb[88].mxu0 }
 0x3a9   : > { %v7680_v53 = vpop.f32.mrb[89].mxu0 }
 0x3aa   : > { %v7682_v40 = vpop.f32.mrb[90].mxu0 }
 0x3ab   : > { %8369 = vst [vmem:[#allocation6_spill] sm:$0xff] %v7682_v40  ;;  %v7684_v48 = vpop.f32.mrb[91].mxu0 }
 0x3ac   : > { %8370 = vst [vmem:[#allocation7_spill] sm:$0xff] %v7684_v48 }
 0x3b0   : > { %v7686_v34 = vpop.f32.mrb[92].mxu0 }
 0x3b1   : > { %8371 = vst [vmem:[#allocation8_spill] sm:$0xff] %v7686_v34  ;;  %v7688_v20 = vpop.f32.mrb[93].mxu0  ;;  %v7881_v34 = vld [vmem:[%s6647_s9 + $0x100] sm:$0xff] }
 0x3b2   : > { %8372 = vst [vmem:[#allocation9_spill] sm:$0xff] %v7688_v20  ;;  %v7690_v54 = vpop.f32.mrb[94].mxu0  ;;  %v7878_v20 = vld [vmem:[%s6647_s9 + $0xf8] sm:$0xff]  ;;  %8415 = vst [vmem:[#allocation52_spill] sm:$0xff] %v7881_v34 }
 0x3b3   : > { %8373 = vst [vmem:[#allocation10_spill] sm:$0xff] %v7690_v54  ;;  %v7692_v19 = vpop.f32.mrb[95].mxu0  ;;  %v7875_v54 = vld [vmem:[%s6647_s9 + $0xf0] sm:$0xff]  ;;  %8414 = vst [vmem:[#allocation51_spill] sm:$0xff] %v7878_v20  ;;  %v7902_v34 = vld [vmem:[%s6647_s9 + $0x138] sm:$0xff] }
 0x3b4   : > { %8374 = vst [vmem:[#allocation11_spill] sm:$0xff] %v7692_v19  ;;  %v7872_v19 = vld [vmem:[%s6647_s9 + $0xe8] sm:$0xff]  ;;  %8413 = vst [vmem:[#allocation50_spill] sm:$0xff] %v7875_v54  ;;  %v7899_v20 = vld [vmem:[%s6647_s9 + $0x130] sm:$0xff] }
 0x3b5   : > { %8412 = vst [vmem:[#allocation49_spill] sm:$0xff] %v7872_v19  ;;  %v7893_v19 = vld [vmem:[%s6647_s9 + $0x120] sm:$0xff]  ;;  %v7896_v54 = vld [vmem:[%s6647_s9 + $0x128] sm:$0xff]  ;;  %8421 = vst [vmem:[#allocation58_spill] sm:$0xff] %v7899_v20 }
 0x3b6   : > { %8419 = vst [vmem:[#allocation56_spill] sm:$0xff] %v7893_v19  ;;  %8420 = vst [vmem:[#allocation57_spill] sm:$0xff] %v7896_v54  ;;  %v7917_v19 = vld [vmem:[%s6647_s9 + $0x160] sm:$0xff]  ;;  %v7920_v54 = vld [vmem:[%s6647_s9 + $0x168] sm:$0xff] }
 0x3b7   : > { %8422 = vst [vmem:[#allocation59_spill] sm:$0xff] %v7902_v34  ;;  %8427 = vst [vmem:[#allocation64_spill] sm:$0xff] %v7917_v19  ;;  %v7923_v20 = vld [vmem:[%s6647_s9 + $0x170] sm:$0xff]  ;;  %v7926_v34 = vld [vmem:[%s6647_s9 + $0x178] sm:$0xff] }
 0x3b8   : > { %v7694_v4 = vpop.f32.mrb[96].mxu0  ;;  %8428 = vst [vmem:[#allocation65_spill] sm:$0xff] %v7920_v54  ;;  %8429 = vst [vmem:[#allocation66_spill] sm:$0xff] %v7923_v20  ;;  %v7944_v54 = vld [vmem:[%s6647_s9 + $0x1a8] sm:$0xff]  ;;  %v7947_v20 = vld [vmem:[%s6647_s9 + $0x1b0] sm:$0xff] }
 0x3b9   : > { %8375 = vst [vmem:[#allocation12_spill] sm:$0xff] %v7694_v4  ;;  %v7696_v56 = vpop.f32.mrb[97].mxu0  ;;  %v7869_v4 = vld [vmem:[%s6647_s9 + $0xe0] sm:$0xff]  ;;  %8430 = vst [vmem:[#allocation67_spill] sm:$0xff] %v7926_v34  ;;  %v7950_v34 = vld [vmem:[%s6647_s9 + $0x1b8] sm:$0xff] }
 0x3ba   : > { %8376 = vst [vmem:[#allocation13_spill] sm:$0xff] %v7696_v56  ;;  %v7698_v28 = vpop.f32.mrb[98].mxu0  ;;  %v7866_v56 = vld [vmem:[%s6647_s9 + $0xd8] sm:$0xff]  ;;  %8411 = vst [vmem:[#allocation48_spill] sm:$0xff] %v7869_v4  ;;  %v7953_v19 = vld [vmem:[%s6647_s9 + $0x1c0] sm:$0xff] }
 0x3bb   : > { %8377 = vst [vmem:[#allocation14_spill] sm:$0xff] %v7698_v28  ;;  %v7700_v24 = vpop.f32.mrb[99].mxu0  ;;  %v7863_v28 = vld [vmem:[%s6647_s9 + $0xd0] sm:$0xff]  ;;  %8410 = vst [vmem:[#allocation47_spill] sm:$0xff] %v7866_v56  ;;  %v7890_v4 = vld [vmem:[%s6647_s9 + $0x118] sm:$0xff] }
 0x3bc   : > { %8378 = vst [vmem:[#allocation15_spill] sm:$0xff] %v7700_v24  ;;  %v7860_v24 = vld [vmem:[%s6647_s9 + $0xc8] sm:$0xff]  ;;  %8409 = vst [vmem:[#allocation46_spill] sm:$0xff] %v7863_v28  ;;  %v7887_v56 = vld [vmem:[%s6647_s9 + $0x110] sm:$0xff] }
 0x3bd   : > { %8408 = vst [vmem:[#allocation45_spill] sm:$0xff] %v7860_v24  ;;  %v7884_v28 = vld [vmem:[%s6647_s9 + $0x108] sm:$0xff]  ;;  %8417 = vst [vmem:[#allocation54_spill] sm:$0xff] %v7887_v56  ;;  %v7914_v24 = vld [vmem:[%s6647_s9 + $0x158] sm:$0xff] }
 0x3be   : > { %8416 = vst [vmem:[#allocation53_spill] sm:$0xff] %v7884_v28  ;;  %8418 = vst [vmem:[#allocation55_spill] sm:$0xff] %v7890_v4  ;;  %v7905_v28 = vld [vmem:[%s6647_s9 + $0x140] sm:$0xff]  ;;  %v7908_v56 = vld [vmem:[%s6647_s9 + $0x148] sm:$0xff] }
 0x3bf   : > { %8423 = vst [vmem:[#allocation60_spill] sm:$0xff] %v7905_v28  ;;  %8424 = vst [vmem:[#allocation61_spill] sm:$0xff] %v7908_v56  ;;  %v7911_v4 = vld [vmem:[%s6647_s9 + $0x150] sm:$0xff]  ;;  %v7929_v28 = vld [vmem:[%s6647_s9 + $0x180] sm:$0xff] }
 0x3c0   : > { %v7702_v55 = vpop.f32.mrb[100].mxu0  ;;  %8425 = vst [vmem:[#allocation62_spill] sm:$0xff] %v7911_v4  ;;  %8426 = vst [vmem:[#allocation63_spill] sm:$0xff] %v7914_v24  ;;  %v7932_v56 = vld [vmem:[%s6647_s9 + $0x188] sm:$0xff]  ;;  %v7938_v4 = vld [vmem:[%s6647_s9 + $0x198] sm:$0xff] }
 0x3c1   : > { %8379 = vst [vmem:[#allocation16_spill] sm:$0xff] %v7702_v55  ;;  %v7704_v6 = vpop.f32.mrb[101].mxu0  ;;  %v7857_v55 = vld [vmem:[%s6647_s9 + $0xc0] sm:$0xff]  ;;  %8431 = vst [vmem:[#allocation68_spill] sm:$0xff] %v7929_v28  ;;  %v7956_v28 = vld [vmem:[%s6647_s9 + $0x1c8] sm:$0xff] }
 0x3c2   : > { %8380 = vst [vmem:[#allocation17_spill] sm:$0xff] %v7704_v6  ;;  %v7706_v27 = vpop.f32.mrb[102].mxu0  ;;  %v7854_v6 = vld [vmem:[%s6647_s9 + $0xb8] sm:$0xff]  ;;  %8407 = vst [vmem:[#allocation44_spill] sm:$0xff] %v7857_v55  ;;  %v7935_v55 = vld [vmem:[%s6647_s9 + $0x190] sm:$0xff] }
 0x3c3   : > { %8381 = vst [vmem:[#allocation18_spill] sm:$0xff] %v7706_v27  ;;  %v7708_v11 = vpop.f32.mrb[103].mxu0  ;;  %v7851_v27 = vld [vmem:[%s6647_s9 + $0xb0] sm:$0xff]  ;;  %8432 = vst [vmem:[#allocation69_spill] sm:$0xff] %v7932_v56  ;;  %v7941_v24 = vld [vmem:[%s6647_s9 + $0x1a0] sm:$0xff] }
 0x3c4   : > { %8382 = vst [vmem:[#allocation19_spill] sm:$0xff] %v7708_v11  ;;  %v7848_v11 = vld [vmem:[%s6647_s9 + $0xa8] sm:$0xff]  ;;  %8433 = vst [vmem:[#allocation70_spill] sm:$0xff] %v7935_v55  ;;  %v7965_v56 = vld [vmem:[%s6647_s9 + $0x1d8] sm:$0xff] }
 0x3c5   : > { %8434 = vst [vmem:[#allocation71_spill] sm:$0xff] %v7938_v4  ;;  %8435 = vst [vmem:[#allocation72_spill] sm:$0xff] %v7941_v24  ;;  %v7962_v24 = vld [vmem:[%s6647_s9 + $0x1d0] sm:$0xff] }
 0x3c6   : > { %8436 = vst [vmem:[#allocation73_spill] sm:$0xff] %v7944_v54  ;;  %8437 = vst [vmem:[#allocation74_spill] sm:$0xff] %v7947_v20  ;;  %v7968_v54 = vld [vmem:[%s6647_s9 + $0x1e0] sm:$0xff] }
 0x3c7   : > { %8438 = vst [vmem:[#allocation75_spill] sm:$0xff] %v7950_v34  ;;  %8439 = vst [vmem:[#allocation76_spill] sm:$0xff] %v7953_v19 }
 0x3c8   : > { %v7710_v26 = vpop.f32.mrb[104].mxu0  ;;  %8440 = vst [vmem:[#allocation77_spill] sm:$0xff] %v7956_v28  ;;  %8441 = vst [vmem:[#allocation78_spill] sm:$0xff] %v7962_v24  ;;  %v7984_v24 = vld [vmem:[%s6647_s9 + $0x1e8] sm:$0xff] }
 0x3c9   : > { %8383 = vst [vmem:[#allocation20_spill] sm:$0xff] %v7710_v26  ;;  %v7712_v52 = vpop.f32.mrb[105].mxu0  ;;  %v7845_v26 = vld [vmem:[%s6647_s9 + $0xa0] sm:$0xff]  ;;  %8442 = vst [vmem:[#allocation79_spill] sm:$0xff] %v7965_v56  ;;  %v7987_v56 = vld [vmem:[%s6647_s9 + $0x1f0] sm:$0xff] }
 0x3ca   : > { %8384 = vst [vmem:[#allocation21_spill] sm:$0xff] %v7712_v52  ;;  %v7714_v49 = vpop.f32.mrb[106].mxu0  ;;  %v7842_v52 = vld [vmem:[%s6647_s9 + $0x98] sm:$0xff]  ;;  %8443 = vst [vmem:[#allocation80_spill] sm:$0xff] %v7968_v54 }
 0x3cb   : > { %8385 = vst [vmem:[#allocation22_spill] sm:$0xff] %v7714_v49  ;;  %v7716_v31 = vpop.f32.mrb[107].mxu0  ;;  %v7839_v49 = vld [vmem:[%s6647_s9 + $0x90] sm:$0xff]  ;;  %8444 = vst [vmem:[#allocation81_spill] sm:$0xff] %v7984_v24  ;;  %v7990_v54 = vld [vmem:[%s6647_s9 + $0x1f8] sm:$0xff] }
 0x3cc   : > { %8386 = vst [vmem:[#allocation23_spill] sm:$0xff] %v7716_v31  ;;  %v7836_v31 = vld [vmem:[%s6647_s9 + $0x88] sm:$0xff]  ;;  %8445 = vst [vmem:[#allocation82_spill] sm:$0xff] %v7987_v56 }
 0x3cd   : > { %8446 = vst [vmem:[#allocation83_spill] sm:$0xff] %v7990_v54 }
 0x3d0   : > { %v7718_v57 = vpop.f32.mrb[108].mxu0 }
 0x3d1   : > { %8387 = vst [vmem:[#allocation24_spill] sm:$0xff] %v7718_v57  ;;  %v7720_v42 = vpop.f32.mrb[109].mxu0  ;;  %v7833_v57 = vld [vmem:[%s6647_s9 + $0x80] sm:$0xff] }
 0x3d2   : > { %8388 = vst [vmem:[#allocation25_spill] sm:$0xff] %v7720_v42  ;;  %v7722_v35 = vpop.f32.mrb[110].mxu0  ;;  %v7830_v42 = vld [vmem:[%s6647_s9 + $0x78] sm:$0xff] }
 0x3d3   : > { %8389 = vst [vmem:[#allocation26_spill] sm:$0xff] %v7722_v35  ;;  %v7724_v33 = vpop.f32.mrb[111].mxu0  ;;  %v7827_v35 = vld [vmem:[%s6647_s9 + $0x70] sm:$0xff] }
 0x3d4   : > { %8390 = vst [vmem:[#allocation27_spill] sm:$0xff] %v7724_v33  ;;  %v7824_v33 = vld [vmem:[%s6647_s9 + $0x68] sm:$0xff] }
 0x3d8   : > { %v7726_v16 = vpop.f32.mrb[112].mxu0 }
 0x3d9   : > { %8391 = vst [vmem:[#allocation28_spill] sm:$0xff] %v7726_v16  ;;  %v7728_v15 = vpop.f32.mrb[113].mxu0  ;;  %v7821_v16 = vld [vmem:[%s6647_s9 + $0x60] sm:$0xff] }
 0x3da   : > { %8392 = vst [vmem:[#allocation29_spill] sm:$0xff] %v7728_v15  ;;  %v7730_v60 = vpop.f32.mrb[114].mxu0  ;;  %v7818_v15 = vld [vmem:[%s6647_s9 + $0x58] sm:$0xff] }
 0x3db   : > { %8393 = vst [vmem:[#allocation30_spill] sm:$0xff] %v7730_v60  ;;  %v7732_v63 = vpop.f32.mrb[115].mxu0  ;;  %v7815_v60 = vld [vmem:[%s6647_s9 + $0x50] sm:$0xff] }
 0x3dc   : > { %8394 = vst [vmem:[#allocation31_spill] sm:$0xff] %v7732_v63  ;;  %v7812_v63 = vld [vmem:[%s6647_s9 + $0x48] sm:$0xff] }
 0x3e0   : > { %v7734_v47 = vpop.f32.mrb[116].mxu0 }
 0x3e1   : > { %8395 = vst [vmem:[#allocation32_spill] sm:$0xff] %v7734_v47  ;;  %v7736_v39 = vpop.f32.mrb[117].mxu0 }
 0x3e2   : > { %8396 = vst [vmem:[#allocation33_spill] sm:$0xff] %v7736_v39  ;;  %v7738_v37 = vpop.f32.mrb[118].mxu0 }
 0x3e3   : > { %8397 = vst [vmem:[#allocation34_spill] sm:$0xff] %v7738_v37  ;;  %v7740_v50 = vpop.f32.mrb[119].mxu0 }
 0x3e4   : > { %8398 = vst [vmem:[#allocation35_spill] sm:$0xff] %v7740_v50  ;;  %v4873_v50 = vsub.s32 0, %v6738_v32 }
 0x3e8   : > { %v7742_v58 = vpop.f32.mrb[120].mxu0 }
 0x3e9   : > { %8399 = vst [vmem:[#allocation36_spill] sm:$0xff] %v7742_v58  ;;  %v7744_v18 = vpop.f32.mrb[121].mxu0 }
 0x3ea   : > { %8400 = vst [vmem:[#allocation37_spill] sm:$0xff] %v7744_v18  ;;  %v7746_v22 = vpop.f32.mrb[122].mxu0  ;;  %v4869_v18 = vld [vmem:[%s8249_s4] sm:$0x3] }
 0x3eb   : > { %8401 = vst [vmem:[#allocation38_spill] sm:$0xff] %v7746_v22  ;;  %v7748_v1 = vpop.f32.mrb[123].mxu0  ;;  %v4877_v22 = vsub.s32 1, %v6738_v32  ;;  %v7763_v58 = vrot.slane %v4869_v18, %v4873_v50 }
 0x3ec   : > { %8402 = vst [vmem:[#allocation39_spill] sm:$0xff] %v7748_v1 }
 0x3f0   : > { %v7750_v45 = vpop.f32.mrb[124].mxu0 }
 0x3f1   : > { %8403 = vst [vmem:[#allocation40_spill] sm:$0xff] %v7750_v45  ;;  %v7752_v9 = vpop.f32.mrb[125].mxu0  ;;  %v7765_v45 = vrot.slane %v4869_v18, %v4877_v22  ;;  %v7774_v18 = vld [vmem:[%s6647_s9] sm:$0xff]  ;;  %v7791_v22 = vld [vmem:[%s6647_s9 + $0x10] sm:$0xff] }
 0x3f2   : > { %8404 = vst [vmem:[#allocation41_spill] sm:$0xff] %v7752_v9  ;;  %v7754_v13 = vpop.f32.mrb[126].mxu0 }
 0x3f3   : > { %8405 = vst [vmem:[#allocation42_spill] sm:$0xff] %v7754_v13  ;;  %v7756_v39 = vpop.f32.mrb[127].mxu0 }
 0x3f4   : > { %8406 = vst [vmem:[#allocation43_spill] sm:$0xff] %v7756_v39 }
 0x400   : > { %v4646_v1 = vpop.f32.mrb[0].mxu1 }
 0x401   : > { %v5720_v13 = vadd.f32 %v4646_v1, %v7616_v46  ;;  %v4648_v39 = vpop.f32.mrb[1].mxu1  ;;  %v7794_v1 = vld [vmem:[%s6647_s9 + $0x18] sm:$0xff] }
 0x402   : > { %v5721_v9 = vadd.f32 %v4648_v39, %v7618_v29  ;;  %v4650_v37 = vpop.f32.mrb[2].mxu1  ;;  %v7780_v29 = vld [vmem:[%s6647_s9 + $0x8] sm:$0xff] }
 0x403   : > { %v7770_v47 = vadd.f32 %v5720_v13, %v7763_v58  ;;  %v5722_v32 = vadd.f32 %v4650_v37, %v7620_v59  ;;  %v4652_v50 = vpop.f32.mrb[3].mxu1  ;;  %v7803_v13 = vld [vmem:[%s6647_s9 + $0x30] sm:$0xff] }
 0x404   : > { %v7777_v46 = vadd.f32 %v5721_v9, %v7765_v45  ;;  %v5723_v39 = vadd.f32 %v4652_v50, %v7622_v12  ;;  %v7797_v9 = vld [vmem:[%s6647_s9 + $0x20] sm:$0xff]  ;;  %v7800_v12 = vld [vmem:[%s6647_s9 + $0x28] sm:$0xff]  ;;  %v7806_v50 = vld [vmem:[%s6647_s9 + $0x38] sm:$0xff] }
 0x405   : > { %vm4945_vm12 = vcmp.gt.f32.partialorder %v7770_v47, 0.0  ;;  %v7785_v59 = vmul.f32 0.01, %v7770_v47  ;;  %v7788_v37 = vadd.f32 %v5722_v32, %v7763_v58  ;;  %v7809_v32 = vld [vmem:[%s6647_s9 + $0x40] sm:$0xff] }
 0x406   : > { %vm4946_vm13 = vcmp.gt.f32.partialorder %v7777_v46, 0.0  ;;  %v5010_v55 = vmul.f32 0.01, %v7777_v46  ;;  %v4884_v4 = vadd.f32 %v5723_v39, %v7765_v45 }
 0x407   : > { %v5073_v28 = vsel %vm4945_vm12, %v7770_v47, %v7785_v59  ;;  %vm4947_vm14 = vcmp.gt.f32.partialorder %v7788_v37, 0.0  ;;  %v5011_v39 = vmul.f32 0.01, %v7788_v37 }
 0x408   : > { %v5201_v19 = vadd.f32 %v7774_v18, %v5073_v28  ;;  %v5074_v34 = vsel %vm4946_vm13, %v7777_v46, %v5010_v55  ;;  %vm4948_vm15 = vcmp.gt.f32.partialorder %v4884_v4, 0.0  ;;  %v5012_v20 = vmul.f32 0.01, %v4884_v4  ;;  %v4656_v48 = vpop.f32.mrb[4].mxu1 }
 0x409   : > { %v5202_v47 = vadd.f32 %v7780_v29, %v5074_v34  ;;  %v5075_v59 = vsel %vm4947_vm14, %v7788_v37, %v5011_v39  ;;  %v5724_v24 = vadd.f32 %v4656_v48, %v7626_v61  ;;  %v4658_v40 = vpop.f32.mrb[5].mxu1 }
 0x40a   : > { %v5203_v56 = vadd.f32 %v7791_v22, %v5075_v59  ;;  %v5076_v54 = vsel %vm4948_vm15, %v4884_v4, %v5012_v20  ;;  %v5725_v28 = vadd.f32 %v4658_v40, %v7628_v41  ;;  %v4660_v18 = vpop.f32.mrb[6].mxu1  ;;  %5265 = vst [vmem:[%s7975_s11] sm:$0xff] %v5201_v19 }
 0x40b   : > { %v5204_v55 = vadd.f32 %v7794_v1, %v5076_v54  ;;  %v4885_v46 = vadd.f32 %v5724_v24, %v7763_v58  ;;  %v5726_v34 = vadd.f32 %v4660_v18, %v7630_v25  ;;  %v4662_v29 = vpop.f32.mrb[7].mxu1  ;;  %5266 = vst [vmem:[%s7975_s11 + $0x8] sm:$0xff] %v5202_v47 }
 0x40c   : > { %v4886_v37 = vadd.f32 %v5725_v28, %v7765_v45  ;;  %v5727_v61 = vadd.f32 %v4662_v29, %v7632_v17  ;;  %5267 = vst [vmem:[%s7975_s11 + $0x10] sm:$0xff] %v5203_v56 }
 0x40d   : > { %vm4949_vm0 = vcmp.gt.f32.partialorder %v4885_v46, 0.0  ;;  %v5013_v48 = vmul.f32 0.01, %v4885_v46  ;;  %v4887_v20 = vadd.f32 %v5726_v34, %v7763_v58  ;;  %5268 = vst [vmem:[%s7975_s11 + $0x18] sm:$0xff] %v5204_v55 }
 0x40e   : > { %vm4950_vm1 = vcmp.gt.f32.partialorder %v4886_v37, 0.0  ;;  %v5014_v41 = vmul.f32 0.01, %v4886_v37  ;;  %v4888_v40 = vadd.f32 %v5727_v61, %v7765_v45 }
 0x40f   : > { %v5077_v54 = vsel %vm4949_vm0, %v4885_v46, %v5013_v48  ;;  %vm4951_vm3 = vcmp.gt.f32.partialorder %v4887_v20, 0.0  ;;  %v5015_v25 = vmul.f32 0.01, %v4887_v20 }
 0x410   : > { %v5205_v19 = vadd.f32 %v7797_v9, %v5077_v54  ;;  %v5078_v4 = vsel %vm4950_vm1, %v4886_v37, %v5014_v41  ;;  %vm4952_vm5 = vcmp.gt.f32.partialorder %v4888_v40, 0.0  ;;  %v5016_v17 = vmul.f32 0.01, %v4888_v40  ;;  %v4666_v56 = vpop.f32.mrb[8].mxu1 }
 0x411   : > { %v5206_v24 = vadd.f32 %v7800_v12, %v5078_v4  ;;  %v5079_v22 = vsel %vm4951_vm3, %v4887_v20, %v5015_v25  ;;  %v5728_v1 = vadd.f32 %v4666_v56, %v7636_v14  ;;  %v4668_v39 = vpop.f32.mrb[9].mxu1 }
 0x412   : > { %v5207_v47 = vadd.f32 %v7803_v13, %v5079_v22  ;;  %v5080_v59 = vsel %vm4952_vm5, %v4888_v40, %v5016_v17  ;;  %v5729_v28 = vadd.f32 %v4668_v39, %v7638_v23  ;;  %v4670_v18 = vpop.f32.mrb[10].mxu1  ;;  %5269 = vst [vmem:[%s7975_s11 + $0x20] sm:$0xff] %v5205_v19 }
 0x413   : > { %v5208_v9 = vadd.f32 %v7806_v50, %v5080_v59  ;;  %v4889_v55 = vadd.f32 %v5728_v1, %v7763_v58  ;;  %v5730_v46 = vadd.f32 %v4670_v18, %v7640_v2  ;;  %v4672_v12 = vpop.f32.mrb[11].mxu1  ;;  %5270 = vst [vmem:[%s7975_s11 + $0x28] sm:$0xff] %v5206_v24 }
 0x414   : > { %v4890_v34 = vadd.f32 %v5729_v28, %v7765_v45  ;;  %v5731_v14 = vadd.f32 %v4672_v12, %v7642_v21  ;;  %5271 = vst [vmem:[%s7975_s11 + $0x30] sm:$0xff] %v5207_v47 }
 0x415   : > { %vm4953_vm6 = vcmp.gt.f32.partialorder %v4889_v55, 0.0  ;;  %v5017_v13 = vmul.f32 0.01, %v4889_v55  ;;  %v4891_v29 = vadd.f32 %v5730_v46, %v7763_v58  ;;  %5272 = vst [vmem:[%s7975_s11 + $0x38] sm:$0xff] %v5208_v9 }
 0x416   : > { %vm4954_vm7 = vcmp.gt.f32.partialorder %v4890_v34, 0.0  ;;  %v5018_v23 = vmul.f32 0.01, %v4890_v34  ;;  %v4892_v50 = vadd.f32 %v5731_v14, %v7765_v45 }
 0x417   : > { %v5081_v37 = vsel %vm4953_vm6, %v4889_v55, %v5017_v13  ;;  %vm4955_vm8 = vcmp.gt.f32.partialorder %v4891_v29, 0.0  ;;  %v5019_v2 = vmul.f32 0.01, %v4891_v29 }
 0x418   : > { %v5209_v61 = vadd.f32 %v7809_v32, %v5081_v37  ;;  %v5082_v48 = vsel %vm4954_vm7, %v4890_v34, %v5018_v23  ;;  %vm4956_vm9 = vcmp.gt.f32.partialorder %v4892_v50, 0.0  ;;  %v5020_v21 = vmul.f32 0.01, %v4892_v50  ;;  %v4676_v20 = vpop.f32.mrb[12].mxu1 }
 0x419   : > { %v5210_v41 = vadd.f32 %v7812_v63, %v5082_v48  ;;  %v5083_v40 = vsel %vm4955_vm8, %v4891_v29, %v5019_v2  ;;  %v5732_v54 = vadd.f32 %v4676_v20, %v7647_v30  ;;  %v4678_v25 = vpop.f32.mrb[13].mxu1 }
 0x41a   : > { %v5211_v19 = vadd.f32 %v7815_v60, %v5083_v40  ;;  %v5084_v4 = vsel %vm4956_vm9, %v4892_v50, %v5020_v21  ;;  %v5733_v17 = vadd.f32 %v4678_v25, %v7649_v8  ;;  %v4680_v56 = vpop.f32.mrb[14].mxu1  ;;  %5273 = vst [vmem:[%s7975_s11 + $0x40] sm:$0xff] %v5209_v61 }
 0x41b   : > { %v5212_v32 = vadd.f32 %v7818_v15, %v5084_v4  ;;  %v4893_v24 = vadd.f32 %v5732_v54, %v7763_v58  ;;  %v5734_v22 = vadd.f32 %v4680_v56, %v7651_v38  ;;  %v4682_v63 = vpop.f32.mrb[15].mxu1  ;;  %5274 = vst [vmem:[%s7975_s11 + $0x48] sm:$0xff] %v5210_v41 }
 0x41c   : > { %v4894_v1 = vadd.f32 %v5733_v17, %v7765_v45  ;;  %v5735_v30 = vadd.f32 %v4682_v63, %v7653_v3  ;;  %5275 = vst [vmem:[%s7975_s11 + $0x50] sm:$0xff] %v5211_v19 }
 0x41d   : > { %vm4957_vm10 = vcmp.gt.f32.partialorder %v4893_v24, 0.0  ;;  %v5021_v60 = vmul.f32 0.01, %v4893_v24  ;;  %v4895_v39 = vadd.f32 %v5734_v22, %v7763_v58  ;;  %5276 = vst [vmem:[%s7975_s11 + $0x58] sm:$0xff] %v5212_v32 }
 0x41e   : > { %vm4958_vm11 = vcmp.gt.f32.partialorder %v4894_v1, 0.0  ;;  %v5022_v8 = vmul.f32 0.01, %v4894_v1  ;;  %v4896_v15 = vadd.f32 %v5735_v30, %v7765_v45 }
 0x41f   : > { %v5085_v47 = vsel %vm4957_vm10, %v4893_v24, %v5021_v60  ;;  %vm4959_vm2 = vcmp.gt.f32.partialorder %v4895_v39, 0.0  ;;  %v5023_v38 = vmul.f32 0.01, %v4895_v39 }
 0x420   : > { %v5213_v59 = vadd.f32 %v7821_v16, %v5085_v47  ;;  %v5086_v28 = vsel %vm4958_vm11, %v4894_v1, %v5022_v8  ;;  %vm4960_vm4 = vcmp.gt.f32.partialorder %v4896_v15, 0.0  ;;  %v5024_v3 = vmul.f32 0.01, %v4896_v15  ;;  %v4686_v18 = vpop.f32.mrb[16].mxu1 }
 0x421   : > { %v5214_v9 = vadd.f32 %v7824_v33, %v5086_v28  ;;  %v5087_v55 = vsel %vm4959_vm2, %v4895_v39, %v5023_v38  ;;  %v5736_v46 = vadd.f32 %v4686_v18, %v7657_v7  ;;  %v4688_v12 = vpop.f32.mrb[17].mxu1 }
 0x422   : > { %v5215_v34 = vadd.f32 %v7827_v35, %v5087_v55  ;;  %v5088_v14 = vsel %vm4960_vm4, %v4896_v15, %v5024_v3  ;;  %v5737_v13 = vadd.f32 %v4688_v12, %v7659_v51  ;;  %v4690_v29 = vpop.f32.mrb[18].mxu1  ;;  %5277 = vst [vmem:[%s7975_s11 + $0x60] sm:$0xff] %v5213_v59  ;;  %v8447_v55 = vld [vmem:[#allocation6_spill] sm:$0xff] }
 0x423   : > { %v5216_v16 = vadd.f32 %v7830_v42, %v5088_v14  ;;  %v4897_v23 = vadd.f32 %v5736_v46, %v7763_v58  ;;  %v5738_v50 = vadd.f32 %v4690_v29, %v7661_v44  ;;  %v4692_v33 = vpop.f32.mrb[19].mxu1  ;;  %5278 = vst [vmem:[%s7975_s11 + $0x68] sm:$0xff] %v5214_v9 }
 0x424   : > { %v4898_v37 = vadd.f32 %v5737_v13, %v7765_v45  ;;  %v5739_v7 = vadd.f32 %v4692_v33, %v7664_v43  ;;  %5279 = vst [vmem:[%s7975_s11 + $0x70] sm:$0xff] %v5215_v34 }
 0x425   : > { %vm4961_vm12 = vcmp.gt.f32.partialorder %v4897_v23, 0.0  ;;  %v5025_v35 = vmul.f32 0.01, %v4897_v23  ;;  %v4899_v2 = vadd.f32 %v5738_v50, %v7763_v58  ;;  %5280 = vst [vmem:[%s7975_s11 + $0x78] sm:$0xff] %v5216_v16  ;;  %v8449_v16 = vld [vmem:[#allocation44_spill] sm:$0xff] }
 0x426   : > { %vm4962_vm13 = vcmp.gt.f32.partialorder %v4898_v37, 0.0  ;;  %v5026_v51 = vmul.f32 0.01, %v4898_v37  ;;  %v4900_v42 = vadd.f32 %v5739_v7, %v7765_v45  ;;  %v8450_v7 = vld [vmem:[#allocation45_spill] sm:$0xff] }
 0x427   : > { %v5089_v61 = vsel %vm4961_vm12, %v4897_v23, %v5025_v35  ;;  %vm4963_vm14 = vcmp.gt.f32.partialorder %v4899_v2, 0.0  ;;  %v5027_v44 = vmul.f32 0.01, %v4899_v2 }
 0x428   : > { %v5217_v48 = vadd.f32 %v7833_v57, %v5089_v61  ;;  %v5090_v21 = vsel %vm4962_vm13, %v4898_v37, %v5026_v51  ;;  %vm4964_vm15 = vcmp.gt.f32.partialorder %v4900_v42, 0.0  ;;  %v5028_v43 = vmul.f32 0.01, %v4900_v42  ;;  %v4696_v20 = vpop.f32.mrb[20].mxu1  ;;  %v8451_v51 = vld [vmem:[#allocation8_spill] sm:$0xff] }
 0x429   : > { %v5218_v41 = vadd.f32 %v7836_v31, %v5090_v21  ;;  %v5091_v40 = vsel %vm4963_vm14, %v4899_v2, %v5027_v44  ;;  %v5740_v54 = vadd.f32 %v4696_v20, %v7669_v10  ;;  %v4698_v25 = vpop.f32.mrb[21].mxu1  ;;  %v8452_v44 = vld [vmem:[#allocation46_spill] sm:$0xff] }
 0x42a   : > { %v5219_v19 = vadd.f32 %v7839_v49, %v5091_v40  ;;  %v5092_v4 = vsel %vm4964_vm15, %v4900_v42, %v5028_v43  ;;  %v5741_v17 = vadd.f32 %v4698_v25, %v7671_v62  ;;  %v4700_v56 = vpop.f32.mrb[22].mxu1  ;;  %5281 = vst [vmem:[%s7975_s11 + $0x80] sm:$0xff] %v5217_v48  ;;  %v8453_v43 = vld [vmem:[#allocation9_spill] sm:$0xff]  ;;  %v8454_v40 = vld [vmem:[#allocation47_spill] sm:$0xff] }
 0x42b   : > { %v5220_v57 = vadd.f32 %v7842_v52, %v5092_v4  ;;  %v4901_v32 = vadd.f32 %v5740_v54, %v7763_v58  ;;  %v5742_v24 = vadd.f32 %v4700_v56, %v7674_v5  ;;  %v4702_v31 = vpop.f32.mrb[23].mxu1  ;;  %5282 = vst [vmem:[%s7975_s11 + $0x88] sm:$0xff] %v5218_v41 }
 0x42c   : > { %v4902_v22 = vadd.f32 %v5741_v17, %v7765_v45  ;;  %v5743_v10 = vadd.f32 %v4702_v31, %v7676_v36  ;;  %5283 = vst [vmem:[%s7975_s11 + $0x90] sm:$0xff] %v5219_v19  ;;  %v8455_v19 = vld [vmem:[#allocation10_spill] sm:$0xff] }
 0x42d   : > { %vm4965_vm0 = vcmp.gt.f32.partialorder %v4901_v32, 0.0  ;;  %v5029_v49 = vmul.f32 0.01, %v4901_v32  ;;  %v4903_v63 = vadd.f32 %v5742_v24, %v7763_v58  ;;  %5284 = vst [vmem:[%s7975_s11 + $0x98] sm:$0xff] %v5220_v57  ;;  %v8456_v57 = vld [vmem:[#allocation11_spill] sm:$0xff] }
 0x42e   : > { %vm4966_vm1 = vcmp.gt.f32.partialorder %v4902_v22, 0.0  ;;  %v5030_v62 = vmul.f32 0.01, %v4902_v22  ;;  %v4904_v52 = vadd.f32 %v5743_v10, %v7765_v45 }
 0x42f   : > { %v5093_v1 = vsel %vm4965_vm0, %v4901_v32, %v5029_v49  ;;  %vm4967_vm3 = vcmp.gt.f32.partialorder %v4903_v63, 0.0  ;;  %v5031_v5 = vmul.f32 0.01, %v4903_v63 }
 0x430   : > { %v5221_v30 = vadd.f32 %v7845_v26, %v5093_v1  ;;  %v5094_v60 = vsel %vm4966_vm1, %v4902_v22, %v5030_v62  ;;  %vm4968_vm5 = vcmp.gt.f32.partialorder %v4904_v52, 0.0  ;;  %v5032_v36 = vmul.f32 0.01, %v4904_v52  ;;  %v4706_v39 = vpop.f32.mrb[24].mxu1  ;;  %v8457_v62 = vld [vmem:[#allocation48_spill] sm:$0xff] }
 0x431   : > { %v5222_v8 = vadd.f32 %v7848_v11, %v5094_v60  ;;  %v5095_v15 = vsel %vm4967_vm3, %v4903_v63, %v5031_v5  ;;  %v5744_v47 = vadd.f32 %v4706_v39, %v7678_v0  ;;  %v4708_v38 = vpop.f32.mrb[25].mxu1  ;;  %v8448_v0 = vld [vmem:[#allocation7_spill] sm:$0xff]  ;;  %v8458_v60 = vld [vmem:[#allocation49_spill] sm:$0xff] }
 0x432   : > { %v5223_v59 = vadd.f32 %v7851_v27, %v5095_v15  ;;  %v5096_v28 = vsel %vm4968_vm5, %v4904_v52, %v5032_v36  ;;  %v5745_v3 = vadd.f32 %v4708_v38, %v7680_v53  ;;  %v4710_v18 = vpop.f32.mrb[26].mxu1  ;;  %5285 = vst [vmem:[%s7975_s11 + $0xa0] sm:$0xff] %v5221_v30  ;;  %v8460_v38 = vld [vmem:[#allocation50_spill] sm:$0xff] }
 0x433   : > { %v5224_v26 = vadd.f32 %v7854_v6, %v5096_v28  ;;  %v4905_v9 = vadd.f32 %v5744_v47, %v7763_v58  ;;  %v5746_v46 = vadd.f32 %v4710_v18, %v8447_v55  ;;  %v4712_v11 = vpop.f32.mrb[27].mxu1  ;;  %5286 = vst [vmem:[%s7975_s11 + $0xa8] sm:$0xff] %v5222_v8  ;;  %v8459_v8 = vld [vmem:[#allocation12_spill] sm:$0xff] }
 0x434   : > { %v4906_v12 = vadd.f32 %v5745_v3, %v7765_v45  ;;  %v5747_v34 = vadd.f32 %v4712_v11, %v8448_v0  ;;  %5287 = vst [vmem:[%s7975_s11 + $0xb0] sm:$0xff] %v5223_v59  ;;  %v8461_v3 = vld [vmem:[#allocation13_spill] sm:$0xff]  ;;  %v8463_v11 = vld [vmem:[#allocation14_spill] sm:$0xff] }
 0x435   : > { %vm4969_vm6 = vcmp.gt.f32.partialorder %v4905_v9, 0.0  ;;  %v5033_v27 = vmul.f32 0.01, %v4905_v9  ;;  %v4907_v14 = vadd.f32 %v5746_v46, %v7763_v58  ;;  %5288 = vst [vmem:[%s7975_s11 + $0xb8] sm:$0xff] %v5224_v26 }
 0x436   : > { %vm4970_vm7 = vcmp.gt.f32.partialorder %v4906_v12, 0.0  ;;  %v5034_v53 = vmul.f32 0.01, %v4906_v12  ;;  %v4908_v6 = vadd.f32 %v5747_v34, %v7765_v45 }
 0x437   : > { %v5097_v13 = vsel %vm4969_vm6, %v4905_v9, %v5033_v27  ;;  %vm4971_vm8 = vcmp.gt.f32.partialorder %v4907_v14, 0.0  ;;  %v5035_v29 = vmul.f32 0.01, %v4907_v14  ;;  %v8462_v9 = vld [vmem:[#allocation51_spill] sm:$0xff] }
 0x438   : > { %v5225_v23 = vadd.f32 %v8449_v16, %v5097_v13  ;;  %v5098_v50 = vsel %vm4970_vm7, %v4906_v12, %v5034_v53  ;;  %vm4972_vm9 = vcmp.gt.f32.partialorder %v4908_v6, 0.0  ;;  %v5036_v33 = vmul.f32 0.01, %v4908_v6  ;;  %v4716_v37 = vpop.f32.mrb[28].mxu1  ;;  %v8464_v27 = vld [vmem:[#allocation15_spill] sm:$0xff] }
 0x439   : > { %v5226_v35 = vadd.f32 %v8450_v7, %v5098_v50  ;;  %v5099_v2 = vsel %vm4971_vm8, %v4907_v14, %v5035_v29  ;;  %v5748_v42 = vadd.f32 %v4716_v37, %v8451_v51  ;;  %v4718_v61 = vpop.f32.mrb[29].mxu1  ;;  %v8465_v50 = vld [vmem:[#allocation52_spill] sm:$0xff] }
 0x43a   : > { %v5227_v48 = vadd.f32 %v8452_v44, %v5099_v2  ;;  %v5100_v21 = vsel %vm4972_vm9, %v4908_v6, %v5036_v33  ;;  %v5749_v20 = vadd.f32 %v4718_v61, %v8453_v43  ;;  %v4720_v41 = vpop.f32.mrb[30].mxu1  ;;  %5289 = vst [vmem:[%s7975_s11 + $0xc0] sm:$0xff] %v5225_v23  ;;  %v8466_v2 = vld [vmem:[#allocation53_spill] sm:$0xff]  ;;  %v8467_v61 = vld [vmem:[#allocation16_spill] sm:$0xff] }
 0x43b   : > { %v5228_v54 = vadd.f32 %v8454_v40, %v5100_v21  ;;  %v4909_v25 = vadd.f32 %v5748_v42, %v7763_v58  ;;  %v5750_v4 = vadd.f32 %v4720_v41, %v8455_v19  ;;  %v4722_v17 = vpop.f32.mrb[31].mxu1  ;;  %5290 = vst [vmem:[%s7975_s11 + $0xc8] sm:$0xff] %v5226_v35  ;;  %v8468_v21 = vld [vmem:[#allocation54_spill] sm:$0xff]  ;;  %v8469_v41 = vld [vmem:[#allocation17_spill] sm:$0xff] }
 0x43c   : > { %v4910_v56 = vadd.f32 %v5749_v20, %v7765_v45  ;;  %v5751_v32 = vadd.f32 %v4722_v17, %v8456_v57  ;;  %5291 = vst [vmem:[%s7975_s11 + $0xd0] sm:$0xff] %v5227_v48  ;;  %v8471_v17 = vld [vmem:[#allocation18_spill] sm:$0xff] }
 0x43d   : > { %vm4973_vm10 = vcmp.gt.f32.partialorder %v4909_v25, 0.0  ;;  %v5037_v24 = vmul.f32 0.01, %v4909_v25  ;;  %v4911_v31 = vadd.f32 %v5750_v4, %v7763_v58  ;;  %5292 = vst [vmem:[%s7975_s11 + $0xd8] sm:$0xff] %v5228_v54 }
 0x43e   : > { %vm4974_vm11 = vcmp.gt.f32.partialorder %v4910_v56, 0.0  ;;  %v5038_v22 = vmul.f32 0.01, %v4910_v56  ;;  %v4912_v10 = vadd.f32 %v5751_v32, %v7765_v45 }
 0x43f   : > { %v5101_v49 = vsel %vm4973_vm10, %v4909_v25, %v5037_v24  ;;  %vm4975_vm2 = vcmp.gt.f32.partialorder %v4911_v31, 0.0  ;;  %v5039_v63 = vmul.f32 0.01, %v4911_v31  ;;  %v8470_v25 = vld [vmem:[#allocation55_spill] sm:$0xff] }
 0x440   : > { %v5229_v52 = vadd.f32 %v8457_v62, %v5101_v49  ;;  %v5102_v1 = vsel %vm4974_vm11, %v4910_v56, %v5038_v22  ;;  %vm4976_vm4 = vcmp.gt.f32.partialorder %v4912_v10, 0.0  ;;  %v5040_v5 = vmul.f32 0.01, %v4912_v10  ;;  %v4726_v30 = vpop.f32.mrb[32].mxu1  ;;  %v8472_v24 = vld [vmem:[#allocation19_spill] sm:$0xff] }
 0x441   : > { %v5230_v36 = vadd.f32 %v8458_v60, %v5102_v1  ;;  %v5103_v39 = vsel %vm4975_vm2, %v4911_v31, %v5039_v63  ;;  %v5752_v15 = vadd.f32 %v4726_v30, %v8459_v8  ;;  %v4728_v47 = vpop.f32.mrb[33].mxu1  ;;  %v8473_v1 = vld [vmem:[#allocation56_spill] sm:$0xff] }
 0x442   : > { %v5231_v59 = vadd.f32 %v8460_v38, %v5103_v39  ;;  %v5104_v28 = vsel %vm4976_vm4, %v4912_v10, %v5040_v5  ;;  %v5753_v18 = vadd.f32 %v4728_v47, %v8461_v3  ;;  %v4730_v26 = vpop.f32.mrb[34].mxu1  ;;  %5293 = vst [vmem:[%s7975_s11 + $0xe0] sm:$0xff] %v5229_v52  ;;  %v8474_v39 = vld [vmem:[#allocation57_spill] sm:$0xff]  ;;  %v8475_v47 = vld [vmem:[#allocation20_spill] sm:$0xff] }
 0x443   : > { %v5232_v55 = vadd.f32 %v8462_v9, %v5104_v28  ;;  %v4913_v46 = vadd.f32 %v5752_v15, %v7763_v58  ;;  %v5754_v12 = vadd.f32 %v4730_v26, %v8463_v11  ;;  %v4732_v0 = vpop.f32.mrb[35].mxu1  ;;  %5294 = vst [vmem:[%s7975_s11 + $0xe8] sm:$0xff] %v5230_v36  ;;  %v8476_v28 = vld [vmem:[#allocation58_spill] sm:$0xff]  ;;  %v8477_v26 = vld [vmem:[#allocation21_spill] sm:$0xff] }
 0x444   : > { %v4914_v34 = vadd.f32 %v5753_v18, %v7765_v45  ;;  %v5755_v14 = vadd.f32 %v4732_v0, %v8464_v27  ;;  %5295 = vst [vmem:[%s7975_s11 + $0xf0] sm:$0xff] %v5231_v59  ;;  %v8479_v0 = vld [vmem:[#allocation22_spill] sm:$0xff] }
 0x445   : > { %vm4977_vm12 = vcmp.gt.f32.partialorder %v4913_v46, 0.0  ;;  %v5041_v53 = vmul.f32 0.01, %v4913_v46  ;;  %v4915_v6 = vadd.f32 %v5754_v12, %v7763_v58  ;;  %5296 = vst [vmem:[%s7975_s11 + $0xf8] sm:$0xff] %v5232_v55 }
 0x446   : > { %vm4978_vm13 = vcmp.gt.f32.partialorder %v4914_v34, 0.0  ;;  %v5042_v13 = vmul.f32 0.01, %v4914_v34  ;;  %v4916_v29 = vadd.f32 %v5755_v14, %v7765_v45 }
 0x447   : > { %v5105_v16 = vsel %vm4977_vm12, %v4913_v46, %v5041_v53  ;;  %vm4979_vm14 = vcmp.gt.f32.partialorder %v4915_v6, 0.0  ;;  %v5043_v23 = vmul.f32 0.01, %v4915_v6  ;;  %v8478_v46 = vld [vmem:[#allocation59_spill] sm:$0xff] }
 0x448   : > { %v5233_v33 = vadd.f32 %v8465_v50, %v5105_v16  ;;  %v5106_v37 = vsel %vm4978_vm13, %v4914_v34, %v5042_v13  ;;  %vm4980_vm15 = vcmp.gt.f32.partialorder %v4916_v29, 0.0  ;;  %v5044_v7 = vmul.f32 0.01, %v4916_v29  ;;  %v4736_v35 = vpop.f32.mrb[36].mxu1  ;;  %v8480_v53 = vld [vmem:[#allocation23_spill] sm:$0xff] }
 0x449   : > { %v5234_v51 = vadd.f32 %v8466_v2, %v5106_v37  ;;  %v5107_v42 = vsel %vm4979_vm14, %v4915_v6, %v5043_v23  ;;  %v5756_v44 = vadd.f32 %v4736_v35, %v8467_v61  ;;  %v4738_v48 = vpop.f32.mrb[37].mxu1  ;;  %v8481_v37 = vld [vmem:[#allocation60_spill] sm:$0xff] }
 0x44a   : > { %v5235_v43 = vadd.f32 %v8468_v21, %v5107_v42  ;;  %v5108_v20 = vsel %vm4980_vm15, %v4916_v29, %v5044_v7  ;;  %v5757_v40 = vadd.f32 %v4738_v48, %v8469_v41  ;;  %v4740_v54 = vpop.f32.mrb[38].mxu1  ;;  %5297 = vst [vmem:[%s7975_s11 + $0x100] sm:$0xff] %v5233_v33  ;;  %v8482_v42 = vld [vmem:[#allocation61_spill] sm:$0xff]  ;;  %v8483_v48 = vld [vmem:[#allocation24_spill] sm:$0xff] }
 0x44b   : > { %v5236_v19 = vadd.f32 %v8470_v25, %v5108_v20  ;;  %v4917_v4 = vadd.f32 %v5756_v44, %v7763_v58  ;;  %v5758_v56 = vadd.f32 %v4740_v54, %v8471_v17  ;;  %v4742_v57 = vpop.f32.mrb[39].mxu1  ;;  %5298 = vst [vmem:[%s7975_s11 + $0x108] sm:$0xff] %v5234_v51  ;;  %v8484_v20 = vld [vmem:[#allocation62_spill] sm:$0xff]  ;;  %v8485_v54 = vld [vmem:[#allocation25_spill] sm:$0xff] }
 0x44c   : > { %v4918_v32 = vadd.f32 %v5757_v40, %v7765_v45  ;;  %v5759_v31 = vadd.f32 %v4742_v57, %v8472_v24  ;;  %5299 = vst [vmem:[%s7975_s11 + $0x110] sm:$0xff] %v5235_v43  ;;  %v8487_v57 = vld [vmem:[#allocation26_spill] sm:$0xff] }
 0x44d   : > { %vm4981_vm0 = vcmp.gt.f32.partialorder %v4917_v4, 0.0  ;;  %v5045_v22 = vmul.f32 0.01, %v4917_v4  ;;  %v4919_v10 = vadd.f32 %v5758_v56, %v7763_v58  ;;  %5300 = vst [vmem:[%s7975_s11 + $0x118] sm:$0xff] %v5236_v19 }
 0x44e   : > { %vm4982_vm1 = vcmp.gt.f32.partialorder %v4918_v32, 0.0  ;;  %v5046_v49 = vmul.f32 0.01, %v4918_v32  ;;  %v4920_v63 = vadd.f32 %v5759_v31, %v7765_v45 }
 0x44f   : > { %v5109_v62 = vsel %vm4981_vm0, %v4917_v4, %v5045_v22  ;;  %vm4983_vm3 = vcmp.gt.f32.partialorder %v4919_v10, 0.0  ;;  %v5047_v52 = vmul.f32 0.01, %v4919_v10  ;;  %v8486_v4 = vld [vmem:[#allocation63_spill] sm:$0xff] }
 0x450   : > { %v5237_v5 = vadd.f32 %v8473_v1, %v5109_v62  ;;  %v5110_v30 = vsel %vm4982_vm1, %v4918_v32, %v5046_v49  ;;  %vm4984_vm5 = vcmp.gt.f32.partialorder %v4920_v63, 0.0  ;;  %v5048_v60 = vmul.f32 0.01, %v4920_v63  ;;  %v4746_v36 = vpop.f32.mrb[40].mxu1  ;;  %v8488_v22 = vld [vmem:[#allocation27_spill] sm:$0xff] }
 0x451   : > { %v5238_v8 = vadd.f32 %v8474_v39, %v5110_v30  ;;  %v5111_v15 = vsel %vm4983_vm3, %v4919_v10, %v5047_v52  ;;  %v5760_v38 = vadd.f32 %v4746_v36, %v8475_v47  ;;  %v4748_v59 = vpop.f32.mrb[41].mxu1  ;;  %v8489_v30 = vld [vmem:[#allocation64_spill] sm:$0xff] }
 0x452   : > { %v5239_v3 = vadd.f32 %v8476_v28, %v5111_v15  ;;  %v5112_v18 = vsel %vm4984_vm5, %v4920_v63, %v5048_v60  ;;  %v5761_v9 = vadd.f32 %v4748_v59, %v8477_v26  ;;  %v4750_v55 = vpop.f32.mrb[42].mxu1  ;;  %5301 = vst [vmem:[%s7975_s11 + $0x120] sm:$0xff] %v5237_v5  ;;  %v8490_v15 = vld [vmem:[#allocation65_spill] sm:$0xff]  ;;  %v8491_v59 = vld [vmem:[#allocation28_spill] sm:$0xff] }
 0x453   : > { %v5240_v11 = vadd.f32 %v8478_v46, %v5112_v18  ;;  %v4921_v12 = vadd.f32 %v5760_v38, %v7763_v58  ;;  %v5762_v34 = vadd.f32 %v4750_v55, %v8479_v0  ;;  %v4752_v27 = vpop.f32.mrb[43].mxu1  ;;  %5302 = vst [vmem:[%s7975_s11 + $0x128] sm:$0xff] %v5238_v8  ;;  %v8492_v18 = vld [vmem:[#allocation66_spill] sm:$0xff]  ;;  %v8493_v55 = vld [vmem:[#allocation29_spill] sm:$0xff] }
 0x454   : > { %v4922_v14 = vadd.f32 %v5761_v9, %v7765_v45  ;;  %v5763_v6 = vadd.f32 %v4752_v27, %v8480_v53  ;;  %5303 = vst [vmem:[%s7975_s11 + $0x130] sm:$0xff] %v5239_v3  ;;  %v8495_v27 = vld [vmem:[#allocation30_spill] sm:$0xff] }
 0x455   : > { %vm4985_vm6 = vcmp.gt.f32.partialorder %v4921_v12, 0.0  ;;  %v5049_v13 = vmul.f32 0.01, %v4921_v12  ;;  %v4923_v29 = vadd.f32 %v5762_v34, %v7763_v58  ;;  %5304 = vst [vmem:[%s7975_s11 + $0x138] sm:$0xff] %v5240_v11 }
 0x456   : > { %vm4986_vm7 = vcmp.gt.f32.partialorder %v4922_v14, 0.0  ;;  %v5050_v16 = vmul.f32 0.01, %v4922_v14  ;;  %v4924_v23 = vadd.f32 %v5763_v6, %v7765_v45 }
 0x457   : > { %v5113_v50 = vsel %vm4985_vm6, %v4921_v12, %v5049_v13  ;;  %vm4987_vm8 = vcmp.gt.f32.partialorder %v4923_v29, 0.0  ;;  %v5051_v33 = vmul.f32 0.01, %v4923_v29  ;;  %v8494_v12 = vld [vmem:[#allocation67_spill] sm:$0xff] }
 0x458   : > { %v5241_v7 = vadd.f32 %v8481_v37, %v5113_v50  ;;  %v5114_v35 = vsel %vm4986_vm7, %v4922_v14, %v5050_v16  ;;  %vm4988_vm9 = vcmp.gt.f32.partialorder %v4924_v23, 0.0  ;;  %v5052_v2 = vmul.f32 0.01, %v4924_v23  ;;  %v4756_v51 = vpop.f32.mrb[44].mxu1  ;;  %v8496_v13 = vld [vmem:[#allocation31_spill] sm:$0xff] }
 0x459   : > { %v5242_v61 = vadd.f32 %v8482_v42, %v5114_v35  ;;  %v5115_v44 = vsel %vm4987_vm8, %v4923_v29, %v5051_v33  ;;  %v5764_v21 = vadd.f32 %v4756_v51, %v8483_v48  ;;  %v4758_v43 = vpop.f32.mrb[45].mxu1  ;;  %v8497_v35 = vld [vmem:[#allocation68_spill] sm:$0xff] }
 0x45a   : > { %v5243_v41 = vadd.f32 %v8484_v20, %v5115_v44  ;;  %v5116_v40 = vsel %vm4988_vm9, %v4924_v23, %v5052_v2  ;;  %v5765_v25 = vadd.f32 %v4758_v43, %v8485_v54  ;;  %v4760_v19 = vpop.f32.mrb[46].mxu1  ;;  %5305 = vst [vmem:[%s7975_s11 + $0x140] sm:$0xff] %v5241_v7  ;;  %v8498_v44 = vld [vmem:[#allocation69_spill] sm:$0xff]  ;;  %v8499_v43 = vld [vmem:[#allocation32_spill] sm:$0xff] }
 0x45b   : > { %v5244_v17 = vadd.f32 %v8486_v4, %v5116_v40  ;;  %v4925_v56 = vadd.f32 %v5764_v21, %v7763_v58  ;;  %v5766_v32 = vadd.f32 %v4760_v19, %v8487_v57  ;;  %v4762_v24 = vpop.f32.mrb[47].mxu1  ;;  %5306 = vst [vmem:[%s7975_s11 + $0x148] sm:$0xff] %v5242_v61  ;;  %v8500_v40 = vld [vmem:[#allocation70_spill] sm:$0xff]  ;;  %v8501_v19 = vld [vmem:[#allocation33_spill] sm:$0xff] }
 0x45c   : > { %v4926_v31 = vadd.f32 %v5765_v25, %v7765_v45  ;;  %v5767_v10 = vadd.f32 %v4762_v24, %v8488_v22  ;;  %5307 = vst [vmem:[%s7975_s11 + $0x150] sm:$0xff] %v5243_v41  ;;  %v8503_v24 = vld [vmem:[#allocation34_spill] sm:$0xff] }
 0x45d   : > { %vm4989_vm10 = vcmp.gt.f32.partialorder %v4925_v56, 0.0  ;;  %v5053_v49 = vmul.f32 0.01, %v4925_v56  ;;  %v4927_v63 = vadd.f32 %v5766_v32, %v7763_v58  ;;  %5308 = vst [vmem:[%s7975_s11 + $0x158] sm:$0xff] %v5244_v17 }
 0x45e   : > { %vm4990_vm11 = vcmp.gt.f32.partialorder %v4926_v31, 0.0  ;;  %v5054_v62 = vmul.f32 0.01, %v4926_v31  ;;  %v4928_v52 = vadd.f32 %v5767_v10, %v7765_v45 }
 0x45f   : > { %v5117_v1 = vsel %vm4989_vm10, %v4925_v56, %v5053_v49  ;;  %vm4991_vm2 = vcmp.gt.f32.partialorder %v4927_v63, 0.0  ;;  %v5055_v5 = vmul.f32 0.01, %v4927_v63  ;;  %v8502_v56 = vld [vmem:[#allocation71_spill] sm:$0xff] }
 0x460   : > { %v5245_v60 = vadd.f32 %v8489_v30, %v5117_v1  ;;  %v5118_v36 = vsel %vm4990_vm11, %v4926_v31, %v5054_v62  ;;  %vm4992_vm4 = vcmp.gt.f32.partialorder %v4928_v52, 0.0  ;;  %v5056_v39 = vmul.f32 0.01, %v4928_v52  ;;  %v4766_v8 = vpop.f32.mrb[48].mxu1  ;;  %v8504_v49 = vld [vmem:[#allocation35_spill] sm:$0xff] }
 0x461   : > { %v5246_v47 = vadd.f32 %v8490_v15, %v5118_v36  ;;  %v5119_v38 = vsel %vm4991_vm2, %v4927_v63, %v5055_v5  ;;  %v5768_v28 = vadd.f32 %v4766_v8, %v8491_v59  ;;  %v4768_v3 = vpop.f32.mrb[49].mxu1  ;;  %v8505_v36 = vld [vmem:[#allocation72_spill] sm:$0xff] }
 0x462   : > { %v5247_v26 = vadd.f32 %v8492_v18, %v5119_v38  ;;  %v5120_v9 = vsel %vm4992_vm4, %v4928_v52, %v5056_v39  ;;  %v5769_v46 = vadd.f32 %v4768_v3, %v8493_v55  ;;  %v4770_v11 = vpop.f32.mrb[50].mxu1  ;;  %5309 = vst [vmem:[%s7975_s11 + $0x160] sm:$0xff] %v5245_v60  ;;  %v8506_v38 = vld [vmem:[#allocation73_spill] sm:$0xff]  ;;  %v8507_v3 = vld [vmem:[#allocation36_spill] sm:$0xff] }
 0x463   : > { %v5248_v0 = vadd.f32 %v8494_v12, %v5120_v9  ;;  %v4929_v34 = vadd.f32 %v5768_v28, %v7763_v58  ;;  %v5770_v14 = vadd.f32 %v4770_v11, %v8495_v27  ;;  %v4772_v53 = vpop.f32.mrb[51].mxu1  ;;  %5310 = vst [vmem:[%s7975_s11 + $0x168] sm:$0xff] %v5246_v47  ;;  %v8508_v9 = vld [vmem:[#allocation74_spill] sm:$0xff]  ;;  %v8509_v11 = vld [vmem:[#allocation37_spill] sm:$0xff] }
 0x464   : > { %v4930_v6 = vadd.f32 %v5769_v46, %v7765_v45  ;;  %v5771_v29 = vadd.f32 %v4772_v53, %v8496_v13  ;;  %5311 = vst [vmem:[%s7975_s11 + $0x170] sm:$0xff] %v5247_v26  ;;  %v8511_v53 = vld [vmem:[#allocation38_spill] sm:$0xff] }
 0x465   : > { %vm4993_vm12 = vcmp.gt.f32.partialorder %v4929_v34, 0.0  ;;  %v5057_v16 = vmul.f32 0.01, %v4929_v34  ;;  %v4931_v23 = vadd.f32 %v5770_v14, %v7763_v58  ;;  %5312 = vst [vmem:[%s7975_s11 + $0x178] sm:$0xff] %v5248_v0 }
 0x466   : > { %vm4994_vm13 = vcmp.gt.f32.partialorder %v4930_v6, 0.0  ;;  %v5058_v50 = vmul.f32 0.01, %v4930_v6  ;;  %v4932_v33 = vadd.f32 %v5771_v29, %v7765_v45 }
 0x467   : > { %v5121_v37 = vsel %vm4993_vm12, %v4929_v34, %v5057_v16  ;;  %vm4995_vm14 = vcmp.gt.f32.partialorder %v4931_v23, 0.0  ;;  %v5059_v7 = vmul.f32 0.01, %v4931_v23  ;;  %v8510_v34 = vld [vmem:[#allocation75_spill] sm:$0xff] }
 0x468   : > { %v5249_v2 = vadd.f32 %v8497_v35, %v5121_v37  ;;  %v5122_v51 = vsel %vm4994_vm13, %v4930_v6, %v5058_v50  ;;  %vm4996_vm15 = vcmp.gt.f32.partialorder %v4932_v33, 0.0  ;;  %v5060_v42 = vmul.f32 0.01, %v4932_v33  ;;  %v4776_v61 = vpop.f32.mrb[52].mxu1  ;;  %v8512_v16 = vld [vmem:[#allocation39_spill] sm:$0xff] }
 0x469   : > { %v5250_v48 = vadd.f32 %v8498_v44, %v5122_v51  ;;  %v5123_v21 = vsel %vm4995_vm14, %v4931_v23, %v5059_v7  ;;  %v5772_v20 = vadd.f32 %v4776_v61, %v8499_v43  ;;  %v4778_v41 = vpop.f32.mrb[53].mxu1  ;;  %v8513_v51 = vld [vmem:[#allocation76_spill] sm:$0xff] }
 0x46a   : > { %v5251_v54 = vadd.f32 %v8500_v40, %v5123_v21  ;;  %v5124_v25 = vsel %vm4996_vm15, %v4932_v33, %v5060_v42  ;;  %v5773_v4 = vadd.f32 %v4778_v41, %v8501_v19  ;;  %v4780_v17 = vpop.f32.mrb[54].mxu1  ;;  %5313 = vst [vmem:[%s7975_s11 + $0x180] sm:$0xff] %v5249_v2  ;;  %v8514_v21 = vld [vmem:[#allocation77_spill] sm:$0xff]  ;;  %v8515_v41 = vld [vmem:[#allocation40_spill] sm:$0xff] }
 0x46b   : > { %v5252_v57 = vadd.f32 %v8502_v56, %v5124_v25  ;;  %v4933_v32 = vadd.f32 %v5772_v20, %v7763_v58  ;;  %v5774_v31 = vadd.f32 %v4780_v17, %v8503_v24  ;;  %v4782_v22 = vpop.f32.mrb[55].mxu1  ;;  %5314 = vst [vmem:[%s7975_s11 + $0x188] sm:$0xff] %v5250_v48  ;;  %v8516_v25 = vld [vmem:[#allocation78_spill] sm:$0xff]  ;;  %v8517_v17 = vld [vmem:[#allocation41_spill] sm:$0xff] }
 0x46c   : > { %v4934_v10 = vadd.f32 %v5773_v4, %v7765_v45  ;;  %v5775_v63 = vadd.f32 %v4782_v22, %v8504_v49  ;;  %5315 = vst [vmem:[%s7975_s11 + $0x190] sm:$0xff] %v5251_v54  ;;  %v8519_v22 = vld [vmem:[#allocation42_spill] sm:$0xff] }
 0x46d   : > { %vm4997_vm0 = vcmp.gt.f32.partialorder %v4933_v32, 0.0  ;;  %v5061_v62 = vmul.f32 0.01, %v4933_v32  ;;  %v4935_v52 = vadd.f32 %v5774_v31, %v7763_v58  ;;  %5316 = vst [vmem:[%s7975_s11 + $0x198] sm:$0xff] %v5252_v57 }
 0x46e   : > { %vm4998_vm1 = vcmp.gt.f32.partialorder %v4934_v10, 0.0  ;;  %v5062_v1 = vmul.f32 0.01, %v4934_v10  ;;  %v4936_v5 = vadd.f32 %v5775_v63, %v7765_v45 }
 0x46f   : > { %v5125_v30 = vsel %vm4997_vm0, %v4933_v32, %v5061_v62  ;;  %vm4999_vm3 = vcmp.gt.f32.partialorder %v4935_v52, 0.0  ;;  %v5063_v60 = vmul.f32 0.01, %v4935_v52  ;;  %v8518_v32 = vld [vmem:[#allocation79_spill] sm:$0xff] }
 0x470   : > { %v5253_v39 = vadd.f32 %v8505_v36, %v5125_v30  ;;  %v5126_v8 = vsel %vm4998_vm1, %v4934_v10, %v5062_v1  ;;  %vm5000_vm5 = vcmp.gt.f32.partialorder %v4936_v5, 0.0  ;;  %v5064_v15 = vmul.f32 0.01, %v4936_v5  ;;  %v4786_v47 = vpop.f32.mrb[56].mxu1  ;;  %v8520_v62 = vld [vmem:[#allocation43_spill] sm:$0xff] }
 0x471   : > { %v5254_v59 = vadd.f32 %v8506_v38, %v5126_v8  ;;  %v5127_v28 = vsel %vm4999_vm3, %v4935_v52, %v5063_v60  ;;  %v5776_v18 = vadd.f32 %v4786_v47, %v8507_v3  ;;  %v4788_v26 = vpop.f32.mrb[57].mxu1  ;;  %v8521_v8 = vld [vmem:[#allocation80_spill] sm:$0xff]  ;;  %v8523_v3 = vld [vmem:[#allocation82_spill] sm:$0xff] }
 0x472   : > { %v5255_v55 = vadd.f32 %v8508_v9, %v5127_v28  ;;  %v5128_v46 = vsel %vm5000_vm5, %v4936_v5, %v5064_v15  ;;  %v5777_v12 = vadd.f32 %v4788_v26, %v8509_v11  ;;  %v4790_v0 = vpop.f32.mrb[58].mxu1  ;;  %5317 = vst [vmem:[%s7975_s11 + $0x1a0] sm:$0xff] %v5253_v39  ;;  %v8524_v9 = vld [vmem:[#allocation83_spill] sm:$0xff] }
 0x473   : > { %v5256_v27 = vadd.f32 %v8510_v34, %v5128_v46  ;;  %v4937_v14 = vadd.f32 %v5776_v18, %v7763_v58  ;;  %v5778_v6 = vadd.f32 %v4790_v0, %v8511_v53  ;;  %v4792_v13 = vpop.f32.mrb[59].mxu1  ;;  %5318 = vst [vmem:[%s7975_s11 + $0x1a8] sm:$0xff] %v5254_v59  ;;  %v8522_v59 = vld [vmem:[#allocation81_spill] sm:$0xff] }
 0x474   : > { %v4938_v29 = vadd.f32 %v5777_v12, %v7765_v45  ;;  %v5779_v23 = vadd.f32 %v4792_v13, %v8512_v16  ;;  %5319 = vst [vmem:[%s7975_s11 + $0x1b0] sm:$0xff] %v5255_v55 }
 0x475   : > { %vm5001_vm6 = vcmp.gt.f32.partialorder %v4937_v14, 0.0  ;;  %v5065_v50 = vmul.f32 0.01, %v4937_v14  ;;  %v4939_v33 = vadd.f32 %v5778_v6, %v7763_v58  ;;  %5320 = vst [vmem:[%s7975_s11 + $0x1b8] sm:$0xff] %v5256_v27 }
 0x476   : > { %vm5002_vm7 = vcmp.gt.f32.partialorder %v4938_v29, 0.0  ;;  %v5066_v37 = vmul.f32 0.01, %v4938_v29  ;;  %v4940_v7 = vadd.f32 %v5779_v23, %v7765_v45 }
 0x477   : > { %v5129_v35 = vsel %vm5001_vm6, %v4937_v14, %v5065_v50  ;;  %vm5003_vm8 = vcmp.gt.f32.partialorder %v4939_v33, 0.0  ;;  %v5067_v2 = vmul.f32 0.01, %v4939_v33 }
 0x478   : > { %v5257_v42 = vadd.f32 %v8513_v51, %v5129_v35  ;;  %v5130_v61 = vsel %vm5002_vm7, %v4938_v29, %v5066_v37  ;;  %vm5004_vm9 = vcmp.gt.f32.partialorder %v4940_v7, 0.0  ;;  %v5068_v44 = vmul.f32 0.01, %v4940_v7  ;;  %v4796_v48 = vpop.f32.mrb[60].mxu1 }
 0x479   : > { %v5258_v43 = vadd.f32 %v8514_v21, %v5130_v61  ;;  %v5131_v20 = vsel %vm5003_vm8, %v4939_v33, %v5067_v2  ;;  %v5780_v40 = vadd.f32 %v4796_v48, %v8515_v41  ;;  %v4798_v54 = vpop.f32.mrb[61].mxu1 }
 0x47a   : > { %v5259_v19 = vadd.f32 %v8516_v25, %v5131_v20  ;;  %v5132_v4 = vsel %vm5004_vm9, %v4940_v7, %v5068_v44  ;;  %v5781_v56 = vadd.f32 %v4798_v54, %v8517_v17  ;;  %v4800_v57 = vpop.f32.mrb[62].mxu1  ;;  %5321 = vst [vmem:[%s7975_s11 + $0x1c0] sm:$0xff] %v5257_v42 }
 0x47b   : > { %v5260_v24 = vadd.f32 %v8518_v32, %v5132_v4  ;;  %v4941_v31 = vadd.f32 %v5780_v40, %v7763_v58  ;;  %v5782_v10 = vadd.f32 %v4800_v57, %v8519_v22  ;;  %v4802_v49 = vpop.f32.mrb[63].mxu1  ;;  %5322 = vst [vmem:[%s7975_s11 + $0x1c8] sm:$0xff] %v5258_v43 }
 0x47c   : > { %v4942_v63 = vadd.f32 %v5781_v56, %v7765_v45  ;;  %v5783_v52 = vadd.f32 %v4802_v49, %v8520_v62  ;;  %5323 = vst [vmem:[%s7975_s11 + $0x1d0] sm:$0xff] %v5259_v19 }
 0x47d   : > { %vm5005_vm10 = vcmp.gt.f32.partialorder %v4941_v31, 0.0  ;;  %v5069_v1 = vmul.f32 0.01, %v4941_v31  ;;  %v4943_v5 = vadd.f32 %v5782_v10, %v7763_v58  ;;  %5324 = vst [vmem:[%s7975_s11 + $0x1d8] sm:$0xff] %v5260_v24 }
 0x47e   : > { %vm5006_vm11 = vcmp.gt.f32.partialorder %v4942_v63, 0.0  ;;  %v5070_v30 = vmul.f32 0.01, %v4942_v63  ;;  %v4944_v60 = vadd.f32 %v5783_v52, %v7765_v45 }
 0x47f   : > { %v5133_v36 = vsel %vm5005_vm10, %v4941_v31, %v5069_v1  ;;  %vm5007_vm2 = vcmp.gt.f32.partialorder %v4943_v5, 0.0  ;;  %v5071_v39 = vmul.f32 0.01, %v4943_v5 }
 0x480   : > { %v5261_v15 = vadd.f32 %v8521_v8, %v5133_v36  ;;  %v5134_v47 = vsel %vm5006_vm11, %v4942_v63, %v5070_v30  ;;  %vm5008_vm4 = vcmp.gt.f32.partialorder %v4944_v60, 0.0  ;;  %v5072_v38 = vmul.f32 0.01, %v4944_v60 }
 0x481   : > { %v5262_v28 = vadd.f32 %v8522_v59, %v5134_v47  ;;  %v5135_v58 = vsel %vm5007_vm2, %v4943_v5, %v5071_v39 }
 0x482   : > { %v5263_v18 = vadd.f32 %v8523_v3, %v5135_v58  ;;  %v5136_v26 = vsel %vm5008_vm4, %v4944_v60, %v5072_v38  ;;  %5325 = vst [vmem:[%s7975_s11 + $0x1e0] sm:$0xff] %v5261_v15 }
 0x483   : > { %v5264_v55 = vadd.f32 %v8524_v9, %v5136_v26  ;;  %5326 = vst [vmem:[%s7975_s11 + $0x1e8] sm:$0xff] %v5262_v28 }
 0x484   : > { %5327 = vst [vmem:[%s7975_s11 + $0x1f0] sm:$0xff] %v5263_v18 }
 0x485   : > { %5328 = vst [vmem:[%s7975_s11 + $0x1f8] sm:$0xff] %v5264_v55 }
 0x486 PF: > { %s16_s18 = sadd.s32 1, %s6527_s18  }
 0x487   : > { %p13_p3 = scmp.ge.s32.totalorder %s16_s18, 4  }
 0x489   :  { %15 = sbr.rel (!%p13_p3) target bundleno = 1 (0x1), region = 75 }
 0x490   :  { %5350 = vsyncpa [#allocation4], 1 }
 0x491   :  { %5352 = vsyncpa [#allocation4 + $0x1], 1 }

</bundles_post_ra>
